<compile_context>
chip_gen: v5e
topology: v5e:2x2
jax: 0.10.0
libtpu: 0.0.40
codegen_flags: <defaults>
</compile_context>

<pallas_src>
import functools
import math

import jax
import jax.numpy as jnp
from jax.experimental import pallas as pl
from jax.experimental.pallas import tpu as pltpu


def _round_up(x, m):
    return (x + m - 1) // m * m


# ---------------------------------------------------------------------------
# Pallas kernel: one (batch, seq-tile) block.
#   q/k/v/o refs : (1, tile_n, H*D)   natural token-major layout (contiguous HBM DMA)
#   qt/kt/vt/ot  : (HD_pad, tile_n)   f32 token-last (lane-dense) scratch slabs
#   stage        : (tch, 128)         f32 staging for non-128-aligned lane chunks
# ---------------------------------------------------------------------------
def _ring_dilated_attn_kernel(q_ref, k_ref, v_ref, o_ref,
                              qt_ref, kt_ref, vt_ref, ot_ref, stage_ref, *,
                              d, hd, group_info, num_groups,
                              tch, cch, approx_reciprocal):
    tile_n = q_ref.shape[1]
    n_lane_ch = (hd + 127) // 128
    scale = 1.0 / math.sqrt(d)
    groups_f = float(num_groups)

    # Row ranges (within the packed H*D axis) of the active head-groups.
    active_ranges = [(r0, r0 + hg * d) for (r0, hg, act) in group_info if act]

    def chunk_needed(c0, c1):
        return any(not (c1 <= a or c0 >= b) for (a, b) in active_ranges)

    # ---- relayout inputs: [tile_n, hd] -> token-last [hd, tile_n] (f32) -------
    # All transposes are (tch,128) <-> (128,tch) f32, i.e. fully (8,128)
    # aligned; XLU work hides under the HBM DMA of this bandwidth-bound kernel.
    def transpose_in(x_ref, xt_ref):
        for t in range(tile_n // tch):
            t0 = t * tch
            for c in range(n_lane_ch):
                c0 = c * 128
                w = min(128, hd - c0)
                if not chunk_needed(c0, c0 + w):
                    continue            # heads of skipped groups are never read
                if w == 128:
                    blk = x_ref[0, t0:t0 + tch, c0:c0 + 128].astype(jnp.float32)
                else:
                    stage_ref[:, :w] = (
                        x_ref[0, t0:t0 + tch, c0:c0 + w].astype(jnp.float32))
                    blk = stage_ref[...]   # garbage lanes land in rows >= hd (unread)
                xt_ref[c0:c0 + 128, t0:t0 + tch] = jnp.transpose(blk)

    transpose_in(q_ref, qt_ref)
    transpose_in(k_ref, kt_ref)
    transpose_in(v_ref, vt_ref)

    # ---- per-token (hg x hg) attention over the head axis, lane-dense ---------
    # Token axis processed in sub-chunks of cch so live values stay bounded.
    for t in range(tile_n // cch):
        tok = pl.ds(t * cch, cch)
        for (row0, hg, act) in group_info:
            if not act:
                # segment_length > seq_len: reference adds nothing for this group.
                for j in range(hg):
                    ot_ref[row0 + j * d: row0 + (j + 1) * d, tok] = (
                        jnp.zeros((d, cch), jnp.float32))
                continue
            for i in range(hg):
                qi = qt_ref[row0 + i * d: row0 + (i + 1) * d, tok]   # (d, cch)
                # scores over the hg "key heads"; stats are tiny (1, cch) rows
                s = []
                for j in range(hg):
                    kj = kt_ref[row0 + j * d: row0 + (j + 1) * d, tok]
                    s.append(jnp.sum(qi * kj, axis=0, keepdims=True) * scale)
                m = s[0]
                for j in range(1, hg):
                    m = jnp.maximum(m, s[j])
                p = [jnp.exp(sj - m) for sj in s]
                denom = p[0]
                for j in range(1, hg):
                    denom = denom + p[j]
                # Fold the softmax denominator and the 1/num_groups factor.
                scaled = denom * groups_f
                if approx_reciprocal:
                    inv = pl.reciprocal(scaled, approx=True)
                else:
                    inv = 1.0 / scaled
                # Streamed p*v accumulation (one v slab live at a time).
                acc = None
                for j in range(hg):
                    vj = vt_ref[row0 + j * d: row0 + (j + 1) * d, tok]
                    acc = p[j] * vj if acc is None else acc + p[j] * vj
                ot_ref[row0 + i * d: row0 + (i + 1) * d, tok] = acc * inv

    # ---- relayout output back to the natural [tile_n, hd] layout --------------
    for t in range(tile_n // tch):
        t0 = t * tch
        for c in range(n_lane_ch):
            c0 = c * 128
            w = min(128, hd - c0)
            blk = jnp.transpose(ot_ref[c0:c0 + 128, t0:t0 + tch])    # (tch, 128)
            o_ref[0, t0:t0 + tch, c0:c0 + w] = blk[:, :w].astype(o_ref.dtype)


# ---------------------------------------------------------------------------
# Wrapper
# ---------------------------------------------------------------------------
def true_ring_dilated_attention(query, key, value, *,
                                segment_lengths, dilation_rates,
                                ring_size=1, chunk_size_kv=None,
                                is_causal=False, tile_n=None,
                                approx_reciprocal=False):
    """Pallas implementation of TrueRingDilatedAttention.forward (eval, dropout=0)."""
    assert len(segment_lengths) == len(dilation_rates)
    # TODO(synk): causal masking not implemented (the reference's causal path is
    # only well-formed for degenerate shapes in this [B,N,H,D] layout).
    assert not is_causal, "is_causal=True not supported in this kernel"

    b, n, h, d = query.shape
    num_groups = len(segment_lengths)
    heads_per_group = h // num_groups
    itemsize = query.dtype.itemsize
    hd = h * d
    hd_pad = _round_up(hd, 128)

    # Ring chunking: the reference's per-chunk broadcasting requires
    # chunk_len == seq_len, so every valid configuration collapses to a single
    # K/V chunk (identical to ring_size == 1).
    # TODO(synk): multi-chunk ring (chunk_len < seq_len) raises in PyTorch too.
    if ring_size > 1:
        cs = chunk_size_kv if chunk_size_kv is not None else max(
            (n + ring_size - 1) // ring_size, max(segment_lengths))
        assert cs >= n, "reference semantics only well-defined for a single K/V chunk"

    # Head ranges / activity per group (last group absorbs remainder heads).
    # dilation_rates are accepted but unused: both reference branches collapse
    # to the same per-token head x head attention in this layout.
    group_info = []
    any_active = False
    for i, seg_len in enumerate(segment_lengths):
        hs = i * heads_per_group
        he = (i + 1) * heads_per_group if i < num_groups - 1 else h
        if he <= hs:
            continue
        act = bool(seg_len <= n)
        any_active = any_active or act
        group_info.append((hs * d, he - hs, act))
    if not any_active:
        return jnp.zeros((b, n, h, d), query.dtype)

    # Natural layout: [B, N, H, D] -> [B, N, H*D] is a free reshape (no copy).
    q2 = query.reshape(b, n, hd)
    k2 = key.reshape(b, n, hd)
    v2 = value.reshape(b, n, hd)

    # Pad the token axis to a multiple of 128 if needed (padded tokens compute
    # harmless finite values that are sliced off afterwards).
    n_pad = _round_up(n, 128)
    if n_pad != n:
        pad = ((0, 0), (0, n_pad - n), (0, 0))
        q2, k2, v2 = (jnp.pad(x, pad) for x in (q2, k2, v2))

    # --- generation-aware VMEM budget & sequence-tile size ---------------------
    try:
        vmem_cap = int(getattr(pltpu.get_tpu_info(),
                               "vmem_capacity_bytes", 0)) or (64 << 20)
    except Exception:
        vmem_cap = 64 << 20
    # ~40 MiB on 64 MiB parts (v7x), ~80 MiB on 128 MiB parts (v5e/v6e).
    vmem_limit = max(min(vmem_cap * 5 // 8, 96 << 20), 32 << 20)
    budget = vmem_limit * 3 // 4     # headroom for compiler scratch / spills

    def vmem_usage(t):
        blocks = 4 * 2 * t * hd_pad * itemsize        # q,k,v,o double-buffered
        scratch = 4 * hd_pad * t * 4 + 256 * 128 * 4  # f32 slabs + stage
        return blocks + scratch

    if tile_n is None:
        tile_n = 128
        for cand in (2048, 1024, 512, 256, 128):
            if n_pad % cand == 0 and vmem_usage(cand) <= budget:
                tile_n = cand
                break
        # Keep >= 2 grid blocks so both TensorCores (v7x megacore) get work.
        while tile_n > 128 and b * (n_pad // tile_n) < 2:
            tile_n //= 2
    assert n_pad % tile_n == 0 and tile_n % 128 == 0

    tch = min(256, tile_n)   # token sub-chunk for the aligned transposes
    cch = min(512, tile_n)   # token sub-chunk for the attention compute

    kernel = functools.partial(
        _ring_dilated_attn_kernel,
        d=d, hd=hd,
        group_info=tuple(group_info),
        num_groups=num_groups,
        tch=tch, cch=cch,
        approx_reciprocal=approx_reciprocal,
    )

    spec = pl.BlockSpec((1, tile_n, hd), lambda bi, ti: (bi, ti, 0))

    hg2 = sum(hg * hg for (_, hg, act) in group_info if act)
    cost = pl.CostEstimate(
        flops=4 * b * n * hg2 * d,
        transcendentals=b * n * hg2,
        bytes_accessed=4 * b * n * hd * itemsize,
    )

    # TODO(synk): skipped-group K/V columns are still DMA'd (full-H blocks); in
    # the common case (all segment_lengths <= seq_len) nothing is wasted.
    o2 = pl.pallas_call(
        kernel,
        out_shape=jax.ShapeDtypeStruct((b, n_pad, hd), query.dtype),
        grid_spec=pltpu.PrefetchScalarGridSpec(
            num_scalar_prefetch=0,
            grid=(b, n_pad // tile_n),
            in_specs=[spec, spec, spec],
            out_specs=spec,
            scratch_shapes=[
                pltpu.VMEM((hd_pad, tile_n), jnp.float32),   # qt
                pltpu.VMEM((hd_pad, tile_n), jnp.float32),   # kt
                pltpu.VMEM((hd_pad, tile_n), jnp.float32),   # vt
                pltpu.VMEM((hd_pad, tile_n), jnp.float32),   # ot
                pltpu.VMEM((tch, 128), jnp.float32),         # stage
            ]),
        compiler_params=pltpu.CompilerParams(
            dimension_semantics=("parallel", "parallel"),
            vmem_limit_bytes=vmem_limit),
        cost_estimate=cost,
    )(q2, k2, v2)

    if n_pad != n:
        o2 = o2[:, :n, :]
    return o2.reshape(b, n, h, d)


# ---------------------------------------------------------------------------
# Pure-JAX reference (mirror of the PyTorch forward, non-causal, no dropout)
# ---------------------------------------------------------------------------
def reference_forward(query, key, value, *, segment_lengths, dilation_rates):
    b, n, h, d = query.shape
    num_groups = len(segment_lengths)
    heads_per_group = h // num_groups
    out = jnp.zeros_like(query)
    hi = jax.lax.Precision.HIGHEST
    for i, seg_len in enumerate(segment_lengths):
        if n < seg_len:
            continue
        hs = i * heads_per_group
        he = (i + 1) * heads_per_group if i < num_groups - 1 else h
        qg = query[:, :, hs:he, :]
        kg = key[:, :, hs:he, :]
        vg = value[:, :, hs:he, :]
        scores = jnp.einsum('bnid,bnjd->bnij', qg, kg, precision=hi) / math.sqrt(d)
        attn = jax.nn.softmax(scores, axis=-1)
        go = jnp.einsum('bnij,bnjd->bnid', attn, vg, precision=hi)
        out = out.at[:, :, hs:he, :].add(go)
    return out / num_groups


if __name__ == "__main__":
    # Module config (no learned parameters in this module).
    segment_lengths = [64, 128, 512]   # third segment > seq_len -> skipped (zeros)
    dilation_rates = [1, 2, 4]
    ring_size = 1

    # Small shapes: batch=2, seq=256, heads=6 (2 per group), head_dim=64.
    B, N, H, D = 2, 256, 6, 64
    key0 = jax.random.PRNGKey(0)
    kq, kk, kv = jax.random.split(key0, 3)
    q = jax.random.normal(kq, (B, N, H, D), dtype=jnp.float32)
    k = jax.random.normal(kk, (B, N, H, D), dtype=jnp.float32)
    v = jax.random.normal(kv, (B, N, H, D), dtype=jnp.float32)

    out = true_ring_dilated_attention(
        q, k, v,
        segment_lengths=segment_lengths,
        dilation_rates=dilation_rates,
        ring_size=ring_size,
        is_causal=False,
    )
    out = jax.block_until_ready(out)

    ref = reference_forward(q, k, v,
                            segment_lengths=segment_lengths,
                            dilation_rates=dilation_rates)
    ref = jax.block_until_ready(ref)

    assert out.shape == (B, N, H, D) and out.dtype == q.dtype
    assert jnp.allclose(out, ref, atol=2e-5, rtol=2e-5), \
        f"max abs err {jnp.max(jnp.abs(out - ref))}"
    print("KERNEL_OK")
</pallas_src>

<mosaic_0001>
module attributes {stable_mosaic.version = 11 : i64} {
  func.func @_ring_dilated_attn_kernel(%arg0: i32, %arg1: i32, %arg2: memref<1x256x384xf32, #tpu.memory_space<vmem>>, %arg3: memref<1x256x384xf32, #tpu.memory_space<vmem>>, %arg4: memref<1x256x384xf32, #tpu.memory_space<vmem>>, %arg5: memref<1x256x384xf32, #tpu.memory_space<vmem>>, %arg6: memref<384x256xf32, #tpu.memory_space<vmem>>, %arg7: memref<384x256xf32, #tpu.memory_space<vmem>>, %arg8: memref<384x256xf32, #tpu.memory_space<vmem>>, %arg9: memref<384x256xf32, #tpu.memory_space<vmem>>, %arg10: memref<256x128xf32, #tpu.memory_space<vmem>>) attributes {dimension_semantics = [#tpu.dimension_semantics<parallel>, #tpu.dimension_semantics<parallel>], iteration_bounds = array<i64: 2, 1>, scalar_prefetch = 0 : i64, scratch_operands = 5 : i64, tpu.core_type = #tpu.core_type<tc>, window_params = [{transform_indices = @transform_0, window_bounds = array<i64: 1, 256, 384>}, {transform_indices = @transform_1, window_bounds = array<i64: 1, 256, 384>}, {transform_indices = @transform_2, window_bounds = array<i64: 1, 256, 384>}, {transform_indices = @transform_3, window_bounds = array<i64: 1, 256, 384>}]} {
    %c0 = arith.constant 0 : index
    %c0_0 = arith.constant 0 : index
    %c0_1 = arith.constant 0 : index
    %0 = vector.load %arg2[%c0, %c0_0, %c0_1] : memref<1x256x384xf32, #tpu.memory_space<vmem>>, vector<1x256x128xf32>
    %1 = vector.shape_cast %0 : vector<1x256x128xf32> to vector<256x128xf32>
    %2 = tpu.transpose %1, [1, 0] : vector<256x128xf32> -> vector<128x256xf32>
    %c0_2 = arith.constant 0 : index
    %c0_3 = arith.constant 0 : index
    %3 = vector.load %arg6[%c0_2, %c0_3] : memref<384x256xf32, #tpu.memory_space<vmem>>, vector<128x256xf32>
    tpu.vector_store %arg6[%c0_2, %c0_3], %2 {strides = array<i32>} : memref<384x256xf32, #tpu.memory_space<vmem>>, vector<128x256xf32>,
    %c0_4 = arith.constant 0 : index
    %c0_5 = arith.constant 0 : index
    %c128 = arith.constant 128 : index
    %4 = vector.load %arg2[%c0_4, %c0_5, %c128] : memref<1x256x384xf32, #tpu.memory_space<vmem>>, vector<1x256x128xf32>
    %5 = vector.shape_cast %4 : vector<1x256x128xf32> to vector<256x128xf32>
    %6 = tpu.transpose %5, [1, 0] : vector<256x128xf32> -> vector<128x256xf32>
    %c128_6 = arith.constant 128 : index
    %c0_7 = arith.constant 0 : index
    %7 = vector.load %arg6[%c128_6, %c0_7] : memref<384x256xf32, #tpu.memory_space<vmem>>, vector<128x256xf32>
    tpu.vector_store %arg6[%c128_6, %c0_7], %6 {strides = array<i32>} : memref<384x256xf32, #tpu.memory_space<vmem>>, vector<128x256xf32>,
    %c0_8 = arith.constant 0 : index
    %c0_9 = arith.constant 0 : index
    %c0_10 = arith.constant 0 : index
    %8 = vector.load %arg3[%c0_8, %c0_9, %c0_10] : memref<1x256x384xf32, #tpu.memory_space<vmem>>, vector<1x256x128xf32>
    %9 = vector.shape_cast %8 : vector<1x256x128xf32> to vector<256x128xf32>
    %10 = tpu.transpose %9, [1, 0] : vector<256x128xf32> -> vector<128x256xf32>
    %c0_11 = arith.constant 0 : index
    %c0_12 = arith.constant 0 : index
    %11 = vector.load %arg7[%c0_11, %c0_12] : memref<384x256xf32, #tpu.memory_space<vmem>>, vector<128x256xf32>
    tpu.vector_store %arg7[%c0_11, %c0_12], %10 {strides = array<i32>} : memref<384x256xf32, #tpu.memory_space<vmem>>, vector<128x256xf32>,
    %c0_13 = arith.constant 0 : index
    %c0_14 = arith.constant 0 : index
    %c128_15 = arith.constant 128 : index
    %12 = vector.load %arg3[%c0_13, %c0_14, %c128_15] : memref<1x256x384xf32, #tpu.memory_space<vmem>>, vector<1x256x128xf32>
    %13 = vector.shape_cast %12 : vector<1x256x128xf32> to vector<256x128xf32>
    %14 = tpu.transpose %13, [1, 0] : vector<256x128xf32> -> vector<128x256xf32>
    %c128_16 = arith.constant 128 : index
    %c0_17 = arith.constant 0 : index
    %15 = vector.load %arg7[%c128_16, %c0_17] : memref<384x256xf32, #tpu.memory_space<vmem>>, vector<128x256xf32>
    tpu.vector_store %arg7[%c128_16, %c0_17], %14 {strides = array<i32>} : memref<384x256xf32, #tpu.memory_space<vmem>>, vector<128x256xf32>,
    %c0_18 = arith.constant 0 : index
    %c0_19 = arith.constant 0 : index
    %c0_20 = arith.constant 0 : index
    %16 = vector.load %arg4[%c0_18, %c0_19, %c0_20] : memref<1x256x384xf32, #tpu.memory_space<vmem>>, vector<1x256x128xf32>
    %17 = vector.shape_cast %16 : vector<1x256x128xf32> to vector<256x128xf32>
    %18 = tpu.transpose %17, [1, 0] : vector<256x128xf32> -> vector<128x256xf32>
    %c0_21 = arith.constant 0 : index
    %c0_22 = arith.constant 0 : index
    %19 = vector.load %arg8[%c0_21, %c0_22] : memref<384x256xf32, #tpu.memory_space<vmem>>, vector<128x256xf32>
    tpu.vector_store %arg8[%c0_21, %c0_22], %18 {strides = array<i32>} : memref<384x256xf32, #tpu.memory_space<vmem>>, vector<128x256xf32>,
    %c0_23 = arith.constant 0 : index
    %c0_24 = arith.constant 0 : index
    %c128_25 = arith.constant 128 : index
    %20 = vector.load %arg4[%c0_23, %c0_24, %c128_25] : memref<1x256x384xf32, #tpu.memory_space<vmem>>, vector<1x256x128xf32>
    %21 = vector.shape_cast %20 : vector<1x256x128xf32> to vector<256x128xf32>
    %22 = tpu.transpose %21, [1, 0] : vector<256x128xf32> -> vector<128x256xf32>
    %c128_26 = arith.constant 128 : index
    %c0_27 = arith.constant 0 : index
    %23 = vector.load %arg8[%c128_26, %c0_27] : memref<384x256xf32, #tpu.memory_space<vmem>>, vector<128x256xf32>
    tpu.vector_store %arg8[%c128_26, %c0_27], %22 {strides = array<i32>} : memref<384x256xf32, #tpu.memory_space<vmem>>, vector<128x256xf32>,
    %c0_28 = arith.constant 0 : index
    %c0_29 = arith.constant 0 : index
    %24 = vector.load %arg6[%c0_28, %c0_29] : memref<384x256xf32, #tpu.memory_space<vmem>>, vector<64x256xf32>
    %c0_30 = arith.constant 0 : index
    %c0_31 = arith.constant 0 : index
    %25 = vector.load %arg7[%c0_30, %c0_31] : memref<384x256xf32, #tpu.memory_space<vmem>>, vector<64x256xf32>
    %26 = arith.mulf %24, %25 : vector<64x256xf32>
    %cst = arith.constant dense<0.000000e+00> : vector<256xf32>
    %27 = vector.multi_reduction <add>, %26, %cst [0] : vector<64x256xf32> to vector<256xf32>
    %28 = vector.shape_cast %27 : vector<256xf32> to vector<1x256xf32>
    %cst_32 = arith.constant 1.250000e-01 : f32
    %29 = vector.broadcast %cst_32 : f32 to vector<1x256xf32>
    %30 = arith.mulf %28, %29 : vector<1x256xf32>
    %c64 = arith.constant 64 : index
    %c0_33 = arith.constant 0 : index
    %31 = vector.load %arg7[%c64, %c0_33] : memref<384x256xf32, #tpu.memory_space<vmem>>, vector<64x256xf32>
    %32 = arith.mulf %24, %31 : vector<64x256xf32>
    %cst_34 = arith.constant dense<0.000000e+00> : vector<256xf32>
    %33 = vector.multi_reduction <add>, %32, %cst_34 [0] : vector<64x256xf32> to vector<256xf32>
    %34 = vector.shape_cast %33 : vector<256xf32> to vector<1x256xf32>
    %cst_35 = arith.constant 1.250000e-01 : f32
    %35 = vector.broadcast %cst_35 : f32 to vector<1x256xf32>
    %36 = arith.mulf %34, %35 : vector<1x256xf32>
    %37 = arith.maximumf %30, %36 : vector<1x256xf32>
    %38 = arith.subf %30, %37 : vector<1x256xf32>
    %39 = math.exp %38 : vector<1x256xf32>
    %40 = arith.subf %36, %37 : vector<1x256xf32>
    %41 = math.exp %40 : vector<1x256xf32>
    %42 = arith.addf %39, %41 : vector<1x256xf32>
    %cst_36 = arith.constant 3.000000e+00 : f32
    %43 = vector.broadcast %cst_36 : f32 to vector<1x256xf32>
    %44 = arith.mulf %42, %43 : vector<1x256xf32>
    %cst_37 = arith.constant 1.000000e+00 : f32
    %45 = vector.broadcast %cst_37 : f32 to vector<1x256xf32>
    %46 = arith.divf %45, %44 : vector<1x256xf32>
    %c0_38 = arith.constant 0 : index
    %c0_39 = arith.constant 0 : index
    %47 = vector.load %arg8[%c0_38, %c0_39] : memref<384x256xf32, #tpu.memory_space<vmem>>, vector<64x256xf32>
    %48 = vector.broadcast %39 : vector<1x256xf32> to vector<64x256xf32>
    %49 = arith.mulf %48, %47 : vector<64x256xf32>
    %c64_40 = arith.constant 64 : index
    %c0_41 = arith.constant 0 : index
    %50 = vector.load %arg8[%c64_40, %c0_41] : memref<384x256xf32, #tpu.memory_space<vmem>>, vector<64x256xf32>
    %51 = vector.broadcast %41 : vector<1x256xf32> to vector<64x256xf32>
    %52 = arith.mulf %51, %50 : vector<64x256xf32>
    %53 = arith.addf %49, %52 : vector<64x256xf32>
    %54 = vector.broadcast %46 : vector<1x256xf32> to vector<64x256xf32>
    %55 = arith.mulf %53, %54 : vector<64x256xf32>
    %c0_42 = arith.constant 0 : index
    %c0_43 = arith.constant 0 : index
    %56 = vector.load %arg9[%c0_42, %c0_43] : memref<384x256xf32, #tpu.memory_space<vmem>>, vector<64x256xf32>
    tpu.vector_store %arg9[%c0_42, %c0_43], %55 {strides = array<i32>} : memref<384x256xf32, #tpu.memory_space<vmem>>, vector<64x256xf32>,
    %c64_44 = arith.constant 64 : index
    %c0_45 = arith.constant 0 : index
    %57 = vector.load %arg6[%c64_44, %c0_45] : memref<384x256xf32, #tpu.memory_space<vmem>>, vector<64x256xf32>
    %c0_46 = arith.constant 0 : index
    %c0_47 = arith.constant 0 : index
    %58 = vector.load %arg7[%c0_46, %c0_47] : memref<384x256xf32, #tpu.memory_space<vmem>>, vector<64x256xf32>
    %59 = arith.mulf %57, %58 : vector<64x256xf32>
    %cst_48 = arith.constant dense<0.000000e+00> : vector<256xf32>
    %60 = vector.multi_reduction <add>, %59, %cst_48 [0] : vector<64x256xf32> to vector<256xf32>
    %61 = vector.shape_cast %60 : vector<256xf32> to vector<1x256xf32>
    %cst_49 = arith.constant 1.250000e-01 : f32
    %62 = vector.broadcast %cst_49 : f32 to vector<1x256xf32>
    %63 = arith.mulf %61, %62 : vector<1x256xf32>
    %c64_50 = arith.constant 64 : index
    %c0_51 = arith.constant 0 : index
    %64 = vector.load %arg7[%c64_50, %c0_51] : memref<384x256xf32, #tpu.memory_space<vmem>>, vector<64x256xf32>
    %65 = arith.mulf %57, %64 : vector<64x256xf32>
    %cst_52 = arith.constant dense<0.000000e+00> : vector<256xf32>
    %66 = vector.multi_reduction <add>, %65, %cst_52 [0] : vector<64x256xf32> to vector<256xf32>
    %67 = vector.shape_cast %66 : vector<256xf32> to vector<1x256xf32>
    %cst_53 = arith.constant 1.250000e-01 : f32
    %68 = vector.broadcast %cst_53 : f32 to vector<1x256xf32>
    %69 = arith.mulf %67, %68 : vector<1x256xf32>
    %70 = arith.maximumf %63, %69 : vector<1x256xf32>
    %71 = arith.subf %63, %70 : vector<1x256xf32>
    %72 = math.exp %71 : vector<1x256xf32>
    %73 = arith.subf %69, %70 : vector<1x256xf32>
    %74 = math.exp %73 : vector<1x256xf32>
    %75 = arith.addf %72, %74 : vector<1x256xf32>
    %cst_54 = arith.constant 3.000000e+00 : f32
    %76 = vector.broadcast %cst_54 : f32 to vector<1x256xf32>
    %77 = arith.mulf %75, %76 : vector<1x256xf32>
    %cst_55 = arith.constant 1.000000e+00 : f32
    %78 = vector.broadcast %cst_55 : f32 to vector<1x256xf32>
    %79 = arith.divf %78, %77 : vector<1x256xf32>
    %c0_56 = arith.constant 0 : index
    %c0_57 = arith.constant 0 : index
    %80 = vector.load %arg8[%c0_56, %c0_57] : memref<384x256xf32, #tpu.memory_space<vmem>>, vector<64x256xf32>
    %81 = vector.broadcast %72 : vector<1x256xf32> to vector<64x256xf32>
    %82 = arith.mulf %81, %80 : vector<64x256xf32>
    %c64_58 = arith.constant 64 : index
    %c0_59 = arith.constant 0 : index
    %83 = vector.load %arg8[%c64_58, %c0_59] : memref<384x256xf32, #tpu.memory_space<vmem>>, vector<64x256xf32>
    %84 = vector.broadcast %74 : vector<1x256xf32> to vector<64x256xf32>
    %85 = arith.mulf %84, %83 : vector<64x256xf32>
    %86 = arith.addf %82, %85 : vector<64x256xf32>
    %87 = vector.broadcast %79 : vector<1x256xf32> to vector<64x256xf32>
    %88 = arith.mulf %86, %87 : vector<64x256xf32>
    %c64_60 = arith.constant 64 : index
    %c0_61 = arith.constant 0 : index
    %89 = vector.load %arg9[%c64_60, %c0_61] : memref<384x256xf32, #tpu.memory_space<vmem>>, vector<64x256xf32>
    tpu.vector_store %arg9[%c64_60, %c0_61], %88 {strides = array<i32>} : memref<384x256xf32, #tpu.memory_space<vmem>>, vector<64x256xf32>,
    %c128_62 = arith.constant 128 : index
    %c0_63 = arith.constant 0 : index
    %90 = vector.load %arg6[%c128_62, %c0_63] : memref<384x256xf32, #tpu.memory_space<vmem>>, vector<64x256xf32>
    %c128_64 = arith.constant 128 : index
    %c0_65 = arith.constant 0 : index
    %91 = vector.load %arg7[%c128_64, %c0_65] : memref<384x256xf32, #tpu.memory_space<vmem>>, vector<64x256xf32>
    %92 = arith.mulf %90, %91 : vector<64x256xf32>
    %cst_66 = arith.constant dense<0.000000e+00> : vector<256xf32>
    %93 = vector.multi_reduction <add>, %92, %cst_66 [0] : vector<64x256xf32> to vector<256xf32>
    %94 = vector.shape_cast %93 : vector<256xf32> to vector<1x256xf32>
    %cst_67 = arith.constant 1.250000e-01 : f32
    %95 = vector.broadcast %cst_67 : f32 to vector<1x256xf32>
    %96 = arith.mulf %94, %95 : vector<1x256xf32>
    %c192 = arith.constant 192 : index
    %c0_68 = arith.constant 0 : index
    %97 = vector.load %arg7[%c192, %c0_68] : memref<384x256xf32, #tpu.memory_space<vmem>>, vector<64x256xf32>
    %98 = arith.mulf %90, %97 : vector<64x256xf32>
    %cst_69 = arith.constant dense<0.000000e+00> : vector<256xf32>
    %99 = vector.multi_reduction <add>, %98, %cst_69 [0] : vector<64x256xf32> to vector<256xf32>
    %100 = vector.shape_cast %99 : vector<256xf32> to vector<1x256xf32>
    %cst_70 = arith.constant 1.250000e-01 : f32
    %101 = vector.broadcast %cst_70 : f32 to vector<1x256xf32>
    %102 = arith.mulf %100, %101 : vector<1x256xf32>
    %103 = arith.maximumf %96, %102 : vector<1x256xf32>
    %104 = arith.subf %96, %103 : vector<1x256xf32>
    %105 = math.exp %104 : vector<1x256xf32>
    %106 = arith.subf %102, %103 : vector<1x256xf32>
    %107 = math.exp %106 : vector<1x256xf32>
    %108 = arith.addf %105, %107 : vector<1x256xf32>
    %cst_71 = arith.constant 3.000000e+00 : f32
    %109 = vector.broadcast %cst_71 : f32 to vector<1x256xf32>
    %110 = arith.mulf %108, %109 : vector<1x256xf32>
    %cst_72 = arith.constant 1.000000e+00 : f32
    %111 = vector.broadcast %cst_72 : f32 to vector<1x256xf32>
    %112 = arith.divf %111, %110 : vector<1x256xf32>
    %c128_73 = arith.constant 128 : index
    %c0_74 = arith.constant 0 : index
    %113 = vector.load %arg8[%c128_73, %c0_74] : memref<384x256xf32, #tpu.memory_space<vmem>>, vector<64x256xf32>
    %114 = vector.broadcast %105 : vector<1x256xf32> to vector<64x256xf32>
    %115 = arith.mulf %114, %113 : vector<64x256xf32>
    %c192_75 = arith.constant 192 : index
    %c0_76 = arith.constant 0 : index
    %116 = vector.load %arg8[%c192_75, %c0_76] : memref<384x256xf32, #tpu.memory_space<vmem>>, vector<64x256xf32>
    %117 = vector.broadcast %107 : vector<1x256xf32> to vector<64x256xf32>
    %118 = arith.mulf %117, %116 : vector<64x256xf32>
    %119 = arith.addf %115, %118 : vector<64x256xf32>
    %120 = vector.broadcast %112 : vector<1x256xf32> to vector<64x256xf32>
    %121 = arith.mulf %119, %120 : vector<64x256xf32>
    %c128_77 = arith.constant 128 : index
    %c0_78 = arith.constant 0 : index
    %122 = vector.load %arg9[%c128_77, %c0_78] : memref<384x256xf32, #tpu.memory_space<vmem>>, vector<64x256xf32>
    tpu.vector_store %arg9[%c128_77, %c0_78], %121 {strides = array<i32>} : memref<384x256xf32, #tpu.memory_space<vmem>>, vector<64x256xf32>,
    %c192_79 = arith.constant 192 : index
    %c0_80 = arith.constant 0 : index
    %123 = vector.load %arg6[%c192_79, %c0_80] : memref<384x256xf32, #tpu.memory_space<vmem>>, vector<64x256xf32>
    %c128_81 = arith.constant 128 : index
    %c0_82 = arith.constant 0 : index
    %124 = vector.load %arg7[%c128_81, %c0_82] : memref<384x256xf32, #tpu.memory_space<vmem>>, vector<64x256xf32>
    %125 = arith.mulf %123, %124 : vector<64x256xf32>
    %cst_83 = arith.constant dense<0.000000e+00> : vector<256xf32>
    %126 = vector.multi_reduction <add>, %125, %cst_83 [0] : vector<64x256xf32> to vector<256xf32>
    %127 = vector.shape_cast %126 : vector<256xf32> to vector<1x256xf32>
    %cst_84 = arith.constant 1.250000e-01 : f32
    %128 = vector.broadcast %cst_84 : f32 to vector<1x256xf32>
    %129 = arith.mulf %127, %128 : vector<1x256xf32>
    %c192_85 = arith.constant 192 : index
    %c0_86 = arith.constant 0 : index
    %130 = vector.load %arg7[%c192_85, %c0_86] : memref<384x256xf32, #tpu.memory_space<vmem>>, vector<64x256xf32>
    %131 = arith.mulf %123, %130 : vector<64x256xf32>
    %cst_87 = arith.constant dense<0.000000e+00> : vector<256xf32>
    %132 = vector.multi_reduction <add>, %131, %cst_87 [0] : vector<64x256xf32> to vector<256xf32>
    %133 = vector.shape_cast %132 : vector<256xf32> to vector<1x256xf32>
    %cst_88 = arith.constant 1.250000e-01 : f32
    %134 = vector.broadcast %cst_88 : f32 to vector<1x256xf32>
    %135 = arith.mulf %133, %134 : vector<1x256xf32>
    %136 = arith.maximumf %129, %135 : vector<1x256xf32>
    %137 = arith.subf %129, %136 : vector<1x256xf32>
    %138 = math.exp %137 : vector<1x256xf32>
    %139 = arith.subf %135, %136 : vector<1x256xf32>
    %140 = math.exp %139 : vector<1x256xf32>
    %141 = arith.addf %138, %140 : vector<1x256xf32>
    %cst_89 = arith.constant 3.000000e+00 : f32
    %142 = vector.broadcast %cst_89 : f32 to vector<1x256xf32>
    %143 = arith.mulf %141, %142 : vector<1x256xf32>
    %cst_90 = arith.constant 1.000000e+00 : f32
    %144 = vector.broadcast %cst_90 : f32 to vector<1x256xf32>
    %145 = arith.divf %144, %143 : vector<1x256xf32>
    %c128_91 = arith.constant 128 : index
    %c0_92 = arith.constant 0 : index
    %146 = vector.load %arg8[%c128_91, %c0_92] : memref<384x256xf32, #tpu.memory_space<vmem>>, vector<64x256xf32>
    %147 = vector.broadcast %138 : vector<1x256xf32> to vector<64x256xf32>
    %148 = arith.mulf %147, %146 : vector<64x256xf32>
    %c192_93 = arith.constant 192 : index
    %c0_94 = arith.constant 0 : index
    %149 = vector.load %arg8[%c192_93, %c0_94] : memref<384x256xf32, #tpu.memory_space<vmem>>, vector<64x256xf32>
    %150 = vector.broadcast %140 : vector<1x256xf32> to vector<64x256xf32>
    %151 = arith.mulf %150, %149 : vector<64x256xf32>
    %152 = arith.addf %148, %151 : vector<64x256xf32>
    %153 = vector.broadcast %145 : vector<1x256xf32> to vector<64x256xf32>
    %154 = arith.mulf %152, %153 : vector<64x256xf32>
    %c192_95 = arith.constant 192 : index
    %c0_96 = arith.constant 0 : index
    %155 = vector.load %arg9[%c192_95, %c0_96] : memref<384x256xf32, #tpu.memory_space<vmem>>, vector<64x256xf32>
    tpu.vector_store %arg9[%c192_95, %c0_96], %154 {strides = array<i32>} : memref<384x256xf32, #tpu.memory_space<vmem>>, vector<64x256xf32>,
    %cst_97 = arith.constant 0.000000e+00 : f32
    %156 = vector.broadcast %cst_97 : f32 to vector<64x256xf32>
    %c256 = arith.constant 256 : index
    %c0_98 = arith.constant 0 : index
    %157 = vector.load %arg9[%c256, %c0_98] : memref<384x256xf32, #tpu.memory_space<vmem>>, vector<64x256xf32>
    tpu.vector_store %arg9[%c256, %c0_98], %156 {strides = array<i32>} : memref<384x256xf32, #tpu.memory_space<vmem>>, vector<64x256xf32>,
    %cst_99 = arith.constant 0.000000e+00 : f32
    %158 = vector.broadcast %cst_99 : f32 to vector<64x256xf32>
    %c320 = arith.constant 320 : index
    %c0_100 = arith.constant 0 : index
    %159 = vector.load %arg9[%c320, %c0_100] : memref<384x256xf32, #tpu.memory_space<vmem>>, vector<64x256xf32>
    tpu.vector_store %arg9[%c320, %c0_100], %158 {strides = array<i32>} : memref<384x256xf32, #tpu.memory_space<vmem>>, vector<64x256xf32>,
    %c0_101 = arith.constant 0 : index
    %c0_102 = arith.constant 0 : index
    %160 = vector.load %arg9[%c0_101, %c0_102] : memref<384x256xf32, #tpu.memory_space<vmem>>, vector<128x256xf32>
    %161 = tpu.transpose %160, [1, 0] : vector<128x256xf32> -> vector<256x128xf32>
    %c0_103 = arith.constant 0 : index
    %c0_104 = arith.constant 0 : index
    %c0_105 = arith.constant 0 : index
    %162 = vector.load %arg5[%c0_103, %c0_104, %c0_105] : memref<1x256x384xf32, #tpu.memory_space<vmem>>, vector<1x256x128xf32>
    %163 = vector.shape_cast %162 : vector<1x256x128xf32> to vector<256x128xf32>
    %164 = vector.shape_cast %161 : vector<256x128xf32> to vector<1x256x128xf32>
    tpu.vector_store %arg5[%c0_103, %c0_104, %c0_105], %164 {strides = array<i32>} : memref<1x256x384xf32, #tpu.memory_space<vmem>>, vector<1x256x128xf32>,
    %c128_106 = arith.constant 128 : index
    %c0_107 = arith.constant 0 : index
    %165 = vector.load %arg9[%c128_106, %c0_107] : memref<384x256xf32, #tpu.memory_space<vmem>>, vector<128x256xf32>
    %166 = tpu.transpose %165, [1, 0] : vector<128x256xf32> -> vector<256x128xf32>
    %c0_108 = arith.constant 0 : index
    %c0_109 = arith.constant 0 : index
    %c128_110 = arith.constant 128 : index
    %167 = vector.load %arg5[%c0_108, %c0_109, %c128_110] : memref<1x256x384xf32, #tpu.memory_space<vmem>>, vector<1x256x128xf32>
    %168 = vector.shape_cast %167 : vector<1x256x128xf32> to vector<256x128xf32>
    %169 = vector.shape_cast %166 : vector<256x128xf32> to vector<1x256x128xf32>
    tpu.vector_store %arg5[%c0_108, %c0_109, %c128_110], %169 {strides = array<i32>} : memref<1x256x384xf32, #tpu.memory_space<vmem>>, vector<1x256x128xf32>,
    %c256_111 = arith.constant 256 : index
    %c0_112 = arith.constant 0 : index
    %170 = vector.load %arg9[%c256_111, %c0_112] : memref<384x256xf32, #tpu.memory_space<vmem>>, vector<128x256xf32>
    %171 = tpu.transpose %170, [1, 0] : vector<128x256xf32> -> vector<256x128xf32>
    %c0_113 = arith.constant 0 : index
    %c0_114 = arith.constant 0 : index
    %c256_115 = arith.constant 256 : index
    %172 = vector.load %arg5[%c0_113, %c0_114, %c256_115] : memref<1x256x384xf32, #tpu.memory_space<vmem>>, vector<1x256x128xf32>
    %173 = vector.shape_cast %172 : vector<1x256x128xf32> to vector<256x128xf32>
    %174 = vector.shape_cast %171 : vector<256x128xf32> to vector<1x256x128xf32>
    tpu.vector_store %arg5[%c0_113, %c0_114, %c256_115], %174 {strides = array<i32>} : memref<1x256x384xf32, #tpu.memory_space<vmem>>, vector<1x256x128xf32>,
    return
  }
  func.func @transform_0(%arg0: i32, %arg1: i32) -> (i32, i32, i32) {
    %c0_i32 = arith.constant 0 : i32
    %c0_i32_0 = arith.constant 0 : i32
    return %arg0, %arg1, %c0_i32 : i32, i32, i32
  }
  func.func @transform_1(%arg0: i32, %arg1: i32) -> (i32, i32, i32) {
    %c0_i32 = arith.constant 0 : i32
    %c0_i32_0 = arith.constant 0 : i32
    return %arg0, %arg1, %c0_i32 : i32, i32, i32
  }
  func.func @transform_2(%arg0: i32, %arg1: i32) -> (i32, i32, i32) {
    %c0_i32 = arith.constant 0 : i32
    %c0_i32_0 = arith.constant 0 : i32
    return %arg0, %arg1, %c0_i32 : i32, i32, i32
  }
  func.func @transform_3(%arg0: i32, %arg1: i32) -> (i32, i32, i32) {
    %c0_i32 = arith.constant 0 : i32
    %c0_i32_0 = arith.constant 0 : i32
    return %arg0, %arg1, %c0_i32 : i32, i32, i32
  }
}

</mosaic_0001>

<bundles_post_ra>
// kernel: tpu_custom_call.1
= control target key start
LH: loop header
LB: loop body
LE: loop exit
PB: predicated region body
PF: predicated region fallthrough
CT: control target
= control target key end

     0   :  { %s4728_s0 = inlined_call_operand.hbm [shape: f32[2,256,384], index: 0, kind: input, shape index: {}]   ;;  %s4729_s1 = inlined_call_operand.hbm [shape: f32[2,256,384], index: 1, kind: input, shape index: {}]   ;;  %s4730_s2 = inlined_call_operand.hbm [shape: f32[2,256,384], index: 2, kind: input, shape index: {}]   ;;  %s4731_s3 = inlined_call_operand.hbm [shape: f32[2,256,384], index: 3, kind: output, shape index: {}]  }
   0x1   :  { %4765 = sst [smem:[#allocation45_spill]] %s4729_s1 }
   0x2   :  { %8 = vsyncpa [#allocation8], 0 }
   0x3   :  { %10 = vsyncpa [#allocation8 + $0x1], 0 }
   0x4   :  { %11 = vsyncpa [#allocation11], 0 }
   0x5   :  { %13 = vsyncpa [#allocation11 + $0x1], 0 }
   0x6   :  { %14 = vsyncpa [#allocation9], 0 }
   0x7   :  { %16 = vsyncpa [#allocation9 + $0x1], 0  ;;  %s3175_s12 = smov 0   ;;  %s3177_s13 = smov 0  }
   0x8   :  { %s3179_s14 = smov 0   ;;  %s3181_s15 = smov 0  }
   0x9   :  { %s3183_s16 = smov 0   ;;  %s3185_s17 = smov 0  }
   0xa LB: > { %4766 = sst [smem:[#allocation17_spill]] %s3136_s14  ;;  %s3206_s18 = sadd.s32 4294967295, %s3148_s17   ;;  %s3148_s17 = sphi %s3185_s17, %s22_s17   ;;  %s3144_s16 = sphi %s3183_s16, %s4888_s16   ;;  %s3140_s15 = sphi %s3181_s15, %s4887_s15   ;;  %s3136_s14 = sphi %s3179_s14, %s4891_s14   ;;  %s3132_s13 = sphi %s3177_s13, %s4890_s13   ;;  %s3128_s12 = sphi %s3175_s12, %s4889_s12  }
   0xb   : > { %4767 = sst [smem:[#allocation18_spill]] %s3144_s16  ;;  %s2829_s19 = sadd.s32 4294967294, %s3148_s17  }
   0xc   : > { %4768 = sst [smem:[#allocation19_spill]] %s3148_s17  ;;  %s34_s20 = sadd.s32 1, %s3144_s16 }
   0xd   : > { %s43_s21 = sadd.s32 1, %s3136_s14  ;;  %p36_p0 = scmp.ge.s32.totalorder %s34_s20, 2 }
   0xe   : > { %p50_p1 = scmp.ne.s32.totalorder %s3136_s14, %s3132_s13  ;;  %p51_p2 = scmp.eq.s32.totalorder %s3148_s17, 0 }
   0xf   : > { %p56_p3 = scmp.ne.s32.totalorder %s3132_s13, %s3128_s12  ;;  %s4893_s20 = smov (%p36_p0, %s34_s20), 0 }
  0x10   : > { %4769 = sst [smem:[#allocation20_spill]] %s4893_s20  ;;  %p3218_p4 = por %p51_p2, %p50_p1 }
  0x11   : > { %p57_p5 = scmp.eq.s32.totalorder %s3206_s18, 0  ;;  %s38_s23 = ssub.s32 %s3144_s16, %s4893_s20 }
  0x12   : > { %p138_p6 = scmp.eq.s32.totalorder %s3206_s18, 1  ;;  %p41_p7 = scmp.eq.s32.totalorder %s38_s23, 0 }
  0x13   : > { %p3226_p8 = por %p57_p5, %p56_p3  ;;  %p144_p10 = scmp.eq.s32.totalorder %s2829_s19, 1 }
  0x14   : > { %p3230_p9 = por %p138_p6, %p50_p1  ;;  %p2831_p12 = scmp.ge.s32.totalorder %s3148_s17, 2 }
  0x15   : > { %s3235_s26 = scalar_select %p41_p7, %s3136_s14, %s43_s21  }
  0x16   : > { %p3237_p11 = por %p144_p10, %p56_p3  ;;  %p2869_p13 = scmp.lt.s32.totalorder %s3148_s17, 2 }
  0x17   : > { %4773 = sst [smem:[#allocation21_spill]] %s3235_s26  ;;  %s164_s28 = sand.u32 1, %s3136_s14  }
  0x18   : > { %s3244_s29 = smul.u32 768, %s164_s28  ;;  %p3249_p0 = pnand %p2869_p13, %p3218_p4 }
  0x19   : > { %s2840_s30 = smul.u32 768, %s3144_s16  ;;  %s189_s5 = sand.u32 1, %s3148_s17  }
  0x1a   : > { %s4776_s1 = sld [smem:[#allocation45_spill]]  ;;  %s193_s10 = scalar_lea.vmem [#allocation10], %s3244_s29 }
  0x1b   : > { %s204_s11 = sshll.u32 %s193_s10, 4  ;;  %s190_s19 = scalar_lea.sflag [#allocation11], %s189_s5  ;;  %s205_s11 = int_to_ptr.vmem [resolvable:$true] %s204_s11 }
  0x1c   : > { %s3150_s21 = smov 384   ;;  %s3151_s22 = smov 24  }
  0x1d   : > { %p2835_p1 = scmp.ge.s32.totalorder %s3148_s17, 1  ;;  %p237_p2 = scmp.lt.s32.totalorder %s3148_s17, 3 }
  0x1e   : > { %s165_s5 = scalar_lea.sflag [#allocation8], %s164_s28  ;;  %s226_s16 = scalar_lea.hbm %s4730_s2, %s2840_s30 }
  0x1f   : > { %p3262_p3 = pnand %p2835_p1, %p237_p2  ;;  %s227_s26 = sshll.u32 %s226_s16, 4  ;;  %s228_s26 = int_to_ptr.hbm [resolvable:$true] %s227_s26 }
  0x20   : > { %s201_s8 = scalar_lea.hbm %s4776_s1, %s2840_s30  ;;  %s168_s1 = scalar_lea.vmem [#allocation7], %s3244_s29 }
  0x21   : > { %s202_s9 = sshll.u32 %s201_s8, 4  ;;  %s176_s8 = scalar_lea.hbm %s4728_s0, %s2840_s30  ;;  %s203_s9 = int_to_ptr.hbm [resolvable:$true] %s202_s9 }
  0x22   : > { %2861 = dma.hbm_to_vmem [thread:$0]  (!%p3249_p0), %s203_s9, 12288, %s205_s11, %s190_s19, %s3150_s21, %s3150_s21, %s3151_s22  }
  0x23   : > { %s177_s10 = sshll.u32 %s176_s8, 4  ;;  %s179_s20 = sshll.u32 %s168_s1, 4  ;;  %s178_s10 = int_to_ptr.hbm [resolvable:$true] %s177_s10  ;;  %s180_s20 = int_to_ptr.vmem [resolvable:$true] %s179_s20 }
  0x24   : > { %2858 = dma.hbm_to_vmem [thread:$0]  (!%p3249_p0), %s178_s10, 12288, %s180_s20, %s165_s5, %s3150_s21, %s3150_s21, %s3151_s22  }
  0x25   : > { %s218_s14 = scalar_lea.vmem [#allocation12], %s3244_s29  ;;  %241 = sbr.rel (%p3262_p3) target bundleno = 981 (0x3d5), region = 32 }
  0x26   : > { %s229_s17 = sshll.u32 %s218_s14, 4  ;;  %s230_s17 = int_to_ptr.vmem [resolvable:$true] %s229_s17 }
  0x27   : > { %2864 = dma.hbm_to_vmem [thread:$0]  (!%p3249_p0), %s228_s26, 12288, %s230_s17, %s190_s19, %s3150_s21, %s3150_s21, %s3151_s22  }
  0x2a   : > { %s3281_s1 = sand.u32 1, %s3132_s13  }
  0x2b   : > { %s3284_s20 = smul.u32 768, %s3281_s1  ;;  %s244_s28 = scalar_lea.sflag [#allocation8], %s3281_s1 }
  0x2d   : > { %s3288_s16 = scalar_lea.vmem [#allocation7], %s3284_s20 }
  0x2e   : > { %3115 = dma.done.wait (%p3226_p8), %s244_s28, 12288  }
  0x2f   : > { %3117 = vsyncadd (%p3226_p8), %s244_s28, 4294955008  ;;  %s253_s14 = sand.u32 1, %s3206_s18   ;;  %s3296_s26 = scalar_lea.vmem [#allocation10], %s3284_s20 }
  0x30   : > { %s254_s17 = scalar_lea.sflag [#allocation11], %s253_s14 }
  0x31   : > { %3119 = dma.done.wait (%p3226_p8), %s254_s17, 24576  }
  0x32   : > { %3121 = vsyncadd (%p3226_p8), %s254_s17, 4294942720  ;;  %v433_v0 = vld [vmem:[%s3288_s16 + $0x8] sm:$0xff]  ;;  %v321_v1 = vld [vmem:[%s3288_s16 + $0x180] sm:$0xff]  ;;  %s3473_s18 = scalar_lea.vmem [#allocation12], %s3284_s20  ;;  %s4565_s24 = scalar_lea.vmem [#allocation13], %s3284_s20 }
  0x33   : > { %v305_v2 = vld [vmem:[%s3288_s16] sm:$0xff]  ;;  %465 = vxpose.xlu2.b32.start [1/16] %v433_v0, 128  ;;  %369 = vxpose.xlu1.b32.start [1/16] %v321_v1, 128  ;;  %v322_v4 = vld [vmem:[%s3288_s16 + $0x198] sm:$0xff]  ;;  %v323_v7 = vld [vmem:[%s3288_s16 + $0x1b0] sm:$0xff]  ;;  %s2846_s29 = smul.u32 768, %s3140_s15  ;;  %s2689_s21 = sshll.u32 %s4565_s24, 4  ;;  %s2690_s21 = int_to_ptr.vmem [resolvable:$true] %s2689_s21 }
  0x34   : > { %337 = vxpose.xlu0.b32.start [1/16] %v305_v2, 128  ;;  %v434_v3 = vld [vmem:[%s3288_s16 + $0x20] sm:$0xff]  ;;  %v306_v5 = vld [vmem:[%s3288_s16 + $0x18] sm:$0xff]  ;;  %v307_v8 = vld [vmem:[%s3288_s16 + $0x30] sm:$0xff]  ;;  %s2674_s15 = scalar_lea.sflag [#allocation9], %s3281_s1  ;;  %s3082_s10 = scalar_lea.hbm %s4731_s3, 1536 }
  0x35   : > { %v435_v6 = vld [vmem:[%s3288_s16 + $0x38] sm:$0xff]  ;;  %v436_v9 = vld [vmem:[%s3288_s16 + $0x50] sm:$0xff]  ;;  %v324_v10 = vld [vmem:[%s3288_s16 + $0x1c8] sm:$0xff]  ;;  %s2688_s19 = scalar_lea.hbm %s4731_s3, %s2846_s29 }
  0x36   : > { %v308_v11 = vld [vmem:[%s3288_s16 + $0x48] sm:$0xff]  ;;  %v325_v13 = vld [vmem:[%s3288_s16 + $0x1e0] sm:$0xff]  ;;  %v326_v16 = vld [vmem:[%s3288_s16 + $0x1f8] sm:$0xff]  ;;  %s2691_s22 = sshll.u32 %s2688_s19, 4  ;;  %s2692_s22 = int_to_ptr.hbm [resolvable:$true] %s2691_s22 }
  0x37   : > { %v437_v12 = vld [vmem:[%s3288_s16 + $0x68] sm:$0xff]  ;;  %v309_v14 = vld [vmem:[%s3288_s16 + $0x60] sm:$0xff]  ;;  %v310_v17 = vld [vmem:[%s3288_s16 + $0x78] sm:$0xff]  ;;  %s3076_s23 = sshra.s32 %s2692_s22, 4  ;;  %s3077_s23 = int_to_ptr.hbm [resolvable:$true] %s3076_s23 }
  0x38   : > { %v438_v15 = vld [vmem:[%s3288_s16 + $0x80] sm:$0xff]  ;;  %v439_v18 = vld [vmem:[%s3288_s16 + $0x98] sm:$0xff]  ;;  %v327_v19 = vld [vmem:[%s3288_s16 + $0x210] sm:$0xff]  ;;  %s3078_s6 = scalar_lea.hbm %s3077_s23, 768  ;;  %p3083_p7 = scmp.lt.s32.totalorder %s3077_s23, %s4731_s3 }
  0x39   : > { %v311_v20 = vld [vmem:[%s3288_s16 + $0x90] sm:$0xff]  ;;  %v328_v22 = vld [vmem:[%s3288_s16 + $0x228] sm:$0xff]  ;;  %v329_v25 = vld [vmem:[%s3288_s16 + $0x240] sm:$0xff]  ;;  %p3079_p4 = scmp.ne.s32.totalorder %s3077_s23, %s3078_s6  ;;  %p3084_p8 = scmp.lt.s32.totalorder %s3082_s10, %s3078_s6 }
  0x3a   : > { %v440_v21 = vld [vmem:[%s3288_s16 + $0xb0] sm:$0xff]  ;;  %v312_v23 = vld [vmem:[%s3288_s16 + $0xa8] sm:$0xff]  ;;  %v313_v26 = vld [vmem:[%s3288_s16 + $0xc0] sm:$0xff] }
  0x3b   : > { %466 = vxpose.xlu2.b32.cont [2/16] %v434_v3, 128  ;;  %370 = vxpose.xlu1.b32.cont [2/16] %v322_v4, 128  ;;  %v441_v24 = vld [vmem:[%s3288_s16 + $0xc8] sm:$0xff]  ;;  %v442_v27 = vld [vmem:[%s3288_s16 + $0xe0] sm:$0xff]  ;;  %v330_v28 = vld [vmem:[%s3288_s16 + $0x258] sm:$0xff]  ;;  %p3080_p5 = pnand %p3079_p4, %p3230_p9  ;;  %p3085_p10 = por %p3084_p8, %p3083_p7 }
  0x3c   : > { %338 = vxpose.xlu0.b32.cont [2/16] %v306_v5, 128  ;;  %v314_v29 = vld [vmem:[%s3288_s16 + $0xd8] sm:$0xff]  ;;  %v331_v31 = vld [vmem:[%s3288_s16 + $0x270] sm:$0xff]  ;;  %v332_v34 = vld [vmem:[%s3288_s16 + $0x288] sm:$0xff] }
  0x3d   : > { %v443_v30 = vld [vmem:[%s3288_s16 + $0xf8] sm:$0xff]  ;;  %v315_v32 = vld [vmem:[%s3288_s16 + $0xf0] sm:$0xff]  ;;  %v316_v35 = vld [vmem:[%s3288_s16 + $0x108] sm:$0xff]  ;;  %p3081_p6 = pneg %p3080_p5 }
  0x3e   : > { %v444_v33 = vld [vmem:[%s3288_s16 + $0x110] sm:$0xff]  ;;  %v445_v36 = vld [vmem:[%s3288_s16 + $0x128] sm:$0xff]  ;;  %v333_v37 = vld [vmem:[%s3288_s16 + $0x2a0] sm:$0xff] }
  0x3f   : > { %v317_v38 = vld [vmem:[%s3288_s16 + $0x120] sm:$0xff]  ;;  %v334_v40 = vld [vmem:[%s3288_s16 + $0x2b8] sm:$0xff]  ;;  %v335_v43 = vld [vmem:[%s3288_s16 + $0x2d0] sm:$0xff]  ;;  %p3086_p13 = pnand %p3085_p10, %p3081_p6 }
  0x40   : > { %v446_v39 = vld [vmem:[%s3288_s16 + $0x140] sm:$0xff]  ;;  %v318_v41 = vld [vmem:[%s3288_s16 + $0x138] sm:$0xff]  ;;  %v319_v44 = vld [vmem:[%s3288_s16 + $0x150] sm:$0xff] }
  0x41   : > { %v447_v42 = vld [vmem:[%s3288_s16 + $0x158] sm:$0xff]  ;;  %v448_v45 = vld [vmem:[%s3288_s16 + $0x170] sm:$0xff]  ;;  %v336_v46 = vld [vmem:[%s3288_s16 + $0x2e8] sm:$0xff] }
  0x42   : > { %v320_v47 = vld [vmem:[%s3288_s16 + $0x168] sm:$0xff]  ;;  %v577_v48 = vld [vmem:[%s3296_s26 + $0x180] sm:$0xff]  ;;  %v578_v51 = vld [vmem:[%s3296_s26 + $0x198] sm:$0xff] }
  0x43   : > { %467 = vxpose.xlu2.b32.cont [3/16] %v435_v6, 128  ;;  %371 = vxpose.xlu1.b32.cont [3/16] %v323_v7, 128  ;;  %v561_v49 = vld [vmem:[%s3296_s26] sm:$0xff]  ;;  %v449_v50 = vld [vmem:[%s3288_s16 + $0x188] sm:$0xff]  ;;  %v562_v52 = vld [vmem:[%s3296_s26 + $0x18] sm:$0xff] }
  0x44   : > { %339 = vxpose.xlu0.b32.cont [3/16] %v307_v8, 128  ;;  %v450_v53 = vld [vmem:[%s3288_s16 + $0x1a0] sm:$0xff]  ;;  %v579_v54 = vld [vmem:[%s3296_s26 + $0x1b0] sm:$0xff]  ;;  %v451_v56 = vld [vmem:[%s3288_s16 + $0x1b8] sm:$0xff] }
  0x45   : > { %v563_v55 = vld [vmem:[%s3296_s26 + $0x30] sm:$0xff]  ;;  %v580_v57 = vld [vmem:[%s3296_s26 + $0x1c8] sm:$0xff]  ;;  %v581_v61 = vld [vmem:[%s3296_s26 + $0x1e0] sm:$0xff] }
  0x46   : > { %v564_v58 = vld [vmem:[%s3296_s26 + $0x48] sm:$0xff]  ;;  %v452_v59 = vld [vmem:[%s3288_s16 + $0x1d0] sm:$0xff]  ;;  %v565_v62 = vld [vmem:[%s3296_s26 + $0x60] sm:$0xff] }
  0x47   : > { %v453_v63 = vld [vmem:[%s3288_s16 + $0x1e8] sm:$0xff]  ;;  %v582_v3 = vld [vmem:[%s3296_s26 + $0x1f8] sm:$0xff]  ;;  %v454_v5 = vld [vmem:[%s3288_s16 + $0x200] sm:$0xff] }
  0x48   : > { %v566_v4 = vld [vmem:[%s3296_s26 + $0x78] sm:$0xff] }
  0x4b   : > { %468 = vxpose.xlu2.b32.cont [4/16] %v436_v9, 128  ;;  %372 = vxpose.xlu1.b32.cont [4/16] %v324_v10, 128  ;;  %v583_v9 = vld [vmem:[%s3296_s26 + $0x210] sm:$0xff] }
  0x4c   : > { %340 = vxpose.xlu0.b32.cont [4/16] %v308_v11, 128  ;;  %v567_v10 = vld [vmem:[%s3296_s26 + $0x90] sm:$0xff]  ;;  %v455_v11 = vld [vmem:[%s3288_s16 + $0x218] sm:$0xff] }
  0x53   : > { %469 = vxpose.xlu2.b32.cont [5/16] %v437_v12, 128  ;;  %373 = vxpose.xlu1.b32.cont [5/16] %v325_v13, 128 }
  0x54   : > { %341 = vxpose.xlu0.b32.cont [5/16] %v309_v14, 128 }
  0x5b   : > { %470 = vxpose.xlu2.b32.cont [6/16] %v438_v15, 128  ;;  %374 = vxpose.xlu1.b32.cont [6/16] %v326_v16, 128  ;;  %v584_v15 = vld [vmem:[%s3296_s26 + $0x228] sm:$0xff] }
  0x5c   : > { %342 = vxpose.xlu0.b32.cont [6/16] %v310_v17, 128  ;;  %v568_v16 = vld [vmem:[%s3296_s26 + $0xa8] sm:$0xff]  ;;  %v456_v17 = vld [vmem:[%s3288_s16 + $0x230] sm:$0xff] }
  0x63   : > { %471 = vxpose.xlu2.b32.cont [7/16] %v439_v18, 128  ;;  %375 = vxpose.xlu1.b32.cont [7/16] %v327_v19, 128 }
  0x64   : > { %343 = vxpose.xlu0.b32.cont [7/16] %v311_v20, 128 }
  0x6b   : > { %472 = vxpose.xlu2.b32.cont [8/16] %v440_v21, 128  ;;  %376 = vxpose.xlu1.b32.cont [8/16] %v328_v22, 128  ;;  %v585_v21 = vld [vmem:[%s3296_s26 + $0x240] sm:$0xff] }
  0x6c   : > { %344 = vxpose.xlu0.b32.cont [8/16] %v312_v23, 128  ;;  %v569_v22 = vld [vmem:[%s3296_s26 + $0xc0] sm:$0xff]  ;;  %v457_v23 = vld [vmem:[%s3288_s16 + $0x248] sm:$0xff] }
  0x73   : > { %473 = vxpose.xlu2.b32.cont [9/16] %v441_v24, 128  ;;  %377 = vxpose.xlu1.b32.cont [9/16] %v329_v25, 128 }
  0x74   : > { %345 = vxpose.xlu0.b32.cont [9/16] %v313_v26, 128 }
  0x7b   : > { %474 = vxpose.xlu2.b32.cont [10/16] %v442_v27, 128  ;;  %378 = vxpose.xlu1.b32.cont [10/16] %v330_v28, 128  ;;  %v586_v27 = vld [vmem:[%s3296_s26 + $0x258] sm:$0xff] }
  0x7c   : > { %346 = vxpose.xlu0.b32.cont [10/16] %v314_v29, 128  ;;  %v570_v28 = vld [vmem:[%s3296_s26 + $0xd8] sm:$0xff]  ;;  %v458_v29 = vld [vmem:[%s3288_s16 + $0x260] sm:$0xff] }
  0x83   : > { %475 = vxpose.xlu2.b32.cont [11/16] %v443_v30, 128  ;;  %379 = vxpose.xlu1.b32.cont [11/16] %v331_v31, 128 }
  0x84   : > { %347 = vxpose.xlu0.b32.cont [11/16] %v315_v32, 128 }
  0x8b   : > { %476 = vxpose.xlu2.b32.cont [12/16] %v444_v33, 128  ;;  %380 = vxpose.xlu1.b32.cont [12/16] %v332_v34, 128  ;;  %v587_v33 = vld [vmem:[%s3296_s26 + $0x270] sm:$0xff] }
  0x8c   : > { %348 = vxpose.xlu0.b32.cont [12/16] %v316_v35, 128  ;;  %v571_v34 = vld [vmem:[%s3296_s26 + $0xf0] sm:$0xff]  ;;  %v459_v35 = vld [vmem:[%s3288_s16 + $0x278] sm:$0xff] }
  0x93   : > { %477 = vxpose.xlu2.b32.cont [13/16] %v445_v36, 128  ;;  %381 = vxpose.xlu1.b32.cont [13/16] %v333_v37, 128 }
  0x94   : > { %349 = vxpose.xlu0.b32.cont [13/16] %v317_v38, 128 }
  0x9b   : > { %478 = vxpose.xlu2.b32.cont [14/16] %v446_v39, 128  ;;  %382 = vxpose.xlu1.b32.cont [14/16] %v334_v40, 128  ;;  %v588_v39 = vld [vmem:[%s3296_s26 + $0x288] sm:$0xff] }
  0x9c   : > { %350 = vxpose.xlu0.b32.cont [14/16] %v318_v41, 128  ;;  %v572_v40 = vld [vmem:[%s3296_s26 + $0x108] sm:$0xff]  ;;  %v460_v41 = vld [vmem:[%s3288_s16 + $0x290] sm:$0xff] }
  0xa3   : > { %479 = vxpose.xlu2.b32.cont [15/16] %v447_v42, 128  ;;  %383 = vxpose.xlu1.b32.cont [15/16] %v335_v43, 128 }
  0xa4   : > { %351 = vxpose.xlu0.b32.cont [15/16] %v319_v44, 128 }
  0xab   : > { %480 = vxpose.xlu2.b32.end [16/16] %v448_v45, 128  ;;  %384 = vxpose.xlu1.b32.end [16/16] %v336_v46, 128  ;;  %v589_v45 = vld [vmem:[%s3296_s26 + $0x2a0] sm:$0xff] }
  0xac   : > { %352 = vxpose.xlu0.b32.end [16/16] %v320_v47, 128  ;;  %v573_v46 = vld [vmem:[%s3296_s26 + $0x120] sm:$0xff]  ;;  %v461_v47 = vld [vmem:[%s3288_s16 + $0x2a8] sm:$0xff] }
  0xb3   : > { %625 = vxpose.xlu2.b32.start [1/16] %v577_v48, 128  ;;  %593 = vxpose.xlu1.b32.start [1/16] %v561_v49, 128 }
  0xb4   : > { %497 = vxpose.xlu0.b32.start [1/16] %v449_v50, 128 }
  0xbb   : > { %626 = vxpose.xlu2.b32.cont [2/16] %v578_v51, 128  ;;  %594 = vxpose.xlu1.b32.cont [2/16] %v562_v52, 128  ;;  %v590_v51 = vld [vmem:[%s3296_s26 + $0x2b8] sm:$0xff] }
  0xbc   : > { %498 = vxpose.xlu0.b32.cont [2/16] %v450_v53, 128  ;;  %v574_v52 = vld [vmem:[%s3296_s26 + $0x138] sm:$0xff]  ;;  %v462_v53 = vld [vmem:[%s3288_s16 + $0x2c0] sm:$0xff] }
  0xc3   : > { %627 = vxpose.xlu2.b32.cont [3/16] %v579_v54, 128  ;;  %595 = vxpose.xlu1.b32.cont [3/16] %v563_v55, 128 }
  0xc4   : > { %499 = vxpose.xlu0.b32.cont [3/16] %v451_v56, 128 }
  0xcb   : > { %628 = vxpose.xlu2.b32.cont [4/16] %v580_v57, 128  ;;  %596 = vxpose.xlu1.b32.cont [4/16] %v564_v58, 128  ;;  %v591_v57 = vld [vmem:[%s3296_s26 + $0x2d0] sm:$0xff] }
  0xcc   : > { %500 = vxpose.xlu0.b32.cont [4/16] %v452_v59, 128  ;;  %v3362_v60 = vpop.trf.xlu2  ;;  %v575_v58 = vld [vmem:[%s3296_s26 + $0x150] sm:$0xff]  ;;  %v463_v59 = vld [vmem:[%s3288_s16 + $0x2d8] sm:$0xff] }
  0xcd   : > { %4778 = vst [vmem:[#allocation22_spill] sm:$0xff] %v3362_v60 }
  0xd3   : > { %629 = vxpose.xlu2.b32.cont [5/16] %v581_v61, 128  ;;  %597 = vxpose.xlu1.b32.cont [5/16] %v565_v62, 128 }
  0xd4   : > { %501 = vxpose.xlu0.b32.cont [5/16] %v453_v63, 128  ;;  %v3367_v0 = vpop.trf.xlu2 }
  0xd5   : > { %4779 = vst [vmem:[#allocation23_spill] sm:$0xff] %v3367_v0 }
  0xd7   : > { %v3369_v1 = vpop.trf.xlu1 }
  0xd8   : > { %v3371_v2 = vpop.trf.xlu0 }
  0xdb   : > { %630 = vxpose.xlu2.b32.cont [6/16] %v582_v3, 128  ;;  %598 = vxpose.xlu1.b32.cont [6/16] %v566_v4, 128  ;;  %v592_v3 = vld [vmem:[%s3296_s26 + $0x2e8] sm:$0xff] }
  0xdc   : > { %502 = vxpose.xlu0.b32.cont [6/16] %v454_v5, 128  ;;  %v3376_v6 = vpop.trf.xlu2  ;;  %v576_v4 = vld [vmem:[%s3296_s26 + $0x168] sm:$0xff]  ;;  %v464_v5 = vld [vmem:[%s3288_s16 + $0x2f0] sm:$0xff] }
  0xdd   : > { %4780 = vst [vmem:[#allocation24_spill] sm:$0xff] %v3376_v6 }
  0xdf   : > { %v3378_v7 = vpop.trf.xlu1 }
  0xe0   : > { %v3380_v8 = vpop.trf.xlu0 }
  0xe3   : > { %631 = vxpose.xlu2.b32.cont [7/16] %v583_v9, 128  ;;  %599 = vxpose.xlu1.b32.cont [7/16] %v567_v10, 128 }
  0xe4   : > { %503 = vxpose.xlu0.b32.cont [7/16] %v455_v11, 128  ;;  %v3385_v12 = vpop.trf.xlu2 }
  0xe5   : > { %4781 = vst [vmem:[#allocation25_spill] sm:$0xff] %v3385_v12 }
  0xe7   : > { %v3387_v13 = vpop.trf.xlu1 }
  0xe8   : > { %v3389_v14 = vpop.trf.xlu0 }
  0xeb   : > { %632 = vxpose.xlu2.b32.cont [8/16] %v584_v15, 128  ;;  %600 = vxpose.xlu1.b32.cont [8/16] %v568_v16, 128  ;;  %v817_v15 = vld [vmem:[%s3473_s18] sm:$0xff]  ;;  %v705_v16 = vld [vmem:[%s3296_s26 + $0x188] sm:$0xff] }
  0xec   : > { %504 = vxpose.xlu0.b32.cont [8/16] %v456_v17, 128  ;;  %v3394_v18 = vpop.trf.xlu2  ;;  %v689_v17 = vld [vmem:[%s3296_s26 + $0x8] sm:$0xff] }
  0xed   : > { %4782 = vst [vmem:[#allocation26_spill] sm:$0xff] %v3394_v18 }
  0xef   : > { %v3396_v19 = vpop.trf.xlu1 }
  0xf0   : > { %v3398_v20 = vpop.trf.xlu0 }
  0xf3   : > { %633 = vxpose.xlu2.b32.cont [9/16] %v585_v21, 128  ;;  %601 = vxpose.xlu1.b32.cont [9/16] %v569_v22, 128 }
  0xf4   : > { %505 = vxpose.xlu0.b32.cont [9/16] %v457_v23, 128  ;;  %v3403_v24 = vpop.trf.xlu2 }
  0xf5   : > { %4783 = vst [vmem:[#allocation27_spill] sm:$0xff] %v3403_v24 }
  0xf7   : > { %v3405_v25 = vpop.trf.xlu1 }
  0xf8   : > { %v3407_v26 = vpop.trf.xlu0 }
  0xfb   : > { %634 = vxpose.xlu2.b32.cont [10/16] %v586_v27, 128  ;;  %602 = vxpose.xlu1.b32.cont [10/16] %v570_v28, 128  ;;  %v818_v27 = vld [vmem:[%s3473_s18 + $0x18] sm:$0xff]  ;;  %v706_v28 = vld [vmem:[%s3296_s26 + $0x1a0] sm:$0xff] }
  0xfc   : > { %506 = vxpose.xlu0.b32.cont [10/16] %v458_v29, 128  ;;  %v3412_v30 = vpop.trf.xlu2  ;;  %v690_v29 = vld [vmem:[%s3296_s26 + $0x20] sm:$0xff] }
  0xfd   : > { %4784 = vst [vmem:[#allocation28_spill] sm:$0xff] %v3412_v30 }
  0xff   : > { %v3414_v31 = vpop.trf.xlu1 }
 0x100   : > { %v3416_v32 = vpop.trf.xlu0 }
 0x103   : > { %635 = vxpose.xlu2.b32.cont [11/16] %v587_v33, 128  ;;  %603 = vxpose.xlu1.b32.cont [11/16] %v571_v34, 128 }
 0x104   : > { %507 = vxpose.xlu0.b32.cont [11/16] %v459_v35, 128  ;;  %v3421_v36 = vpop.trf.xlu2 }
 0x105   : > { %4785 = vst [vmem:[#allocation29_spill] sm:$0xff] %v3421_v36  ;;  %v695_v36 = vld [vmem:[%s3296_s26 + $0x98] sm:$0xff] }
 0x107   : > { %v3423_v37 = vpop.trf.xlu1 }
 0x108   : > { %v3425_v38 = vpop.trf.xlu0 }
 0x10b   : > { %636 = vxpose.xlu2.b32.cont [12/16] %v588_v39, 128  ;;  %604 = vxpose.xlu1.b32.cont [12/16] %v572_v40, 128  ;;  %v819_v39 = vld [vmem:[%s3473_s18 + $0x30] sm:$0xff]  ;;  %v707_v40 = vld [vmem:[%s3296_s26 + $0x1b8] sm:$0xff] }
 0x10c   : > { %508 = vxpose.xlu0.b32.cont [12/16] %v460_v41, 128  ;;  %v3430_v42 = vpop.trf.xlu2  ;;  %v691_v41 = vld [vmem:[%s3296_s26 + $0x38] sm:$0xff] }
 0x10f   : > { %v3432_v43 = vpop.trf.xlu1 }
 0x110   : > { %v3434_v44 = vpop.trf.xlu0 }
 0x113   : > { %637 = vxpose.xlu2.b32.cont [13/16] %v589_v45, 128  ;;  %605 = vxpose.xlu1.b32.cont [13/16] %v573_v46, 128 }
 0x114   : > { %509 = vxpose.xlu0.b32.cont [13/16] %v461_v47, 128  ;;  %v3439_v48 = vpop.trf.xlu2 }
 0x117   : > { %v3441_v49 = vpop.trf.xlu1 }
 0x118   : > { %v3443_v50 = vpop.trf.xlu0 }
 0x11b   : > { %638 = vxpose.xlu2.b32.cont [14/16] %v590_v51, 128  ;;  %606 = vxpose.xlu1.b32.cont [14/16] %v574_v52, 128  ;;  %v820_v51 = vld [vmem:[%s3473_s18 + $0x48] sm:$0xff]  ;;  %v708_v52 = vld [vmem:[%s3296_s26 + $0x1d0] sm:$0xff] }
 0x11c   : > { %510 = vxpose.xlu0.b32.cont [14/16] %v462_v53, 128  ;;  %v3448_v54 = vpop.trf.xlu2  ;;  %v692_v53 = vld [vmem:[%s3296_s26 + $0x50] sm:$0xff] }
 0x11f   : > { %v3450_v55 = vpop.trf.xlu1 }
 0x120   : > { %v3452_v56 = vpop.trf.xlu0 }
 0x123   : > { %639 = vxpose.xlu2.b32.cont [15/16] %v591_v57, 128  ;;  %607 = vxpose.xlu1.b32.cont [15/16] %v575_v58, 128 }
 0x124   : > { %511 = vxpose.xlu0.b32.cont [15/16] %v463_v59, 128  ;;  %v3457_v61 = vpop.trf.xlu2 }
 0x127   : > { %v3459_v62 = vpop.trf.xlu1 }
 0x128   : > { %v3461_v63 = vpop.trf.xlu0 }
 0x12b   : > { %640 = vxpose.xlu2.b32.end [16/16] %v592_v3, 128  ;;  %608 = vxpose.xlu1.b32.end [16/16] %v576_v4, 128  ;;  %v821_v3 = vld [vmem:[%s3473_s18 + $0x60] sm:$0xff]  ;;  %v709_v4 = vld [vmem:[%s3296_s26 + $0x1e8] sm:$0xff] }
 0x12c   : > { %512 = vxpose.xlu0.b32.end [16/16] %v464_v5, 128  ;;  %v3466_v9 = vpop.trf.xlu2  ;;  %v693_v5 = vld [vmem:[%s3296_s26 + $0x68] sm:$0xff] }
 0x12d   : > { %4786 = vst [vmem:[#allocation30_spill] sm:$0xff] %v3466_v9 }
 0x12f   : > { %v3468_v10 = vpop.trf.xlu1 }
 0x130   : > { %v3470_v11 = vpop.trf.xlu0 }
 0x133   : > { %849 = vxpose.xlu2.b32.start [1/16] %v817_v15, 128  ;;  %753 = vxpose.xlu1.b32.start [1/16] %v705_v16, 128 }
 0x134   : > { %721 = vxpose.xlu0.b32.start [1/16] %v689_v17, 128  ;;  %v3478_v21 = vpop.trf.xlu2 }
 0x135   : > { %4787 = vst [vmem:[#allocation31_spill] sm:$0xff] %v3478_v21 }
 0x137   : > { %v3480_v22 = vpop.trf.xlu1 }
 0x138   : > { %v3482_v23 = vpop.trf.xlu0 }
 0x13b   : > { %850 = vxpose.xlu2.b32.cont [2/16] %v818_v27, 128  ;;  %754 = vxpose.xlu1.b32.cont [2/16] %v706_v28, 128 }
 0x13c   : > { %722 = vxpose.xlu0.b32.cont [2/16] %v690_v29, 128  ;;  %v3487_v33 = vpop.trf.xlu2 }
 0x13d   : > { %4788 = vst [vmem:[#allocation32_spill] sm:$0xff] %v3487_v33 }
 0x13f   : > { %v3489_v34 = vpop.trf.xlu1 }
 0x140   : > { %v3491_v35 = vpop.trf.xlu0 }
 0x143   : > { %851 = vxpose.xlu2.b32.cont [3/16] %v819_v39, 128  ;;  %755 = vxpose.xlu1.b32.cont [3/16] %v707_v40, 128 }
 0x144   : > { %723 = vxpose.xlu0.b32.cont [3/16] %v691_v41, 128  ;;  %v3496_v45 = vpop.trf.xlu2 }
 0x145   : > { %4789 = vst [vmem:[#allocation33_spill] sm:$0xff] %v3496_v45 }
 0x147   : > { %v3498_v46 = vpop.trf.xlu1 }
 0x148   : > { %v3500_v47 = vpop.trf.xlu0 }
 0x14b   : > { %852 = vxpose.xlu2.b32.cont [4/16] %v820_v51, 128  ;;  %756 = vxpose.xlu1.b32.cont [4/16] %v708_v52, 128  ;;  %v822_v51 = vld [vmem:[%s3473_s18 + $0x78] sm:$0xff]  ;;  %v710_v52 = vld [vmem:[%s3296_s26 + $0x200] sm:$0xff] }
 0x14c   : > { %724 = vxpose.xlu0.b32.cont [4/16] %v692_v53, 128  ;;  %v641_v57 = vpop.trf.xlu2  ;;  %v694_v53 = vld [vmem:[%s3296_s26 + $0x80] sm:$0xff] }
 0x14d   : > { %v1106_v16 = vmul.f32 %v641_v57, %v3369_v1  ;;  %v1402_v17 = vmul.f32 %v641_v57, %v3441_v49 }
 0x14f   : > { %v3505_v58 = vpop.trf.xlu1 }
 0x150   : > { %v3507_v59 = vpop.trf.xlu0 }
 0x153   : > { %853 = vxpose.xlu2.b32.cont [5/16] %v821_v3, 128  ;;  %757 = vxpose.xlu1.b32.cont [5/16] %v709_v4, 128 }
 0x154   : > { %725 = vxpose.xlu0.b32.cont [5/16] %v693_v5, 128  ;;  %v642_v15 = vpop.trf.xlu2 }
 0x155   : > { %v1108_v27 = vmul.f32 %v642_v15, %v3378_v7  ;;  %v1404_v28 = vmul.f32 %v642_v15, %v3450_v55 }
 0x157   : > { %v1134_v29 = vadd.f32 %v1108_v27, %v1106_v16  ;;  %v1430_v39 = vadd.f32 %v1404_v28, %v1402_v17  ;;  %v609_v40 = vpop.trf.xlu1 }
 0x158   : > { %v3516_v41 = vpop.trf.xlu0  ;;  %v1105_v17 = vmul.f32 %v609_v40, %v3371_v2  ;;  %v1401_v27 = vmul.f32 %v609_v40, %v3443_v50 }
 0x15b   : > { %854 = vxpose.xlu2.b32.cont [6/16] %v822_v51, 128  ;;  %758 = vxpose.xlu1.b32.cont [6/16] %v710_v52, 128  ;;  %v823_v52 = vld [vmem:[%s3473_s18 + $0x90] sm:$0xff] }
 0x15c   : > { %726 = vxpose.xlu0.b32.cont [6/16] %v694_v53, 128  ;;  %v643_v3 = vpop.trf.xlu2  ;;  %v711_v53 = vld [vmem:[%s3296_s26 + $0x218] sm:$0xff] }
 0x15d   : > { %v1110_v57 = vmul.f32 %v643_v3, %v3387_v13  ;;  %v1406_v4 = vmul.f32 %v643_v3, %v3459_v62 }
 0x15f   : > { %v1135_v5 = vadd.f32 %v1134_v29, %v1110_v57  ;;  %v1431_v15 = vadd.f32 %v1430_v39, %v1406_v4  ;;  %v610_v16 = vpop.trf.xlu1 }
 0x160   : > { %v1107_v28 = vmul.f32 %v610_v16, %v3380_v8  ;;  %v1403_v45 = vmul.f32 %v610_v16, %v3452_v56  ;;  %v3527_v51 = vpop.trf.xlu0 }
 0x162   : > { %v1121_v33 = vadd.f32 %v1107_v28, %v1105_v17  ;;  %v1417_v29 = vadd.f32 %v1403_v45, %v1401_v27  ;;  %v824_v17 = vld [vmem:[%s3473_s18 + $0xa8] sm:$0xff]  ;;  %v712_v28 = vld [vmem:[%s3296_s26 + $0x230] sm:$0xff] }
 0x163   : > { %855 = vxpose.xlu2.b32.cont [7/16] %v823_v52, 128  ;;  %759 = vxpose.xlu1.b32.cont [7/16] %v711_v53, 128  ;;  %v696_v45 = vld [vmem:[%s3296_s26 + $0xb0] sm:$0xff] }
 0x164   : > { %727 = vxpose.xlu0.b32.cont [7/16] %v695_v36, 128  ;;  %v644_v39 = vpop.trf.xlu2 }
 0x165   : > { %v1112_v40 = vmul.f32 %v644_v39, %v3396_v19  ;;  %v1408_v3 = vmul.f32 %v644_v39, %v3468_v10 }
 0x167   : > { %v1136_v57 = vadd.f32 %v1135_v5, %v1112_v40  ;;  %v1432_v4 = vadd.f32 %v1431_v15, %v1408_v3  ;;  %v611_v16 = vpop.trf.xlu1 }
 0x168   : > { %v1109_v30 = vmul.f32 %v611_v16, %v3389_v14  ;;  %v1405_v21 = vmul.f32 %v611_v16, %v3461_v63  ;;  %v3536_v24 = vpop.trf.xlu0 }
 0x16a   : > { %v1122_v36 = vadd.f32 %v1121_v33, %v1109_v30  ;;  %v1418_v27 = vadd.f32 %v1417_v29, %v1405_v21  ;;  %v825_v30 = vld [vmem:[%s3473_s18 + $0xc0] sm:$0xff]  ;;  %v713_v33 = vld [vmem:[%s3296_s26 + $0x248] sm:$0xff] }
 0x16b   : > { %856 = vxpose.xlu2.b32.cont [8/16] %v824_v17, 128  ;;  %760 = vxpose.xlu1.b32.cont [8/16] %v712_v28, 128  ;;  %v697_v21 = vld [vmem:[%s3296_s26 + $0xc8] sm:$0xff] }
 0x16c   : > { %728 = vxpose.xlu0.b32.cont [8/16] %v696_v45, 128  ;;  %v645_v5 = vpop.trf.xlu2 }
 0x16d   : > { %v1114_v15 = vmul.f32 %v645_v5, %v3405_v25  ;;  %v1410_v52 = vmul.f32 %v645_v5, %v3480_v22 }
 0x16f   : > { %v1137_v53 = vadd.f32 %v1136_v57, %v1114_v15  ;;  %v1433_v39 = vadd.f32 %v1432_v4, %v1410_v52  ;;  %v612_v40 = vpop.trf.xlu1 }
 0x170   : > { %v1111_v3 = vmul.f32 %v612_v40, %v3398_v20  ;;  %v1407_v16 = vmul.f32 %v612_v40, %v3470_v11  ;;  %v3545_v9 = vpop.trf.xlu0 }
 0x172   : > { %v1123_v29 = vadd.f32 %v1122_v36, %v1111_v3  ;;  %v1419_v17 = vadd.f32 %v1418_v27, %v1407_v16  ;;  %v826_v36 = vld [vmem:[%s3473_s18 + $0xd8] sm:$0xff]  ;;  %v714_v3 = vld [vmem:[%s3296_s26 + $0x260] sm:$0xff] }
 0x173   : > { %857 = vxpose.xlu2.b32.cont [9/16] %v825_v30, 128  ;;  %761 = vxpose.xlu1.b32.cont [9/16] %v713_v33, 128  ;;  %v698_v27 = vld [vmem:[%s3296_s26 + $0xe0] sm:$0xff] }
 0x174   : > { %729 = vxpose.xlu0.b32.cont [9/16] %v697_v21, 128  ;;  %v646_v57 = vpop.trf.xlu2 }
 0x175   : > { %v1116_v4 = vmul.f32 %v646_v57, %v3414_v31  ;;  %v1412_v28 = vmul.f32 %v646_v57, %v3489_v34 }
 0x177   : > { %v1138_v45 = vadd.f32 %v1137_v53, %v1116_v4  ;;  %v1434_v5 = vadd.f32 %v1433_v39, %v1412_v28  ;;  %v613_v15 = vpop.trf.xlu1 }
 0x178   : > { %v1113_v52 = vmul.f32 %v613_v15, %v3407_v26  ;;  %v1409_v40 = vmul.f32 %v613_v15, %v3482_v23  ;;  %v3554_v18 = vpop.trf.xlu0 }
 0x179   : > { %4790 = vst [vmem:[#allocation34_spill] sm:$0xff] %v3554_v18 }
 0x17a   : > { %v1124_v16 = vadd.f32 %v1123_v29, %v1113_v52  ;;  %v1420_v30 = vadd.f32 %v1419_v17, %v1409_v40  ;;  %v827_v29 = vld [vmem:[%s3473_s18 + $0xf0] sm:$0xff]  ;;  %v715_v52 = vld [vmem:[%s3296_s26 + $0x278] sm:$0xff] }
 0x17b   : > { %858 = vxpose.xlu2.b32.cont [10/16] %v826_v36, 128  ;;  %762 = vxpose.xlu1.b32.cont [10/16] %v714_v3, 128  ;;  %v699_v17 = vld [vmem:[%s3296_s26 + $0xf8] sm:$0xff] }
 0x17c   : > { %730 = vxpose.xlu0.b32.cont [10/16] %v698_v27, 128  ;;  %v647_v53 = vpop.trf.xlu2 }
 0x17d   : > { %v1118_v39 = vmul.f32 %v647_v53, %v3423_v37  ;;  %v1414_v33 = vmul.f32 %v647_v53, %v3498_v46 }
 0x17f   : > { %v1139_v21 = vadd.f32 %v1138_v45, %v1118_v39  ;;  %v1435_v57 = vadd.f32 %v1434_v5, %v1414_v33  ;;  %v614_v4 = vpop.trf.xlu1 }
 0x180   : > { %v1115_v28 = vmul.f32 %v614_v4, %v3416_v32  ;;  %v1411_v15 = vmul.f32 %v614_v4, %v3491_v35  ;;  %v3563_v18 = vpop.trf.xlu0  ;;  %v828_v4 = vld [vmem:[%s3473_s18 + $0x108] sm:$0xff] }
 0x181   : > { %4791 = vst [vmem:[#allocation35_spill] sm:$0xff] %v3563_v18 }
 0x182   : > { %v1125_v40 = vadd.f32 %v1124_v16, %v1115_v28  ;;  %v1421_v36 = vadd.f32 %v1420_v30, %v1411_v15  ;;  %v716_v28 = vld [vmem:[%s3296_s26 + $0x290] sm:$0xff] }
 0x183   : > { %859 = vxpose.xlu2.b32.cont [11/16] %v827_v29, 128  ;;  %763 = vxpose.xlu1.b32.cont [11/16] %v715_v52, 128  ;;  %v700_v15 = vld [vmem:[%s3296_s26 + $0x110] sm:$0xff] }
 0x184   : > { %731 = vxpose.xlu0.b32.cont [11/16] %v699_v17, 128  ;;  %v648_v45 = vpop.trf.xlu2 }
 0x185   : > { %v1120_v5 = vmul.f32 %v648_v45, %v3432_v43  ;;  %v1416_v3 = vmul.f32 %v648_v45, %v3505_v58 }
 0x187   : > { %v3570_v27 = vadd.f32 %v1139_v21, %v1120_v5  ;;  %v3572_v53 = vadd.f32 %v1435_v57, %v1416_v3  ;;  %v615_v39 = vpop.trf.xlu1  ;;  %v829_v3 = vld [vmem:[%s3473_s18 + $0x120] sm:$0xff] }
 0x188   : > { %v1117_v33 = vmul.f32 %v615_v39, %v3425_v38  ;;  %v1413_v16 = vmul.f32 %v615_v39, %v3500_v47  ;;  %v3576_v30 = vpop.trf.xlu0  ;;  %v717_v39 = vld [vmem:[%s3296_s26 + $0x2a8] sm:$0xff] }
 0x189   : > { %4792 = vst [vmem:[#allocation36_spill] sm:$0xff] %v3576_v30  ;;  %v701_v30 = vld [vmem:[%s3296_s26 + $0x128] sm:$0xff] }
 0x18a   : > { %v1126_v29 = vadd.f32 %v1125_v40, %v1117_v33  ;;  %v1422_v52 = vadd.f32 %v1421_v36, %v1413_v16 }
 0x18b   : > { %860 = vxpose.xlu2.b32.cont [12/16] %v828_v4, 128  ;;  %764 = vxpose.xlu1.b32.cont [12/16] %v716_v28, 128 }
 0x18c   : > { %732 = vxpose.xlu0.b32.cont [12/16] %v700_v15, 128  ;;  %v649_v21 = vpop.trf.xlu2 }
 0x18d   : > { %v1166_v33 = vmul.f32 %v649_v21, %v3369_v1  ;;  %v1462_v16 = vmul.f32 %v649_v21, %v3441_v49 }
 0x18f   : > { %v616_v57 = vpop.trf.xlu1 }
 0x190   : > { %v1119_v17 = vmul.f32 %v616_v57, %v3434_v44  ;;  %v1415_v45 = vmul.f32 %v616_v57, %v3507_v59  ;;  %v3583_v5 = vpop.trf.xlu0 }
 0x191   : > { %4793 = vst [vmem:[#allocation37_spill] sm:$0xff] %v3583_v5 }
 0x192   : > { %v3588_v18 = vadd.f32 %v1126_v29, %v1119_v17  ;;  %v3590_v40 = vadd.f32 %v1422_v52, %v1415_v45  ;;  %v830_v17 = vld [vmem:[%s3473_s18 + $0x138] sm:$0xff]  ;;  %v718_v52 = vld [vmem:[%s3296_s26 + $0x2c0] sm:$0xff] }
 0x193   : > { %861 = vxpose.xlu2.b32.cont [13/16] %v829_v3, 128  ;;  %765 = vxpose.xlu1.b32.cont [13/16] %v717_v39, 128  ;;  %v702_v45 = vld [vmem:[%s3296_s26 + $0x140] sm:$0xff] }
 0x194   : > { %733 = vxpose.xlu0.b32.cont [13/16] %v701_v30, 128  ;;  %v650_v36 = vpop.trf.xlu2 }
 0x195   : > { %v1168_v4 = vmul.f32 %v650_v36, %v3378_v7  ;;  %v1464_v28 = vmul.f32 %v650_v36, %v3450_v55 }
 0x197   : > { %v1194_v15 = vadd.f32 %v1168_v4, %v1166_v33  ;;  %v1490_v57 = vadd.f32 %v1464_v28, %v1462_v16  ;;  %v617_v5 = vpop.trf.xlu1  ;;  %v831_v4 = vld [vmem:[%s3473_s18 + $0x150] sm:$0xff]  ;;  %v719_v28 = vld [vmem:[%s3296_s26 + $0x2d8] sm:$0xff] }
 0x198   : > { %v3596_v29 = vpop.trf.xlu0  ;;  %v1165_v3 = vmul.f32 %v617_v5, %v3371_v2  ;;  %v1461_v39 = vmul.f32 %v617_v5, %v3443_v50 }
 0x19b   : > { %862 = vxpose.xlu2.b32.cont [14/16] %v830_v17, 128  ;;  %766 = vxpose.xlu1.b32.cont [14/16] %v718_v52, 128  ;;  %v703_v17 = vld [vmem:[%s3296_s26 + $0x158] sm:$0xff] }
 0x19c   : > { %734 = vxpose.xlu0.b32.cont [14/16] %v702_v45, 128  ;;  %v651_v1 = vpop.trf.xlu2 }
 0x19d   : > { %v1170_v49 = vmul.f32 %v651_v1, %v3387_v13  ;;  %v1466_v7 = vmul.f32 %v651_v1, %v3459_v62  ;;  %v832_v1 = vld [vmem:[%s3473_s18 + $0x168] sm:$0xff] }
 0x19f   : > { %v1195_v55 = vadd.f32 %v1194_v15, %v1170_v49  ;;  %v1491_v30 = vadd.f32 %v1490_v57, %v1466_v7  ;;  %v618_v21 = vpop.trf.xlu1  ;;  %v720_v49 = vld [vmem:[%s3296_s26 + $0x2f0] sm:$0xff] }
 0x1a0   : > { %v1167_v36 = vmul.f32 %v618_v21, %v3380_v8  ;;  %v1463_v33 = vmul.f32 %v618_v21, %v3452_v56  ;;  %v3607_v16 = vpop.trf.xlu0  ;;  %v704_v7 = vld [vmem:[%s3296_s26 + $0x170] sm:$0xff] }
 0x1a2   : > { %v1181_v13 = vadd.f32 %v1167_v36, %v1165_v3  ;;  %v1477_v62 = vadd.f32 %v1463_v33, %v1461_v39 }
 0x1a3   : > { %863 = vxpose.xlu2.b32.cont [15/16] %v831_v4, 128  ;;  %767 = vxpose.xlu1.b32.cont [15/16] %v719_v28, 128  ;;  %v961_v4 = vld [vmem:[%s3473_s18 + $0x188] sm:$0xff] }
 0x1a4   : > { %735 = vxpose.xlu0.b32.cont [15/16] %v703_v17, 128  ;;  %v652_v2 = vpop.trf.xlu2  ;;  %v945_v28 = vld [vmem:[%s3473_s18 + $0x8] sm:$0xff]  ;;  %v833_v17 = vld [vmem:[%s3473_s18 + $0x180] sm:$0xff] }
 0x1a5   : > { %v1172_v50 = vmul.f32 %v652_v2, %v3396_v19  ;;  %v1468_v8 = vmul.f32 %v652_v2, %v3468_v10 }
 0x1a7   : > { %v1196_v5 = vadd.f32 %v1195_v55, %v1172_v50  ;;  %v1492_v56 = vadd.f32 %v1491_v30, %v1468_v8  ;;  %v619_v15 = vpop.trf.xlu1 }
 0x1a8   : > { %v1169_v57 = vmul.f32 %v619_v15, %v3389_v14  ;;  %v1465_v52 = vmul.f32 %v619_v15, %v3461_v63  ;;  %v3616_v45 = vpop.trf.xlu0  ;;  %v962_v15 = vld [vmem:[%s3473_s18 + $0x1a0] sm:$0xff] }
 0x1aa   : > { %v1182_v21 = vadd.f32 %v1181_v13, %v1169_v57  ;;  %v1478_v3 = vadd.f32 %v1477_v62, %v1465_v52  ;;  %v946_v57 = vld [vmem:[%s3473_s18 + $0x20] sm:$0xff]  ;;  %v834_v52 = vld [vmem:[%s3473_s18 + $0x198] sm:$0xff] }
 0x1ab   : > { %864 = vxpose.xlu2.b32.end [16/16] %v832_v1, 128  ;;  %768 = vxpose.xlu1.b32.end [16/16] %v720_v49, 128 }
 0x1ac   : > { %736 = vxpose.xlu0.b32.end [16/16] %v704_v7, 128  ;;  %v653_v19 = vpop.trf.xlu2 }
 0x1ad   : > { %v1174_v10 = vmul.f32 %v653_v19, %v3405_v25  ;;  %v1470_v14 = vmul.f32 %v653_v19, %v3480_v22 }
 0x1af   : > { %v1197_v55 = vadd.f32 %v1196_v5, %v1174_v10  ;;  %v1493_v63 = vadd.f32 %v1492_v56, %v1470_v14  ;;  %v620_v30 = vpop.trf.xlu1  ;;  %v963_v10 = vld [vmem:[%s3473_s18 + $0x1b8] sm:$0xff] }
 0x1b0   : > { %v1171_v39 = vmul.f32 %v620_v30, %v3398_v20  ;;  %v1467_v36 = vmul.f32 %v620_v30, %v3470_v11  ;;  %v3625_v33 = vpop.trf.xlu0  ;;  %v947_v14 = vld [vmem:[%s3473_s18 + $0x38] sm:$0xff]  ;;  %v835_v30 = vld [vmem:[%s3473_s18 + $0x1b0] sm:$0xff] }
 0x1b2   : > { %v1183_v13 = vadd.f32 %v1182_v21, %v1171_v39  ;;  %v1479_v62 = vadd.f32 %v1478_v3, %v1467_v36 }
 0x1b3   : > { %1009 = vxpose.xlu2.b32.start [1/16] %v961_v4, 128  ;;  %977 = vxpose.xlu1.b32.start [1/16] %v945_v28, 128 }
 0x1b4   : > { %881 = vxpose.xlu0.b32.start [1/16] %v833_v17, 128  ;;  %v654_v25 = vpop.trf.xlu2 }
 0x1b5   : > { %v1176_v22 = vmul.f32 %v654_v25, %v3414_v31  ;;  %v1472_v20 = vmul.f32 %v654_v25, %v3489_v34  ;;  %v1141_v31 = vrot.slane %v3570_v27, 4  ;;  %v1437_v34 = vrot.slane %v3572_v53, 4 }
 0x1b7   : > { %v1198_v2 = vadd.f32 %v1197_v55, %v1176_v22  ;;  %v1494_v11 = vadd.f32 %v1493_v63, %v1472_v20  ;;  %v621_v50 = vpop.trf.xlu1  ;;  %v1438_v21 = vadd.f32 %v1437_v34, %v3572_v53  ;;  %v964_v20 = vld [vmem:[%s3473_s18 + $0x1d0] sm:$0xff] }
 0x1b8   : > { %v1173_v8 = vmul.f32 %v621_v50, %v3407_v26  ;;  %v1469_v5 = vmul.f32 %v621_v50, %v3482_v23  ;;  %v3634_v56 = vpop.trf.xlu0  ;;  %v1142_v23 = vadd.f32 %v1141_v31, %v3570_v27  ;;  %v948_v50 = vld [vmem:[%s3473_s18 + $0x50] sm:$0xff] }
 0x1b9   : > { %v1439_v27 = vrot.slane %v1438_v21, 2 }
 0x1ba   : > { %v1184_v1 = vadd.f32 %v1183_v13, %v1173_v8  ;;  %v1480_v49 = vadd.f32 %v1479_v62, %v1469_v5  ;;  %v1143_v36 = vrot.slane %v1142_v23, 2 }
 0x1bb   : > { %1010 = vxpose.xlu2.b32.cont [2/16] %v962_v15, 128  ;;  %978 = vxpose.xlu1.b32.cont [2/16] %v946_v57, 128  ;;  %v1440_v5 = vadd.f32 %v1439_v27, %v1438_v21  ;;  %v965_v27 = vld [vmem:[%s3473_s18 + $0x1e8] sm:$0xff] }
 0x1bc   : > { %882 = vxpose.xlu0.b32.cont [2/16] %v834_v52, 128  ;;  %v655_v26 = vpop.trf.xlu2  ;;  %v1144_v8 = vadd.f32 %v1143_v36, %v1142_v23 }
 0x1bd   : > { %v1178_v55 = vmul.f32 %v655_v26, %v3423_v37  ;;  %v1474_v63 = vmul.f32 %v655_v26, %v3498_v46  ;;  %v1128_v37 = vrot.slane %v3588_v18, 4  ;;  %v1424_v46 = vrot.slane %v3590_v40, 4 }
 0x1be   : > { %v1145_v23 = vrot.slane %v1144_v8, 1  ;;  %v1441_v21 = vrot.slane %v1440_v5, 1 }
 0x1bf   : > { %v622_v7 = vpop.trf.xlu1  ;;  %v1199_v4 = vadd.f32 %v1198_v2, %v1178_v55  ;;  %v1425_v57 = vadd.f32 %v1424_v46, %v3590_v40 }
 0x1c0   : > { %v1471_v3 = vmul.f32 %v622_v7, %v3491_v35  ;;  %v3644_v19 = vpop.trf.xlu0  ;;  %v1495_v35 = vadd.f32 %v1494_v11, %v1474_v63  ;;  %v836_v11 = vld [vmem:[%s3473_s18 + $0x1c8] sm:$0xff] }
 0x1c1   : > { %v1426_v40 = vrot.slane %v1425_v57, 2 }
 0x1c2   : > { %v1481_v39 = vadd.f32 %v1480_v49, %v1471_v3 }
 0x1c3   : > { %1011 = vxpose.xlu2.b32.cont [3/16] %v963_v10, 128  ;;  %979 = vxpose.xlu1.b32.cont [3/16] %v947_v14, 128 }
 0x1c4   : > { %883 = vxpose.xlu0.b32.cont [3/16] %v835_v30, 128  ;;  %v656_v53 = vpop.trf.xlu2 }
 0x1c5   : > { %v1180_v28 = vmul.f32 %v656_v53, %v3432_v43  ;;  %v1476_v17 = vmul.f32 %v656_v53, %v3505_v58  ;;  %v1129_v43 = vadd.f32 %v1128_v37, %v3588_v18  ;;  %v1175_v58 = vmul.f32 %v622_v7, %v3416_v32  ;;  %v949_v53 = vld [vmem:[%s3473_s18 + $0x68] sm:$0xff] }
 0x1c7   : > { %v1200_v13 = vadd.f32 %v1199_v4, %v1180_v28  ;;  %v1496_v62 = vadd.f32 %v1495_v35, %v1476_v17  ;;  %v623_v25 = vpop.trf.xlu1  ;;  %v1130_v32 = vrot.slane %v1129_v43, 2  ;;  %v1185_v7 = vadd.f32 %v1184_v1, %v1175_v58  ;;  %v837_v1 = vld [vmem:[%s3473_s18 + $0x1e0] sm:$0xff] }
 0x1c8   : > { %v3655_v22 = vpop.trf.xlu0  ;;  %v1177_v31 = vmul.f32 %v623_v25, %v3425_v38  ;;  %v1473_v34 = vmul.f32 %v623_v25, %v3500_v47  ;;  %v1146_v4 = vadd.f32 %v1145_v23, %v1144_v8  ;;  %v1442_v35 = vadd.f32 %v1441_v21, %v1440_v5  ;;  %v966_v21 = vld [vmem:[%s3473_s18 + $0x200] sm:$0xff] }
 0x1c9   : > { %4794 = vst [vmem:[#allocation38_spill] sm:$0xff] %v3655_v22  ;;  %v1201_v2 = vrot.slane %v1200_v13, 4  ;;  %v1497_v15 = vrot.slane %v1496_v62, 4  ;;  %v1131_v37 = vadd.f32 %v1130_v32, %v1129_v43 }
 0x1ca   : > { %v1186_v63 = vadd.f32 %v1185_v7, %v1177_v31  ;;  %v1482_v38 = vadd.f32 %v1481_v39, %v1473_v34  ;;  %v3678_v8 = vmul.f32 0.125, %v1442_v35  ;;  %v842_v7 = vld [vmem:[%s3473_s18 + $0x258] sm:$0xff] }
 0x1cb   : > { %v1202_v52 = vadd.f32 %v1201_v2, %v1200_v13  ;;  %v1498_v49 = vadd.f32 %v1497_v15, %v1496_v62  ;;  %1012 = vxpose.xlu2.b32.cont [4/16] %v964_v20, 128  ;;  %980 = vxpose.xlu1.b32.cont [4/16] %v948_v50, 128  ;;  %v1427_v62 = vadd.f32 %v1426_v40, %v1425_v57  ;;  %v3676_v50 = vmul.f32 0.125, %v1146_v4 }
 0x1cc   : > { %884 = vxpose.xlu0.b32.cont [4/16] %v836_v11, 128  ;;  %v3665_v26 = vpop.trf.xlu2  ;;  %4796 = vst [vmem:[#allocation40_spill] sm:$0xff] %v3678_v8  ;;  %v1132_v43 = vrot.slane %v1131_v37, 1 }
 0x1cd   : > { %v1203_v18 = vrot.slane %v1202_v52, 2  ;;  %v1499_v3 = vrot.slane %v1498_v49, 2  ;;  %4795 = vst [vmem:[#allocation39_spill] sm:$0xff] %v3676_v50  ;;  %v1428_v58 = vrot.slane %v1427_v62, 1 }
 0x1cf   : > { %v1204_v10 = vadd.f32 %v1203_v18, %v1202_v52  ;;  %v1500_v14 = vadd.f32 %v1499_v3, %v1498_v49  ;;  %v624_v55 = vpop.trf.xlu1  ;;  %v950_v18 = vld [vmem:[%s3473_s18 + $0x80] sm:$0xff] }
 0x1d0   : > { %v1179_v47 = vmul.f32 %v624_v55, %v3434_v44  ;;  %v1475_v30 = vmul.f32 %v624_v55, %v3507_v59  ;;  %v3669_v36 = vpop.trf.xlu0 }
 0x1d1   : > { %v1205_v28 = vrot.slane %v1204_v10, 1  ;;  %v1501_v17 = vrot.slane %v1500_v14, 1 }
 0x1d2   : > { %v1187_v46 = vadd.f32 %v1186_v63, %v1179_v47  ;;  %v1483_v13 = vadd.f32 %v1482_v38, %v1475_v30  ;;  %v1133_v63 = vadd.f32 %v1132_v43, %v1131_v37  ;;  %v1429_v38 = vadd.f32 %v1428_v58, %v1427_v62 }
 0x1d3   : > { %v1206_v25 = vadd.f32 %v1205_v28, %v1204_v10  ;;  %v1502_v20 = vadd.f32 %v1501_v17, %v1500_v14  ;;  %1013 = vxpose.xlu2.b32.cont [5/16] %v965_v27, 128  ;;  %981 = vxpose.xlu1.b32.cont [5/16] %v949_v53, 128  ;;  %v838_v10 = vld [vmem:[%s3473_s18 + $0x1f8] sm:$0xff] }
 0x1d4   : > { %v1188_v44 = vrot.slane %v1187_v46, 4  ;;  %v1484_v39 = vrot.slane %v1483_v13, 4  ;;  %885 = vxpose.xlu0.b32.cont [5/16] %v837_v1, 128  ;;  %v3674_v59 = vpop.trf.xlu2  ;;  %v1147_v35 = vmul.f32 0.125, %v1133_v63  ;;  %v1443_v28 = vmul.f32 0.125, %v1429_v38 }
 0x1d5   : > { %v3680_v5 = vmul.f32 0.125, %v1206_v25  ;;  %v3682_v2 = vmul.f32 0.125, %v1502_v20 }
 0x1d6   : > { %v1189_v15 = vadd.f32 %v1188_v44, %v1187_v46  ;;  %v1485_v11 = vadd.f32 %v1484_v39, %v1483_v13  ;;  %v967_v44 = vld [vmem:[%s3473_s18 + $0x218] sm:$0xff] }
 0x1d7   : > { %4797 = vst [vmem:[#allocation41_spill] sm:$0xff] %v3680_v5  ;;  %v3686_v57 = vmax.f32 %v3676_v50, %v3680_v5  ;;  %v3690_v52 = vmax.f32 %v3678_v8, %v3682_v2  ;;  %v769_v49 = vpop.trf.xlu1  ;;  %v951_v39 = vld [vmem:[%s3473_s18 + $0x98] sm:$0xff] }
 0x1d8   : > { %4798 = vst [vmem:[#allocation42_spill] sm:$0xff] %v3682_v2  ;;  %v1190_v31 = vrot.slane %v1189_v15, 2  ;;  %v1486_v34 = vrot.slane %v1485_v11, 2  ;;  %v737_v23 = vpop.trf.xlu0  ;;  %v1698_v17 = vmul.f32 %v769_v49, %v3516_v41  ;;  %v1994_v1 = vmul.f32 %v769_v49, %v3596_v29 }
 0x1d9   : > { %4799 = vst [vmem:[#allocation43_spill] sm:$0xff] %v3686_v57  ;;  %v1697_v62 = vmul.f32 %v737_v23, %v3362_v60  ;;  %v843_v57 = vld [vmem:[%s3473_s18 + $0x270] sm:$0xff] }
 0x1da   : > { %4800 = vst [vmem:[#allocation44_spill] sm:$0xff] %v3690_v52  ;;  %v1191_v14 = vadd.f32 %v1190_v31, %v1189_v15  ;;  %v1487_v55 = vadd.f32 %v1486_v34, %v1485_v11  ;;  %v1993_v15 = vmul.f32 %v737_v23, %v3430_v42  ;;  %v839_v31 = vld [vmem:[%s3473_s18 + $0x210] sm:$0xff] }
 0x1db   : > { %1014 = vxpose.xlu2.b32.cont [6/16] %v966_v21, 128  ;;  %982 = vxpose.xlu1.b32.cont [6/16] %v950_v18, 128 }
 0x1dc   : > { %v1192_v47 = vrot.slane %v1191_v14, 1  ;;  %v1488_v30 = vrot.slane %v1487_v55, 1  ;;  %886 = vxpose.xlu0.b32.cont [6/16] %v838_v10, 128  ;;  %v3703_v27 = vpop.trf.xlu2 }
 0x1de   : > { %v1193_v53 = vadd.f32 %v1192_v47, %v1191_v14  ;;  %v1489_v4 = vadd.f32 %v1488_v30, %v1487_v55 }
 0x1df   : > { %v770_v37 = vpop.trf.xlu1 }
 0x1e0   : > { %v1207_v46 = vmul.f32 0.125, %v1193_v53  ;;  %v1503_v13 = vmul.f32 0.125, %v1489_v4  ;;  %v1700_v25 = vmul.f32 %v770_v37, %v3527_v51  ;;  %v738_v20 = vpop.trf.xlu0  ;;  %v1996_v11 = vmul.f32 %v770_v37, %v3607_v16 }
 0x1e1   : > { %v1699_v43 = vmul.f32 %v738_v20, %v3367_v0  ;;  %v1995_v58 = vmul.f32 %v738_v20, %v3439_v48 }
 0x1e2   : > { %v1209_v49 = vmax.f32 %v1147_v35, %v1207_v46  ;;  %v1505_v34 = vmax.f32 %v1443_v28, %v1503_v13  ;;  %v1726_v21 = vadd.f32 %v1700_v25, %v1698_v17  ;;  %v2022_v18 = vadd.f32 %v1996_v11, %v1994_v1  ;;  %v968_v25 = vld [vmem:[%s3473_s18 + $0x230] sm:$0xff] }
 0x1e3   : > { %v1713_v10 = vadd.f32 %v1699_v43, %v1697_v62  ;;  %v2009_v14 = vadd.f32 %v1995_v58, %v1993_v15  ;;  %1015 = vxpose.xlu2.b32.cont [7/16] %v967_v44, 128  ;;  %983 = vxpose.xlu1.b32.cont [7/16] %v951_v39, 128 }
 0x1e4   : > { %v1211_v55 = vsub.f32 %v1147_v35, %v1209_v49  ;;  %v1217_v63 = vsub.f32 %v1207_v46, %v1209_v49  ;;  %v1507_v23 = vsub.f32 %v1443_v28, %v1505_v34  ;;  %v1513_v38 = vsub.f32 %v1503_v13, %v1505_v34  ;;  %887 = vxpose.xlu0.b32.cont [7/16] %v839_v31, 128  ;;  %v868_v47 = vpop.trf.xlu2  ;;  %v952_v35 = vld [vmem:[%s3473_s18 + $0xb0] sm:$0xff]  ;;  %v840_v13 = vld [vmem:[%s3473_s18 + $0x228] sm:$0xff] }
 0x1e6   : > { %v1213_v30 = vmul.f32 1.442695, %v1211_v55  ;;  %v1219_v53 = vmul.f32 1.442695, %v1217_v63  ;;  %v1509_v4 = vmul.f32 1.442695, %v1507_v23 }
 0x1e7   : > { %v1515_v37 = vmul.f32 1.442695, %v1513_v38  ;;  %v771_v20 = vpop.trf.xlu1  ;;  %v969_v38 = vld [vmem:[%s3473_s18 + $0x248] sm:$0xff] }
 0x1e8   : > { %2924 = vpow2.f32 %v1213_v30  ;;  %v1702_v17 = vmul.f32 %v771_v20, %v3536_v24  ;;  %v1998_v1 = vmul.f32 %v771_v20, %v3616_v45  ;;  %v739_v62 = vpop.trf.xlu0  ;;  %v953_v30 = vld [vmem:[%s3473_s18 + $0xc8] sm:$0xff] }
 0x1e9   : > { %2926 = vpow2.f32 %v1219_v53  ;;  %v1701_v28 = vmul.f32 %v739_v62, %v3376_v6  ;;  %v1997_v46 = vmul.f32 %v739_v62, %v3448_v54 }
 0x1ea   : > { %2928 = vpow2.f32 %v1509_v4  ;;  %v1727_v44 = vadd.f32 %v1726_v21, %v1702_v17  ;;  %v2023_v39 = vadd.f32 %v2022_v18, %v1998_v1 }
 0x1eb   : > { %2930 = vpow2.f32 %v1515_v37  ;;  %v1714_v15 = vadd.f32 %v1713_v10, %v1701_v28  ;;  %v2010_v11 = vadd.f32 %v2009_v14, %v1997_v46  ;;  %1016 = vxpose.xlu2.b32.cont [8/16] %v968_v25, 128  ;;  %984 = vxpose.xlu1.b32.cont [8/16] %v952_v35, 128  ;;  %v841_v25 = vld [vmem:[%s3473_s18 + $0x240] sm:$0xff] }
 0x1ec   : > { %888 = vxpose.xlu0.b32.cont [8/16] %v840_v13, 128  ;;  %v869_v43 = vpop.trf.xlu2 }
 0x1ee   : > { %v3723_v58 = vpop.eup %2924 }
 0x1ef   : > { %v3725_v31 = vpop.eup %2926  ;;  %v3729_v49 = vmul.f32 %v3723_v58, %v3674_v59  ;;  %v3733_v34 = vmul.f32 %v3723_v58, %v3703_v27  ;;  %v3736_v21 = vmul.f32 %v3723_v58, %v868_v47  ;;  %v3739_v18 = vmul.f32 %v3723_v58, %v869_v43  ;;  %v772_v10 = vpop.trf.xlu1 }
 0x1f0   : > { %v3741_v14 = vpop.eup %2928  ;;  %v1704_v55 = vmul.f32 %v772_v10, %v3545_v9  ;;  %v2000_v63 = vmul.f32 %v772_v10, %v3625_v33  ;;  %v740_v23 = vpop.trf.xlu0  ;;  %v3749_v53 = vmul.f32 %v3723_v58, %v3665_v26  ;;  %v1223_v4 = vadd.f32 %v3725_v31, %v3723_v58 }
 0x1f1   : > { %v3753_v37 = vpop.eup %2930  ;;  %v3757_v20 = vmul.f32 %v3741_v14, %v3674_v59  ;;  %v3761_v17 = vmul.f32 %v3741_v14, %v3703_v27  ;;  %v3764_v1 = vmul.f32 %v3741_v14, %v868_v47  ;;  %v3767_v62 = vmul.f32 %v3741_v14, %v869_v43 }
 0x1f2   : > { %v1728_v35 = vadd.f32 %v1727_v44, %v1704_v55  ;;  %v2024_v28 = vadd.f32 %v2023_v39, %v2000_v63  ;;  %v1703_v46 = vmul.f32 %v740_v23, %v3385_v12  ;;  %v1999_v13 = vmul.f32 %v740_v23, %v3457_v61  ;;  %v4801_v23 = vld [vmem:[#allocation34_spill] sm:$0xff] }
 0x1f3   : > { %1017 = vxpose.xlu2.b32.cont [9/16] %v969_v38, 128  ;;  %985 = vxpose.xlu1.b32.cont [9/16] %v953_v30, 128  ;;  %v3774_v59 = vmul.f32 %v3741_v14, %v3665_v26  ;;  %v3776_v27 = vmul.f32 3.0, %v1223_v4  ;;  %v1519_v47 = vadd.f32 %v3753_v37, %v3741_v14  ;;  %v970_v4 = vld [vmem:[%s3473_s18 + $0x260] sm:$0xff] }
 0x1f4   : > { %v1715_v43 = vadd.f32 %v1714_v15, %v1703_v46  ;;  %v2011_v44 = vadd.f32 %v2010_v11, %v1999_v13  ;;  %889 = vxpose.xlu0.b32.cont [9/16] %v841_v25, 128  ;;  %v870_v39 = vpop.trf.xlu2  ;;  %v954_v11 = vld [vmem:[%s3473_s18 + $0xe0] sm:$0xff] }
 0x1f5   : > { %v3781_v10 = vmul.f32 %v3723_v58, %v870_v39  ;;  %v3784_v55 = vmul.f32 %v3741_v14, %v870_v39  ;;  %2932 = vrcp.f32 %v3776_v27  ;;  %v3787_v63 = vmul.f32 3.0, %v1519_v47  ;;  %v4802_v25 = vld [vmem:[#allocation26_spill] sm:$0xff] }
 0x1f6   : > { %v4803_v13 = vld [vmem:[#allocation30_spill] sm:$0xff]  ;;  %vm1232_vm0 = vweird.f32 %v3776_v27 }
 0x1f7   : > { %v773_v26 = vpop.trf.xlu1  ;;  %2934 = vrcp.f32 %v3787_v63  ;;  %vm1528_vm4 = vweird.f32 %v3787_v63 }
 0x1f8   : > { %v1706_v38 = vmul.f32 %v773_v26, %v4801_v23  ;;  %v2002_v30 = vmul.f32 %v773_v26, %v3634_v56  ;;  %v741_v15 = vpop.trf.xlu0 }
 0x1f9   : > { %v1705_v46 = vmul.f32 %v741_v15, %v4802_v25  ;;  %v2001_v40 = vmul.f32 %v741_v15, %v4803_v13 }
 0x1fa   : > { %v1729_v39 = vadd.f32 %v1728_v35, %v1706_v38  ;;  %v2025_v32 = vadd.f32 %v2024_v28, %v2002_v30  ;;  %v4804_v30 = vld [vmem:[#allocation35_spill] sm:$0xff] }
 0x1fb   : > { %v3797_v3 = vpop.eup %2932  ;;  %v1716_v47 = vadd.f32 %v1715_v43, %v1705_v46  ;;  %v2012_v2 = vadd.f32 %v2011_v44, %v2001_v40  ;;  %1018 = vxpose.xlu2.b32.cont [10/16] %v970_v4, 128  ;;  %986 = vxpose.xlu1.b32.cont [10/16] %v954_v11, 128  ;;  %v971_v4 = vld [vmem:[%s3473_s18 + $0x278] sm:$0xff]  ;;  %v4805_v46 = vld [vmem:[#allocation27_spill] sm:$0xff] }
 0x1fc   : > { %890 = vxpose.xlu0.b32.cont [10/16] %v842_v7, 128  ;;  %v871_v26 = vpop.trf.xlu2  ;;  %v1228_v35 = vmul.f32 %v3797_v3, %v3776_v27  ;;  %v955_v7 = vld [vmem:[%s3473_s18 + $0xf8] sm:$0xff]  ;;  %vm1233_vm1 = vweird.f32 %v3797_v3 }
 0x1fd   : > { %v3800_v52 = vmul.f32 %v3723_v58, %v871_v26  ;;  %v3803_v15 = vmul.f32 %v3741_v14, %v871_v26  ;;  %v3807_v28 = vpop.eup %2934  ;;  %v4806_v26 = vld [vmem:[#allocation31_spill] sm:$0xff]  ;;  %vm3845_vm3 = vmor %vm1232_vm0, %vm1233_vm1 }
 0x1fe   : > { %v1524_v11 = vmul.f32 %v3807_v28, %v3787_v63  ;;  %v1229_v50 = vsub.f32 1.0, %v1228_v35  ;;  %vm1529_vm2 = vweird.f32 %v3807_v28 }
 0x1ff   : > { %v774_v38 = vpop.trf.xlu1  ;;  %vm3853_vm5 = vmor %vm1528_vm4, %vm1529_vm2 }
 0x200   : > { %v1708_v43 = vmul.f32 %v774_v38, %v4804_v30  ;;  %v2004_v40 = vmul.f32 %v774_v38, %v3644_v19  ;;  %v742_v44 = vpop.trf.xlu0  ;;  %v1525_v6 = vsub.f32 1.0, %v1524_v11  ;;  %v1230_v35 = vmul.f32 %v3797_v3, %v1229_v50 }
 0x201   : > { %v1707_v8 = vmul.f32 %v742_v44, %v4805_v46  ;;  %v2003_v5 = vmul.f32 %v742_v44, %v4806_v26  ;;  %v844_v44 = vld [vmem:[%s3473_s18 + $0x288] sm:$0xff] }
 0x202   : > { %v1730_v25 = vadd.f32 %v1729_v39, %v1708_v43  ;;  %v2026_v12 = vadd.f32 %v2025_v32, %v2004_v40  ;;  %v1526_v32 = vmul.f32 %v3807_v28, %v1525_v6  ;;  %v956_v43 = vld [vmem:[%s3473_s18 + $0x110] sm:$0xff] }
 0x203   : > { %v1717_v60 = vadd.f32 %v1716_v47, %v1707_v8  ;;  %v2013_v30 = vadd.f32 %v2012_v2, %v2003_v5  ;;  %1019 = vxpose.xlu2.b32.cont [11/16] %v971_v4, 128  ;;  %987 = vxpose.xlu1.b32.cont [11/16] %v955_v7, 128  ;;  %v1236_v8 = vand.u32 2147483647, %v3776_v27  ;;  %v4808_v5 = vld [vmem:[#allocation36_spill] sm:$0xff]  ;;  %v1231_v4 = vadd.f32 %v3797_v3, %v1230_v35 }
 0x204   : > { %891 = vxpose.xlu0.b32.cont [11/16] %v843_v57, 128  ;;  %v872_v38 = vpop.trf.xlu2  ;;  %v4810_v40 = vld [vmem:[#allocation32_spill] sm:$0xff]  ;;  %v1527_v7 = vadd.f32 %v3807_v28, %v1526_v32 }
 0x205   : > { %v3819_v0 = vmul.f32 %v3723_v58, %v872_v38  ;;  %v3822_v46 = vmul.f32 %v3741_v14, %v872_v38  ;;  %v972_v58 = vld [vmem:[%s3473_s18 + $0x290] sm:$0xff]  ;;  %v1235_v35 = vsel %vm3845_vm3, %v3797_v3, %v1231_v4  ;;  %vm1237_vm6 = vcmp.eq.f32.partialorder %v1236_v8, 8.507059e+37  ;;  %v973_v3 = vld [vmem:[%s3473_s18 + $0x2a8] sm:$0xff] }
 0x206   : > { %v4809_v14 = vld [vmem:[#allocation28_spill] sm:$0xff]  ;;  %v957_v4 = vld [vmem:[%s3473_s18 + $0x128] sm:$0xff] }
 0x207   : > { %4807 = vst [vmem:[#allocation34_spill] sm:$0xff] %v3822_v46  ;;  %v775_v39 = vpop.trf.xlu1 }
 0x208   : > { %v1710_v2 = vmul.f32 %v775_v39, %v4808_v5  ;;  %v2006_v57 = vmul.f32 %v775_v39, %v3655_v22  ;;  %v743_v47 = vpop.trf.xlu0  ;;  %v1238_v39 = vand.u32 2147483648, %v3776_v27  ;;  %v1534_v5 = vand.u32 2147483648, %v3787_v63 }
 0x209   : > { %v1709_v50 = vmul.f32 %v743_v47, %v4809_v14  ;;  %v2005_v6 = vmul.f32 %v743_v47, %v4810_v40 }
 0x20a   : > { %v1731_v11 = vadd.f32 %v1730_v25, %v1710_v2  ;;  %v2027_v38 = vadd.f32 %v2026_v12, %v2006_v57  ;;  %v1532_v12 = vand.u32 2147483647, %v3787_v63  ;;  %v1531_v63 = vsel %vm3853_vm5, %v3807_v28, %v1527_v7  ;;  %v4816_v7 = vld [vmem:[#allocation29_spill] sm:$0xff] }
 0x20b   : > { %v1718_v22 = vadd.f32 %v1717_v60, %v1709_v50  ;;  %v2014_v46 = vadd.f32 %v2013_v30, %v2005_v6  ;;  %1020 = vxpose.xlu2.b32.cont [12/16] %v972_v58, 128  ;;  %988 = vxpose.xlu1.b32.cont [12/16] %v956_v43, 128  ;;  %v1239_v32 = vor.u32 1.1754944e-38, %v1238_v39  ;;  %v1535_v2 = vor.u32 1.1754944e-38, %v1534_v5  ;;  %v4815_v50 = vld [vmem:[#allocation37_spill] sm:$0xff]  ;;  %v845_v60 = vld [vmem:[%s3473_s18 + $0x2a0] sm:$0xff] }
 0x20c   : > { %892 = vxpose.xlu0.b32.cont [12/16] %v844_v44, 128  ;;  %v873_v25 = vpop.trf.xlu2  ;;  %vm1533_vm7 = vcmp.eq.f32.partialorder %v1532_v12, 8.507059e+37  ;;  %v4817_v39 = vld [vmem:[#allocation33_spill] sm:$0xff] }
 0x20d   : > { %v1305_v27 = vmul.f32 %v3725_v31, %v873_v25  ;;  %v1601_v30 = vmul.f32 %v3753_v37, %v873_v25  ;;  %v3871_v25 = vsel %vm1237_vm6, %v1239_v32, %v1235_v35  ;;  %v3873_v28 = vsel %vm1533_vm7, %v1535_v2, %v1531_v63 }
 0x20f   : > { %v1321_v57 = vadd.f32 %v1305_v27, %v3749_v53  ;;  %v1617_v58 = vadd.f32 %v1601_v30, %v3774_v59  ;;  %v776_v43 = vpop.trf.xlu1 }
 0x210   : > { %v1712_v6 = vmul.f32 %v776_v43, %v4815_v50  ;;  %v2008_v44 = vmul.f32 %v776_v43, %v3669_v36  ;;  %v744_v47 = vpop.trf.xlu0 }
 0x211   : > { %v1711_v5 = vmul.f32 %v744_v47, %v4816_v7  ;;  %v2007_v53 = vmul.f32 %v744_v47, %v4817_v39  ;;  %v3879_v59 = vmul.f32 %v1321_v57, %v3871_v25  ;;  %v3882_v8 = vmul.f32 %v1617_v58, %v3873_v28 }
 0x212   : > { %v3884_v12 = vadd.f32 %v1731_v11, %v1712_v6  ;;  %v3886_v27 = vadd.f32 %v2027_v38, %v2008_v44  ;;  %v974_v38 = vld [vmem:[%s3473_s18 + $0x2c0] sm:$0xff]  ;;  %v846_v6 = vld [vmem:[%s3473_s18 + $0x2b8] sm:$0xff] }
 0x213   : > { %v3888_v30 = vadd.f32 %v1718_v22, %v1711_v5  ;;  %v3890_v35 = vadd.f32 %v2014_v46, %v2007_v53  ;;  %1021 = vxpose.xlu2.b32.cont [13/16] %v973_v3, 128  ;;  %989 = vxpose.xlu1.b32.cont [13/16] %v957_v4, 128  ;;  %v958_v22 = vld [vmem:[%s3473_s18 + $0x140] sm:$0xff] }
 0x214   : > { %893 = vxpose.xlu0.b32.cont [13/16] %v845_v60, 128  ;;  %v874_v63 = vpop.trf.xlu2 }
 0x215   : > { %v1307_v32 = vmul.f32 %v3725_v31, %v874_v63  ;;  %v1603_v2 = vmul.f32 %v3753_v37, %v874_v63 }
 0x217   : > { %v1323_v57 = vadd.f32 %v1307_v32, %v3729_v49  ;;  %v1619_v11 = vadd.f32 %v1603_v2, %v3757_v20  ;;  %v777_v58 = vpop.trf.xlu1 }
 0x218   : > { %v3896_v43 = vpop.trf.xlu0  ;;  %v1758_v53 = vmul.f32 %v777_v58, %v3516_v41  ;;  %v2054_v60 = vmul.f32 %v777_v58, %v3596_v29 }
 0x219   : > { %v3902_v46 = vmul.f32 %v1323_v57, %v3871_v25  ;;  %v3905_v44 = vmul.f32 %v1619_v11, %v3873_v28  ;;  %v975_v57 = vld [vmem:[%s3473_s18 + $0x2d8] sm:$0xff] }
 0x21a   : > { %v959_v11 = vld [vmem:[%s3473_s18 + $0x158] sm:$0xff] }
 0x21b   : > { %1022 = vxpose.xlu2.b32.cont [14/16] %v974_v38, 128  ;;  %990 = vxpose.xlu1.b32.cont [14/16] %v958_v22, 128  ;;  %v2053_v38 = vmul.f32 %v3896_v43, %v3430_v42 }
 0x21c   : > { %894 = vxpose.xlu0.b32.cont [14/16] %v846_v6, 128  ;;  %v875_v49 = vpop.trf.xlu2 }
 0x21d   : > { %v1309_v20 = vmul.f32 %v3725_v31, %v875_v49  ;;  %v1605_v47 = vmul.f32 %v3753_v37, %v875_v49 }
 0x21f   : > { %v1325_v3 = vadd.f32 %v1309_v20, %v3733_v34  ;;  %v1621_v4 = vadd.f32 %v1605_v47, %v3761_v17  ;;  %v778_v5 = vpop.trf.xlu1  ;;  %v847_v17 = vld [vmem:[%s3473_s18 + $0x2d0] sm:$0xff] }
 0x220   : > { %v1760_v63 = vmul.f32 %v778_v5, %v3527_v51  ;;  %v2056_v32 = vmul.f32 %v778_v5, %v3607_v16  ;;  %v3915_v2 = vpop.trf.xlu0  ;;  %v976_v5 = vld [vmem:[%s3473_s18 + $0x2f0] sm:$0xff] }
 0x221   : > { %v2055_v34 = vmul.f32 %v3915_v2, %v3439_v48  ;;  %v3925_v41 = vmul.f32 %v1325_v3, %v3871_v25  ;;  %v3928_v51 = vmul.f32 %v1621_v4, %v3873_v28 }
 0x222   : > { %v1786_v22 = vadd.f32 %v1760_v63, %v1758_v53  ;;  %v2082_v6 = vadd.f32 %v2056_v32, %v2054_v60  ;;  %v960_v53 = vld [vmem:[%s3473_s18 + $0x170] sm:$0xff]  ;;  %v848_v63 = vld [vmem:[%s3473_s18 + $0x2e8] sm:$0xff] }
 0x223   : > { %v2069_v29 = vadd.f32 %v2055_v34, %v2053_v38  ;;  %1023 = vxpose.xlu2.b32.cont [15/16] %v975_v57, 128  ;;  %991 = vxpose.xlu1.b32.cont [15/16] %v959_v11, 128 }
 0x224   : > { %895 = vxpose.xlu0.b32.cont [15/16] %v847_v17, 128  ;;  %v876_v42 = vpop.trf.xlu2 }
 0x225   : > { %v1311_v16 = vmul.f32 %v3725_v31, %v876_v42  ;;  %v1607_v48 = vmul.f32 %v3753_v37, %v876_v42 }
 0x227   : > { %v1327_v58 = vadd.f32 %v1311_v16, %v3736_v21  ;;  %v1623_v49 = vadd.f32 %v1607_v48, %v3764_v1  ;;  %v779_v20 = vpop.trf.xlu1 }
 0x228   : > { %v1762_v47 = vmul.f32 %v779_v20, %v3536_v24  ;;  %v2058_v3 = vmul.f32 %v779_v20, %v3616_v45  ;;  %v747_v4 = vpop.trf.xlu0 }
 0x229   : > { %v2057_v60 = vmul.f32 %v747_v4, %v3448_v54  ;;  %v3941_v32 = vmul.f32 %v1327_v58, %v3871_v25  ;;  %v3944_v57 = vmul.f32 %v1623_v49, %v3873_v28 }
 0x22a   : > { %v1787_v21 = vadd.f32 %v1786_v22, %v1762_v47  ;;  %v2083_v11 = vadd.f32 %v2082_v6, %v2058_v3 }
 0x22b   : > { %v2070_v1 = vadd.f32 %v2069_v29, %v2057_v60  ;;  %1024 = vxpose.xlu2.b32.end [16/16] %v976_v5, 128  ;;  %992 = vxpose.xlu1.b32.end [16/16] %v960_v53, 128 }
 0x22c   : > { %896 = vxpose.xlu0.b32.end [16/16] %v848_v63, 128  ;;  %v877_v24 = vpop.trf.xlu2 }
 0x22d   : > { %v1313_v45 = vmul.f32 %v3725_v31, %v877_v24  ;;  %v1609_v38 = vmul.f32 %v3753_v37, %v877_v24 }
 0x22f   : > { %v1329_v54 = vadd.f32 %v1313_v45, %v3739_v18  ;;  %v1625_v34 = vadd.f32 %v1609_v38, %v3767_v62  ;;  %v780_v17 = vpop.trf.xlu1 }
 0x230   : > { %v1764_v42 = vmul.f32 %v780_v17, %v3545_v9  ;;  %v2060_v16 = vmul.f32 %v780_v17, %v3625_v33  ;;  %v748_v22 = vpop.trf.xlu0 }
 0x231   : > { %v2059_v6 = vmul.f32 %v748_v22, %v3457_v61  ;;  %v3954_v29 = vmul.f32 %v1329_v54, %v3871_v25  ;;  %v3957_v48 = vmul.f32 %v1625_v34, %v3873_v28 }
 0x232   : > { %v1788_v58 = vadd.f32 %v1787_v21, %v1764_v42  ;;  %v2084_v49 = vadd.f32 %v2083_v11, %v2060_v16  ;;  %v4818_v42 = vld [vmem:[#allocation23_spill] sm:$0xff] }
 0x233   : > { %v2071_v20 = vadd.f32 %v2070_v1, %v2059_v6  ;;  %v1759_v16 = vmul.f32 %v3915_v2, %v4818_v42  ;;  %v4826_v42 = vld [vmem:[#allocation27_spill] sm:$0xff] }
 0x234   : > { %2321 = vxpose.xlu0.b32.start [1/16] %v3879_v59, 128  ;;  %v878_v18 = vpop.trf.xlu2 }
 0x235   : > { %v1315_v62 = vmul.f32 %v3725_v31, %v878_v18  ;;  %v1611_v9 = vmul.f32 %v3753_v37, %v878_v18  ;;  %v1733_v18 = vrot.slane %v3884_v12, 4 }
 0x237   : > { %v1331_v33 = vadd.f32 %v1315_v62, %v3781_v10  ;;  %v1627_v61 = vadd.f32 %v1611_v9, %v3784_v55  ;;  %v781_v47 = vpop.trf.xlu1  ;;  %v2029_v62 = vrot.slane %v3886_v27, 4  ;;  %v1720_v9 = vrot.slane %v3888_v30, 4 }
 0x238   : > { %v1766_v3 = vmul.f32 %v781_v47, %v4801_v23  ;;  %v2062_v5 = vmul.f32 %v781_v47, %v3634_v56  ;;  %v749_v53 = vpop.trf.xlu0  ;;  %v4822_v47 = vld [vmem:[#allocation34_spill] sm:$0xff] }
 0x239   : > { %v2061_v60 = vmul.f32 %v749_v53, %v4803_v13  ;;  %v3968_v63 = vmul.f32 %v1331_v33, %v3871_v25  ;;  %v3971_v59 = vmul.f32 %v1627_v61, %v3873_v28  ;;  %v4821_v33 = vld [vmem:[#allocation25_spill] sm:$0xff] }
 0x23a   : > { %v1789_v21 = vadd.f32 %v1788_v58, %v1766_v3  ;;  %v2085_v11 = vadd.f32 %v2084_v49, %v2062_v5  ;;  %v4820_v58 = vld [vmem:[#allocation24_spill] sm:$0xff]  ;;  %v1763_v61 = vmul.f32 %v748_v22, %v4821_v33  ;;  %v4823_v5 = vld [vmem:[#allocation38_spill] sm:$0xff]  ;;  %v1734_v22 = vadd.f32 %v1733_v18, %v3884_v12 }
 0x23b   : > { %v2072_v1 = vadd.f32 %v2071_v20, %v2061_v60  ;;  %v1761_v49 = vmul.f32 %v747_v4, %v4820_v58  ;;  %v2016_v4 = vrot.slane %v3890_v35, 4 }
 0x23c   : > { %2322 = vxpose.xlu0.b32.cont [2/16] %v3902_v46, 128  ;;  %v879_v10 = vpop.trf.xlu2 }
 0x23d   : > { %v1317_v55 = vmul.f32 %v3725_v31, %v879_v10  ;;  %v1613_v23 = vmul.f32 %v3753_v37, %v879_v10 }
 0x23f   : > { %v1333_v56 = vadd.f32 %v1317_v55, %v3800_v52  ;;  %v1629_v13 = vadd.f32 %v1613_v23, %v3803_v15  ;;  %v782_v24 = vpop.trf.xlu1  ;;  %v4819_v15 = vld [vmem:[#allocation22_spill] sm:$0xff] }
 0x240   : > { %v2064_v45 = vmul.f32 %v782_v24, %v3644_v19  ;;  %v750_v38 = vpop.trf.xlu0  ;;  %v1757_v19 = vmul.f32 %v3896_v43, %v4819_v15 }
 0x241   : > { %v2063_v54 = vmul.f32 %v750_v38, %v4806_v26  ;;  %v3981_v34 = vmul.f32 %v1333_v56, %v3871_v25  ;;  %v3984_v46 = vmul.f32 %v1629_v13, %v3873_v28  ;;  %v2030_v13 = vadd.f32 %v2029_v62, %v3886_v27 }
 0x242   : > { %v2086_v17 = vadd.f32 %v2085_v11, %v2064_v45  ;;  %v1773_v2 = vadd.f32 %v1759_v16, %v1757_v19  ;;  %v4824_v11 = vld [vmem:[#allocation26_spill] sm:$0xff]  ;;  %v1721_v45 = vadd.f32 %v1720_v9, %v3888_v30  ;;  %v1767_v16 = vmul.f32 %v750_v38, %v4826_v42 }
 0x243   : > { %v2073_v6 = vadd.f32 %v2072_v1, %v2063_v54  ;;  %v1765_v1 = vmul.f32 %v749_v53, %v4824_v11  ;;  %v2017_v53 = vadd.f32 %v2016_v4, %v3890_v35  ;;  %v1735_v27 = vrot.slane %v1734_v22, 2 }
 0x244   : > { %2323 = vxpose.xlu0.b32.cont [3/16] %v3925_v41, 128  ;;  %v880_v52 = vpop.trf.xlu2  ;;  %v2031_v19 = vrot.slane %v2030_v13, 2  ;;  %v1722_v30 = vrot.slane %v1721_v45, 2 }
 0x245   : > { %v1319_v26 = vmul.f32 %v3725_v31, %v880_v52  ;;  %v1615_v20 = vmul.f32 %v3753_v37, %v880_v52  ;;  %v1774_v37 = vadd.f32 %v1773_v2, %v1761_v49  ;;  %v4827_v52 = vld [vmem:[#allocation36_spill] sm:$0xff]  ;;  %v2018_v38 = vrot.slane %v2017_v53, 2 }
 0x247   : > { %v1335_v41 = vadd.f32 %v1319_v26, %v3819_v0  ;;  %v1631_v3 = vadd.f32 %v1615_v20, %v4822_v47  ;;  %v783_v43 = vpop.trf.xlu1  ;;  %v4825_v0 = vld [vmem:[#allocation35_spill] sm:$0xff]  ;;  %v1775_v54 = vadd.f32 %v1774_v37, %v1763_v61  ;;  %v1736_v61 = vadd.f32 %v1735_v27, %v1734_v22 }
 0x248   : > { %v2066_v31 = vmul.f32 %v783_v43, %v4823_v5  ;;  %v751_v60 = vpop.trf.xlu0  ;;  %v1768_v23 = vmul.f32 %v782_v24, %v4825_v0 }
 0x249   : > { %v4004_v10 = vmul.f32 %v1335_v41, %v3871_v25  ;;  %v4007_v55 = vmul.f32 %v1631_v3, %v3873_v28  ;;  %v1770_v25 = vmul.f32 %v783_v43, %v4827_v52  ;;  %v1776_v15 = vadd.f32 %v1775_v54, %v1765_v1 }
 0x24a   : > { %v2087_v56 = vadd.f32 %v2086_v17, %v2066_v31  ;;  %v1769_v12 = vmul.f32 %v751_v60, %v4809_v14  ;;  %v2065_v24 = vmul.f32 %v751_v60, %v4810_v40  ;;  %v1790_v17 = vadd.f32 %v1789_v21, %v1768_v23 }
 0x24b   : > { %v1777_v58 = vadd.f32 %v1776_v15, %v1767_v16  ;;  %v2032_v41 = vadd.f32 %v2031_v19, %v2030_v13  ;;  %v2019_v43 = vadd.f32 %v2018_v38, %v2017_v53  ;;  %v1737_v37 = vrot.slane %v1736_v61, 1 }
 0x24c   : > { %2324 = vxpose.xlu0.b32.cont [4/16] %v3941_v32, 128  ;;  %v4017_v28 = vpop.trf.xlu2  ;;  %v1791_v26 = vadd.f32 %v1790_v17, %v1770_v25  ;;  %v2074_v62 = vadd.f32 %v2073_v6, %v2065_v24 }
 0x24d   : > { %v1778_v18 = vadd.f32 %v1777_v58, %v1769_v12  ;;  %v2033_v11 = vrot.slane %v2032_v41, 1  ;;  %v1738_v53 = vadd.f32 %v1737_v37, %v1736_v61 }
 0x24f   : > { %v784_v49 = vpop.trf.xlu1  ;;  %v2034_v52 = vadd.f32 %v2033_v11, %v2032_v41 }
 0x250   : > { %v1772_v35 = vmul.f32 %v784_v49, %v4815_v50  ;;  %v2068_v20 = vmul.f32 %v784_v49, %v3669_v36  ;;  %v752_v32 = vpop.trf.xlu0  ;;  %v1723_v36 = vadd.f32 %v1722_v30, %v1721_v45 }
 0x251   : > { %v1771_v9 = vmul.f32 %v752_v32, %v4816_v7  ;;  %v2067_v14 = vmul.f32 %v752_v32, %v4817_v39 }
 0x252   : > { %v1792_v40 = vadd.f32 %v1791_v26, %v1772_v35  ;;  %v2088_v21 = vadd.f32 %v2087_v56, %v2068_v20  ;;  %v1724_v23 = vrot.slane %v1723_v36, 1  ;;  %v1740_v35 = vmul.f32 0.125, %v1738_v53 }
 0x253   : > { %v1779_v2 = vadd.f32 %v1778_v18, %v1771_v9  ;;  %v2075_v33 = vadd.f32 %v2074_v62, %v2067_v14  ;;  %v2036_v20 = vmul.f32 0.125, %v2034_v52 }
 0x254   : > { %v1793_v47 = vrot.slane %v1792_v40, 4  ;;  %v2089_v3 = vrot.slane %v2088_v21, 4  ;;  %2325 = vxpose.xlu0.b32.cont [5/16] %v3954_v29, 128  ;;  %v4026_v50 = vpop.trf.xlu2  ;;  %v2020_v29 = vrot.slane %v2019_v43, 1  ;;  %v1725_v24 = vadd.f32 %v1724_v23, %v1723_v36 }
 0x255   : > { %v1780_v4 = vrot.slane %v1779_v2, 4  ;;  %v2076_v6 = vrot.slane %v2075_v33, 4 }
 0x256   : > { %v1794_v5 = vadd.f32 %v1793_v47, %v1792_v40  ;;  %v2090_v7 = vadd.f32 %v2089_v3, %v2088_v21  ;;  %v2021_v17 = vadd.f32 %v2020_v29, %v2019_v43  ;;  %v1739_v9 = vmul.f32 0.125, %v1725_v24  ;;  %v4828_v21 = vld [vmem:[#allocation39_spill] sm:$0xff]  ;;  %v4831_v3 = vld [vmem:[#allocation41_spill] sm:$0xff] }
 0x257   : > { %v1781_v31 = vadd.f32 %v1780_v4, %v1779_v2  ;;  %v2077_v39 = vadd.f32 %v2076_v6, %v2075_v33  ;;  %v4028_v60 = vpop.trf.xlu1  ;;  %v4829_v2 = vld [vmem:[#allocation43_spill] sm:$0xff] }
 0x258   : > { %v1795_v1 = vrot.slane %v1794_v5, 2  ;;  %v2091_v22 = vrot.slane %v2090_v7, 2  ;;  %v4030_v0 = vpop.trf.xlu0  ;;  %v4830_v33 = vsub.f32 %v4828_v21, %v4829_v2  ;;  %v4832_v36 = vsub.f32 %v4831_v3, %v4829_v2 }
 0x259   : > { %v1782_v56 = vrot.slane %v1781_v31, 2  ;;  %v2078_v13 = vrot.slane %v2077_v39, 2 }
 0x25a   : > { %v1796_v45 = vadd.f32 %v1795_v1, %v1794_v5  ;;  %v2092_v54 = vadd.f32 %v2091_v22, %v2090_v7  ;;  %v1215_v61 = vmul.f32 1.442695, %v4830_v33  ;;  %v1221_v43 = vmul.f32 1.442695, %v4832_v36 }
 0x25b   : > { %v1783_v42 = vadd.f32 %v1782_v56, %v1781_v31  ;;  %v2079_v16 = vadd.f32 %v2078_v13, %v2077_v39 }
 0x25c   : > { %v1797_v25 = vrot.slane %v1796_v45, 1  ;;  %v2093_v15 = vrot.slane %v2092_v54, 1  ;;  %2326 = vxpose.xlu0.b32.cont [6/16] %v3968_v63, 128  ;;  %v4033_v12 = vpop.trf.xlu2  ;;  %v2035_v63 = vmul.f32 0.125, %v2021_v17  ;;  %2936 = vpow2.f32 %v1215_v61 }
 0x25d   : > { %v1784_v27 = vrot.slane %v1783_v42, 1  ;;  %v2080_v19 = vrot.slane %v2079_v16, 1  ;;  %2938 = vpow2.f32 %v1221_v43 }
 0x25e   : > { %v1798_v30 = vadd.f32 %v1797_v25, %v1796_v45  ;;  %v2094_v58 = vadd.f32 %v2093_v15, %v2092_v54 }
 0x25f   : > { %v1785_v49 = vadd.f32 %v1784_v27, %v1783_v42  ;;  %v2081_v38 = vadd.f32 %v2080_v19, %v2079_v16  ;;  %v4035_v26 = vpop.trf.xlu1 }
 0x260   : > { %v1800_v32 = vmul.f32 0.125, %v1798_v30  ;;  %v2096_v18 = vmul.f32 0.125, %v2094_v58  ;;  %v4037_v62 = vpop.trf.xlu0 }
 0x261   : > { %v1799_v14 = vmul.f32 0.125, %v1785_v49  ;;  %v2095_v40 = vmul.f32 0.125, %v2081_v38 }
 0x262   : > { %v1802_v41 = vmax.f32 %v1740_v35, %v1800_v32  ;;  %v2098_v47 = vmax.f32 %v2036_v20, %v2096_v18  ;;  %v4048_v25 = vpop.eup %2936 }
 0x263   : > { %v1801_v4 = vmax.f32 %v1739_v9, %v1799_v14  ;;  %v2097_v6 = vmax.f32 %v2035_v63, %v2095_v40  ;;  %v4051_v24 = vpop.eup %2938 }
 0x264   : > { %v1804_v5 = vsub.f32 %v1740_v35, %v1802_v41  ;;  %v1810_v7 = vsub.f32 %v1800_v32, %v1802_v41  ;;  %v2100_v31 = vsub.f32 %v2036_v20, %v2098_v47  ;;  %v2106_v39 = vsub.f32 %v2096_v18, %v2098_v47  ;;  %2327 = vxpose.xlu0.b32.cont [7/16] %v3981_v34, 128  ;;  %v1028_v37 = vpop.trf.xlu2 }
 0x265   : > { %v1803_v11 = vsub.f32 %v1739_v9, %v1801_v4  ;;  %v1809_v1 = vsub.f32 %v1799_v14, %v1801_v4  ;;  %v2099_v22 = vsub.f32 %v2035_v63, %v2097_v6  ;;  %v2105_v23 = vsub.f32 %v2095_v40, %v2097_v6 }
 0x266   : > { %v1807_v29 = vmul.f32 1.442695, %v1804_v5  ;;  %v1813_v56 = vmul.f32 1.442695, %v1810_v7  ;;  %v2103_v13 = vmul.f32 1.442695, %v2100_v31  ;;  %v1224_v32 = vadd.f32 %v4051_v24, %v4048_v25 }
 0x267   : > { %v2109_v45 = vmul.f32 1.442695, %v2106_v39  ;;  %v995_v54 = vpop.trf.xlu1  ;;  %v1805_v42 = vmul.f32 1.442695, %v1803_v11  ;;  %v1811_v53 = vmul.f32 1.442695, %v1809_v1 }
 0x268   : > { %2940 = vpow2.f32 %v1807_v29  ;;  %v4046_v16 = vpop.trf.xlu0  ;;  %v2101_v34 = vmul.f32 1.442695, %v2099_v22  ;;  %v2107_v52 = vmul.f32 1.442695, %v2105_v23  ;;  %v4126_v43 = vmul.f32 3.0, %v1224_v32 }
 0x269   : > { %2942 = vpow2.f32 %v1813_v56 }
 0x26a   : > { %2944 = vpow2.f32 %v2103_v13  ;;  %vm1247_vm1 = vweird.f32 %v4126_v43 }
 0x26b   : > { %2946 = vpow2.f32 %v2109_v45 }
 0x26c   : > { %2948 = vpow2.f32 %v1805_v42  ;;  %2328 = vxpose.xlu0.b32.cont [8/16] %v4004_v10, 128  ;;  %v1029_v15 = vpop.trf.xlu2 }
 0x26d   : > { %2950 = vpow2.f32 %v1811_v53 }
 0x26e   : > { %v4053_v17 = vpop.eup %2940  ;;  %2952 = vpow2.f32 %v2101_v34 }
 0x26f   : > { %v4055_v27 = vpop.eup %2942  ;;  %2954 = vpow2.f32 %v2107_v52  ;;  %v4059_v19 = vmul.f32 %v4053_v17, %v4026_v50  ;;  %v4063_v30 = vmul.f32 %v4053_v17, %v4033_v12  ;;  %v4066_v10 = vmul.f32 %v4053_v17, %v1028_v37  ;;  %v996_v58 = vpop.trf.xlu1 }
 0x270   : > { %v4068_v49 = vpop.eup %2944  ;;  %v4071_v38 = vmul.f32 %v4053_v17, %v1029_v15  ;;  %v4073_v35 = vpop.trf.xlu0  ;;  %v4077_v20 = vmul.f32 %v4053_v17, %v4017_v28  ;;  %v1816_v18 = vadd.f32 %v4055_v27, %v4053_v17 }
 0x271   : > { %v4083_v9 = vpop.eup %2946  ;;  %v4087_v63 = vmul.f32 %v4068_v49, %v4026_v50  ;;  %v4091_v14 = vmul.f32 %v4068_v49, %v4033_v12  ;;  %v4094_v40 = vmul.f32 %v4068_v49, %v1028_v37  ;;  %v4097_v21 = vmul.f32 %v4068_v49, %v1029_v15 }
 0x272   : > { %v4099_v2 = vpop.eup %2948  ;;  %v4103_v33 = vmul.f32 %v4068_v49, %v4017_v28  ;;  %v4105_v61 = vmul.f32 3.0, %v1816_v18  ;;  %v2112_v11 = vadd.f32 %v4083_v9, %v4068_v49 }
 0x273   : > { %v4107_v50 = vpop.eup %2950  ;;  %v4111_v12 = vmul.f32 %v4099_v2, %v4028_v60  ;;  %v4115_v41 = vmul.f32 %v4099_v2, %v4035_v26  ;;  %v4118_v47 = vmul.f32 %v4099_v2, %v995_v54  ;;  %v4121_v3 = vmul.f32 %v4099_v2, %v996_v58 }
 0x274   : > { %v4123_v28 = vpop.eup %2952  ;;  %2329 = vxpose.xlu0.b32.cont [9/16] %v3882_v8, 128  ;;  %v1030_v36 = vpop.trf.xlu2  ;;  %2956 = vrcp.f32 %v4105_v61  ;;  %v4170_v13 = vmul.f32 3.0, %v2112_v11  ;;  %vm1839_vm9 = vweird.f32 %v4105_v61 }
 0x275   : > { %4833 = vst [vmem:[#allocation30_spill] sm:$0xff] %v4121_v3  ;;  %v4129_v4 = vpop.eup %2954  ;;  %v4133_v6 = vmul.f32 %v4123_v28, %v4028_v60  ;;  %v4137_v5 = vmul.f32 %v4123_v28, %v4035_v26  ;;  %v4140_v7 = vmul.f32 %v4123_v28, %v995_v54  ;;  %v4143_v8 = vmul.f32 %v4123_v28, %v996_v58 }
 0x276   : > { %v4146_v31 = vmul.f32 %v4053_v17, %v1030_v36  ;;  %v4149_v39 = vmul.f32 %v4068_v49, %v1030_v36  ;;  %v1815_v60 = vadd.f32 %v4107_v50, %v4099_v2  ;;  %v2111_v26 = vadd.f32 %v4129_v4, %v4123_v28 }
 0x277   : > { %4834 = vst [vmem:[#allocation31_spill] sm:$0xff] %v4143_v8  ;;  %v997_v37 = vpop.trf.xlu1  ;;  %2958 = vrcp.f32 %v4126_v43  ;;  %vm2135_vm12 = vweird.f32 %v4170_v13 }
 0x278   : > { %4835 = vst [vmem:[#allocation28_spill] sm:$0xff] %v4146_v31  ;;  %v4158_v1 = vmul.f32 %v4099_v2, %v997_v37  ;;  %v4161_v22 = vmul.f32 %v4123_v28, %v997_v37  ;;  %v4163_v23 = vpop.trf.xlu0  ;;  %v4168_v56 = vmul.f32 3.0, %v1815_v60  ;;  %v4174_v54 = vmul.f32 3.0, %v2111_v26 }
 0x279   : > { %4836 = vst [vmem:[#allocation32_spill] sm:$0xff] %v4149_v39  ;;  %2960 = vrcp.f32 %v4170_v13 }
 0x27a   : > { %4837 = vst [vmem:[#allocation37_spill] sm:$0xff] %v4158_v1  ;;  %v4166_v29 = vpop.eup %2956  ;;  %2962 = vrcp.f32 %v4168_v56  ;;  %v4850_v1 = vld [vmem:[#allocation42_spill] sm:$0xff]  ;;  %vm1824_vm6 = vweird.f32 %v4168_v56 }
 0x27b   : > { %4838 = vst [vmem:[#allocation29_spill] sm:$0xff] %v4161_v22  ;;  %v1835_v45 = vmul.f32 %v4166_v29, %v4105_v61  ;;  %2964 = vrcp.f32 %v4174_v54  ;;  %vm1840_vm8 = vweird.f32 %v4166_v29 }
 0x27c   : > { %4839 = vst [vmem:[#allocation33_spill] sm:$0xff] %v4163_v23  ;;  %2330 = vxpose.xlu0.b32.cont [10/16] %v3905_v44, 128  ;;  %v1031_v42 = vpop.trf.xlu2  ;;  %vm4240_vm11 = vmor %vm1839_vm9, %vm1840_vm8  ;;  %vm2120_vm8 = vweird.f32 %v4174_v54 }
 0x27d   : > { %v4178_v53 = vmul.f32 %v4053_v17, %v1031_v42  ;;  %v4181_v34 = vmul.f32 %v4068_v49, %v1031_v42  ;;  %v4184_v52 = vpop.eup %2958  ;;  %v1836_v58 = vsub.f32 1.0, %v1835_v45 }
 0x27e   : > { %v1243_v36 = vmul.f32 %v4184_v52, %v4126_v43  ;;  %vm1248_vm13 = vweird.f32 %v4184_v52 }
 0x27f   : > { %4840 = vst [vmem:[#allocation23_spill] sm:$0xff] %v4178_v53  ;;  %v998_v15 = vpop.trf.xlu1  ;;  %v2961_v60 = vpop.eup %2960  ;;  %v1837_v37 = vmul.f32 %v4166_v29, %v1836_v58  ;;  %vm4292_vm3 = vmor %vm1247_vm1, %vm1248_vm13 }
 0x280   : > { %4841 = vst [vmem:[#allocation22_spill] sm:$0xff] %v4181_v34  ;;  %v4189_v32 = vmul.f32 %v4099_v2, %v998_v15  ;;  %v4192_v44 = vmul.f32 %v4123_v28, %v998_v15  ;;  %v4194_v18 = vpop.trf.xlu0  ;;  %v4199_v26 = vpop.eup %2962  ;;  %v2131_v45 = vmul.f32 %v2961_v60, %v4170_v13  ;;  %v4848_v34 = vld [vmem:[#allocation44_spill] sm:$0xff]  ;;  %vm2136_vm10 = vweird.f32 %v2961_v60 }
 0x281   : > { %4844 = vst [vmem:[#allocation34_spill] sm:$0xff] %v4194_v18  ;;  %v4203_v42 = vpop.eup %2964  ;;  %v4847_v18 = vld [vmem:[#allocation40_spill] sm:$0xff]  ;;  %v1820_v31 = vmul.f32 %v4199_v26, %v4168_v56  ;;  %vm4252_vm14 = vmor %vm2135_vm12, %vm2136_vm10  ;;  %vm1825_vm2 = vweird.f32 %v4199_v26 }
 0x282   : > { %4842 = vst [vmem:[#allocation24_spill] sm:$0xff] %v4189_v32  ;;  %v1244_v32 = vsub.f32 1.0, %v1243_v36  ;;  %v4849_v53 = vsub.f32 %v4847_v18, %v4848_v34  ;;  %v2132_v22 = vsub.f32 1.0, %v2131_v45  ;;  %vm2121_vm5 = vweird.f32 %v4203_v42  ;;  %vm4318_vm7 = vmor %vm1824_vm6, %vm1825_vm2 }
 0x283   : > { %4843 = vst [vmem:[#allocation25_spill] sm:$0xff] %v4192_v44  ;;  %vm4327_vm9 = vmor %vm2120_vm8, %vm2121_vm5 }
 0x284   : > { %2331 = vxpose.xlu0.b32.cont [11/16] %v3928_v51, 128  ;;  %v1032_v11 = vpop.trf.xlu2  ;;  %v1511_v58 = vmul.f32 1.442695, %v4849_v53  ;;  %v4851_v51 = vsub.f32 %v4850_v1, %v4848_v34  ;;  %v2116_v1 = vmul.f32 %v4203_v42, %v4174_v54  ;;  %v2133_v34 = vmul.f32 %v2961_v60, %v2132_v22 }
 0x285   : > { %v4206_v15 = vmul.f32 %v4053_v17, %v1032_v11  ;;  %v4209_v44 = vmul.f32 %v4068_v49, %v1032_v11  ;;  %v1838_v17 = vadd.f32 %v4166_v29, %v1837_v37  ;;  %v1245_v18 = vmul.f32 %v4184_v52, %v1244_v32 }
 0x286   : > { %v1517_v23 = vmul.f32 1.442695, %v4851_v51  ;;  %v1845_v37 = vand.u32 2147483648, %v4105_v61  ;;  %v1843_v11 = vand.u32 2147483647, %v4105_v61  ;;  %v2134_v45 = vadd.f32 %v2961_v60, %v2133_v34 }
 0x287   : > { %4845 = vst [vmem:[#allocation38_spill] sm:$0xff] %v4206_v15  ;;  %v999_v39 = vpop.trf.xlu1  ;;  %v2139_v51 = vand.u32 2147483647, %v4170_v13  ;;  %2966 = vpow2.f32 %v1511_v58  ;;  %v1253_v32 = vand.u32 2147483648, %v4126_v43  ;;  %v2117_v58 = vsub.f32 1.0, %v2116_v1 }
 0x288   : > { %4846 = vst [vmem:[#allocation26_spill] sm:$0xff] %v4209_v44  ;;  %v4222_v49 = vmul.f32 %v4099_v2, %v999_v39  ;;  %v4225_v36 = vmul.f32 %v4123_v28, %v999_v39  ;;  %v4227_v53 = vpop.trf.xlu0  ;;  %v2141_v39 = vand.u32 2147483648, %v4170_v13  ;;  %v2138_v44 = vsel %vm4252_vm14, %v2961_v60, %v2134_v45 }
 0x289   : > { %4854 = vst [vmem:[#allocation36_spill] sm:$0xff] %v4227_v53  ;;  %v4261_v15 = vadd.f32 %v4184_v52, %v1245_v18  ;;  %vm1844_vm15 = vcmp.eq.f32.partialorder %v1843_v11, 8.507059e+37  ;;  %vm2140_vm0 = vcmp.eq.f32.partialorder %v2139_v51, 8.507059e+37  ;;  %v2118_v11 = vmul.f32 %v4203_v42, %v2117_v58 }
 0x28a   : > { %4852 = vst [vmem:[#allocation35_spill] sm:$0xff] %v4222_v49  ;;  %v1251_v49 = vand.u32 2147483647, %v4126_v43  ;;  %2968 = vpow2.f32 %v1517_v23  ;;  %v2126_v51 = vand.u32 2147483648, %v4174_v54 }
 0x28b   : > { %4853 = vst [vmem:[#allocation27_spill] sm:$0xff] %v4225_v36  ;;  %v1821_v36 = vsub.f32 1.0, %v1820_v31  ;;  %v1842_v31 = vsel %vm4240_vm11, %v4166_v29, %v1838_v17  ;;  %v2142_v29 = vor.u32 1.1754944e-38, %v2141_v39  ;;  %v1250_v39 = vsel %vm4292_vm3, %v4184_v52, %v4261_v15 }
 0x28c   : > { %2332 = vxpose.xlu0.b32.cont [12/16] %v3944_v57, 128  ;;  %v1033_v61 = vpop.trf.xlu2  ;;  %v1846_v57 = vor.u32 1.1754944e-38, %v1845_v37  ;;  %vm4296_vm4 = vcmp.eq.f32.partialorder %v1251_v49, 8.507059e+37  ;;  %v1274_v49 = vmul.f32 %v4048_v25, %v4030_v0  ;;  %v1828_v52 = vand.u32 2147483647, %v4168_v56 }
 0x28d   : > { %v1898_v53 = vmul.f32 %v4055_v27, %v1033_v61  ;;  %v2194_v13 = vmul.f32 %v4083_v9, %v1033_v61  ;;  %v1822_v8 = vmul.f32 %v4199_v26, %v1821_v36  ;;  %v4277_v45 = vsel %vm2140_vm0, %v2142_v29, %v2138_v44 }
 0x28e   : > { %v4266_v3 = vsel %vm1844_vm15, %v1846_v57, %v1842_v31  ;;  %v2119_v61 = vadd.f32 %v4203_v42, %v2118_v11  ;;  %v2124_v15 = vand.u32 2147483647, %v4174_v54  ;;  %v2127_v29 = vor.u32 1.1754944e-38, %v2126_v51 }
 0x28f   : > { %v1914_v17 = vadd.f32 %v1898_v53, %v4077_v20  ;;  %v2210_v1 = vadd.f32 %v2194_v13, %v4103_v33  ;;  %v1000_v22 = vpop.trf.xlu1  ;;  %v4279_v20 = vpop.eup %2966  ;;  %v1254_v53 = vor.u32 1.1754944e-38, %v1253_v32  ;;  %v1823_v23 = vadd.f32 %v4199_v26, %v1822_v8 }
 0x290   : > { %v4269_v37 = vmul.f32 %v4099_v2, %v1000_v22  ;;  %v4272_v60 = vmul.f32 %v4123_v28, %v1000_v22  ;;  %v4274_v18 = vpop.trf.xlu0  ;;  %v1830_v2 = vand.u32 2147483648, %v4168_v56  ;;  %vm1829_vm10 = vcmp.eq.f32.partialorder %v1828_v52, 8.507059e+37 }
 0x291   : > { %v4282_v33 = vmul.f32 %v1914_v17, %v4266_v3  ;;  %v4285_v36 = vmul.f32 %v2210_v1, %v4277_v45  ;;  %v4331_v17 = vpop.eup %2968  ;;  %vm2125_vm11 = vcmp.eq.f32.partialorder %v2124_v15, 8.507059e+37  ;;  %v4361_v8 = vsel %vm4296_vm4, %v1254_v53, %v1250_v39 }
 0x292   : > { %v1831_v57 = vor.u32 1.1754944e-38, %v1830_v2  ;;  %v1276_v44 = vmul.f32 %v4048_v25, %v4037_v62  ;;  %v1572_v53 = vmul.f32 %v4279_v20, %v4037_v62 }
 0x294   : > { %2333 = vxpose.xlu0.b32.cont [13/16] %v3957_v48, 128  ;;  %v1034_v43 = vpop.trf.xlu2  ;;  %v1570_v48 = vmul.f32 %v4279_v20, %v4030_v0 }
 0x295   : > { %v1900_v32 = vmul.f32 %v4055_v27, %v1034_v43  ;;  %v2196_v31 = vmul.f32 %v4083_v9, %v1034_v43 }
 0x297   : > { %v1916_v58 = vadd.f32 %v1900_v32, %v4059_v19  ;;  %v2212_v34 = vadd.f32 %v2196_v31, %v4087_v63  ;;  %v1001_v13 = vpop.trf.xlu1  ;;  %v1827_v19 = vsel %vm4318_vm7, %v4199_v26, %v1823_v23  ;;  %v2123_v63 = vsel %vm4327_vm9, %v4203_v42, %v2119_v61 }
 0x298   : > { %v1897_v1 = vmul.f32 %v4107_v50, %v1001_v13  ;;  %v2193_v56 = vmul.f32 %v4129_v4, %v1001_v13  ;;  %v905_v22 = vpop.trf.xlu0  ;;  %v4353_v42 = vsel %vm1829_vm10, %v1831_v57, %v1827_v19  ;;  %v4355_v61 = vsel %vm2125_vm11, %v2127_v29, %v2123_v63 }
 0x299   : > { %v1306_v54 = vmul.f32 %v4051_v24, %v905_v22  ;;  %v1602_v11 = vmul.f32 %v4331_v17, %v905_v22  ;;  %v4344_v2 = vmul.f32 %v1916_v58, %v4266_v3  ;;  %v4347_v28 = vmul.f32 %v2212_v34, %v4277_v45 }
 0x29a   : > { %v1913_v51 = vadd.f32 %v1897_v1, %v4111_v12  ;;  %v2209_v43 = vadd.f32 %v2193_v56, %v4133_v6 }
 0x29b   : > { %v1322_v26 = vadd.f32 %v1306_v54, %v1274_v49  ;;  %v4351_v23 = vadd.f32 %v1602_v11, %v1570_v48 }
 0x29c   : > { %2334 = vxpose.xlu0.b32.cont [14/16] %v3971_v59, 128  ;;  %v1035_v32 = vpop.trf.xlu2  ;;  %v1929_v31 = vmul.f32 %v1913_v51, %v4353_v42  ;;  %v4364_v12 = vmul.f32 %v2209_v43, %v4355_v61  ;;  %v1574_v43 = vmul.f32 %v4279_v20, %v4046_v16 }
 0x29d   : > { %v1902_v6 = vmul.f32 %v4055_v27, %v1035_v32  ;;  %v2198_v49 = vmul.f32 %v4083_v9, %v1035_v32  ;;  %v1338_v48 = vmul.f32 %v1322_v26, %v4361_v8 }
 0x29e   : > { %2449 = vxpose.xlu2.b32.start [1/16] %v1929_v31, 128 }
 0x29f   : > { %v1918_v52 = vadd.f32 %v1902_v6, %v4063_v30  ;;  %v2214_v59 = vadd.f32 %v2198_v49, %v4091_v14  ;;  %2353 = vxpose.xlu1.b32.start [1/16] %v1338_v48, 128  ;;  %v1002_v15 = vpop.trf.xlu1 }
 0x2a0   : > { %v1899_v39 = vmul.f32 %v4107_v50, %v1002_v15  ;;  %v2195_v58 = vmul.f32 %v4129_v4, %v1002_v15  ;;  %v906_v34 = vpop.trf.xlu0 }
 0x2a1   : > { %v1308_v13 = vmul.f32 %v4051_v24, %v906_v34  ;;  %v1604_v57 = vmul.f32 %v4331_v17, %v906_v34  ;;  %v4380_v30 = vmul.f32 %v1918_v52, %v4266_v3  ;;  %v4383_v14 = vmul.f32 %v2214_v59, %v4277_v45 }
 0x2a2   : > { %v1915_v0 = vadd.f32 %v1899_v39, %v4115_v41  ;;  %v2211_v29 = vadd.f32 %v2195_v58, %v4137_v5 }
 0x2a3   : > { %v1324_v62 = vadd.f32 %v1308_v13, %v1276_v44  ;;  %v4387_v1 = vadd.f32 %v1604_v57, %v1572_v53  ;;  %v1576_v57 = vmul.f32 %v4279_v20, %v4073_v35 }
 0x2a4   : > { %2335 = vxpose.xlu0.b32.cont [15/16] %v3984_v46, 128  ;;  %v1036_v56 = vpop.trf.xlu2  ;;  %v1931_v22 = vmul.f32 %v1915_v0, %v4353_v42  ;;  %v4392_v19 = vmul.f32 %v2211_v29, %v4355_v61  ;;  %v1278_v46 = vmul.f32 %v4048_v25, %v4046_v16 }
 0x2a5   : > { %v1904_v63 = vmul.f32 %v4055_v27, %v1036_v56  ;;  %v2200_v54 = vmul.f32 %v4083_v9, %v1036_v56  ;;  %v1340_v11 = vmul.f32 %v1324_v62, %v4361_v8 }
 0x2a6   : > { %2450 = vxpose.xlu2.b32.cont [2/16] %v1931_v22, 128 }
 0x2a7   : > { %v1920_v41 = vadd.f32 %v1904_v63, %v4066_v10  ;;  %v2216_v5 = vadd.f32 %v2200_v54, %v4094_v40  ;;  %2354 = vxpose.xlu1.b32.cont [2/16] %v1340_v11, 128  ;;  %v1003_v51 = vpop.trf.xlu1  ;;  %v4867_v63 = vld [vmem:[#allocation30_spill] sm:$0xff]  ;;  %v4868_v11 = vld [vmem:[#allocation31_spill] sm:$0xff] }
 0x2a8   : > { %v1901_v26 = vmul.f32 %v4107_v50, %v1003_v51  ;;  %v2197_v32 = vmul.f32 %v4129_v4, %v1003_v51  ;;  %v907_v31 = vpop.trf.xlu0 }
 0x2a9   : > { %v1310_v6 = vmul.f32 %v4051_v24, %v907_v31  ;;  %v1606_v49 = vmul.f32 %v4331_v17, %v907_v31  ;;  %v4408_v10 = vmul.f32 %v1920_v41, %v4266_v3  ;;  %v4411_v40 = vmul.f32 %v2216_v5, %v4277_v45 }
 0x2aa   : > { %v1917_v48 = vadd.f32 %v1901_v26, %v4118_v47  ;;  %v2213_v52 = vadd.f32 %v2197_v32, %v4140_v7 }
 0x2ab   : > { %v1326_v16 = vadd.f32 %v1310_v6, %v1278_v46  ;;  %v4415_v59 = vadd.f32 %v1606_v49, %v1574_v43  ;;  %v1520_v6 = vadd.f32 %v4331_v17, %v4279_v20  ;;  %v4869_v49 = vld [vmem:[#allocation28_spill] sm:$0xff] }
 0x2ac   : > { %2336 = vxpose.xlu0.b32.end [16/16] %v4007_v55, 128  ;;  %v1037_v15 = vpop.trf.xlu2  ;;  %v1933_v44 = vmul.f32 %v1917_v48, %v4353_v42  ;;  %v4420_v53 = vmul.f32 %v2213_v52, %v4355_v61  ;;  %v1280_v55 = vmul.f32 %v4048_v25, %v4073_v35  ;;  %v4870_v52 = vld [vmem:[#allocation32_spill] sm:$0xff] }
 0x2ad   : > { %v1906_v39 = vmul.f32 %v4055_v27, %v1037_v15  ;;  %v2202_v58 = vmul.f32 %v4083_v9, %v1037_v15  ;;  %v1342_v34 = vmul.f32 %v1326_v16, %v4361_v8  ;;  %v4871_v15 = vld [vmem:[#allocation33_spill] sm:$0xff] }
 0x2ae   : > { %2451 = vxpose.xlu2.b32.cont [3/16] %v1933_v44, 128  ;;  %v1282_v44 = vmul.f32 %v4048_v25, %v4871_v15 }
 0x2af   : > { %v1922_v47 = vadd.f32 %v1906_v39, %v4071_v38  ;;  %v2218_v7 = vadd.f32 %v2202_v58, %v4097_v21  ;;  %2355 = vxpose.xlu1.b32.cont [3/16] %v1342_v34, 128  ;;  %v1004_v13 = vpop.trf.xlu1  ;;  %v1578_v39 = vmul.f32 %v4279_v20, %v4871_v15 }
 0x2b0   : > { %v1903_v0 = vmul.f32 %v4107_v50, %v1004_v13  ;;  %v2199_v29 = vmul.f32 %v4129_v4, %v1004_v13  ;;  %v908_v62 = vpop.trf.xlu0 }
 0x2b1   : > { %v1312_v56 = vmul.f32 %v4051_v24, %v908_v62  ;;  %v1608_v22 = vmul.f32 %v4331_v17, %v908_v62  ;;  %v4436_v38 = vmul.f32 %v1922_v47, %v4266_v3  ;;  %v4439_v21 = vmul.f32 %v2218_v7, %v4277_v45  ;;  %v4873_v62 = vld [vmem:[#allocation29_spill] sm:$0xff] }
 0x2b2   : > { %v1919_v54 = vadd.f32 %v1903_v0, %v4867_v63  ;;  %v2215_v41 = vadd.f32 %v2199_v29, %v4868_v11  ;;  %v4872_v0 = vld [vmem:[#allocation37_spill] sm:$0xff] }
 0x2b3   : > { %v1328_v35 = vadd.f32 %v1312_v56, %v1280_v55  ;;  %v4443_v5 = vadd.f32 %v1608_v22, %v1576_v57  ;;  %v4473_v22 = vmul.f32 3.0, %v1520_v6  ;;  %v4875_v6 = vld [vmem:[#allocation22_spill] sm:$0xff] }
 0x2b4   : > { %2481 = vxpose.xlu0.b32.start [1/16] %v4282_v33, 128  ;;  %v1038_v51 = vpop.trf.xlu2  ;;  %v1935_v46 = vmul.f32 %v1919_v54, %v4353_v42  ;;  %v4448_v43 = vmul.f32 %v2215_v41, %v4355_v61 }
 0x2b5   : > { %v1908_v26 = vmul.f32 %v4055_v27, %v1038_v51  ;;  %v2204_v32 = vmul.f32 %v4083_v9, %v1038_v51  ;;  %v1344_v31 = vmul.f32 %v1328_v35, %v4361_v8  ;;  %2970 = vrcp.f32 %v4473_v22 }
 0x2b6   : > { %2452 = vxpose.xlu2.b32.cont [4/16] %v1935_v46, 128  ;;  %vm1543_vm13 = vweird.f32 %v4473_v22 }
 0x2b7   : > { %v1924_v48 = vadd.f32 %v1908_v26, %v4869_v49  ;;  %v2220_v33 = vadd.f32 %v2204_v32, %v4870_v52  ;;  %2356 = vxpose.xlu1.b32.cont [4/16] %v1344_v31, 128  ;;  %v1005_v16 = vpop.trf.xlu1  ;;  %v4874_v32 = vld [vmem:[#allocation23_spill] sm:$0xff] }
 0x2b8   : > { %v1905_v58 = vmul.f32 %v4107_v50, %v1005_v16  ;;  %v2201_v34 = vmul.f32 %v4129_v4, %v1005_v16  ;;  %v909_v47 = vpop.trf.xlu0 }
 0x2b9   : > { %v1314_v7 = vmul.f32 %v4051_v24, %v909_v47  ;;  %v1610_v13 = vmul.f32 %v4331_v17, %v909_v47  ;;  %v4466_v55 = vmul.f32 %v1924_v48, %v4266_v3  ;;  %v4469_v57 = vmul.f32 %v2220_v33, %v4277_v45  ;;  %v4876_v48 = vld [vmem:[#allocation34_spill] sm:$0xff] }
 0x2ba   : > { %v1921_v29 = vadd.f32 %v1905_v58, %v4872_v0  ;;  %v2217_v56 = vadd.f32 %v2201_v34, %v4873_v62  ;;  %v1284_v52 = vmul.f32 %v4048_v25, %v4876_v48  ;;  %v1580_v33 = vmul.f32 %v4279_v20, %v4876_v48  ;;  %v4878_v0 = vld [vmem:[#allocation25_spill] sm:$0xff] }
 0x2bb   : > { %v1330_v63 = vadd.f32 %v1314_v7, %v1282_v44  ;;  %v4475_v54 = vadd.f32 %v1610_v13, %v1578_v39  ;;  %v4877_v7 = vld [vmem:[#allocation24_spill] sm:$0xff] }
 0x2bc   : > { %2482 = vxpose.xlu0.b32.cont [2/16] %v4344_v2, 128  ;;  %v1039_v11 = vpop.trf.xlu2  ;;  %v1937_v41 = vmul.f32 %v1921_v29, %v4353_v42  ;;  %v4480_v35 = vmul.f32 %v2217_v56, %v4355_v61 }
 0x2bd   : > { %v1910_v51 = vmul.f32 %v4055_v27, %v1039_v11  ;;  %v2206_v46 = vmul.f32 %v4083_v9, %v1039_v11  ;;  %v1346_v26 = vmul.f32 %v1330_v63, %v4361_v8  ;;  %v4506_v63 = vpop.eup %2970 }
 0x2be   : > { %2453 = vxpose.xlu2.b32.cont [5/16] %v1937_v41, 128  ;;  %vm1544_vm12 = vweird.f32 %v4506_v63 }
 0x2bf   : > { %v1926_v31 = vadd.f32 %v1910_v51, %v4874_v32  ;;  %v2222_v49 = vadd.f32 %v2206_v46, %v4875_v6  ;;  %2357 = vxpose.xlu1.b32.cont [5/16] %v1346_v26, 128  ;;  %v1006_v2 = vpop.trf.xlu1  ;;  %vm1545_vm14 = vmor %vm1543_vm13, %vm1544_vm12 }
 0x2c0   : > { %v1907_v16 = vmul.f32 %v4107_v50, %v1006_v2  ;;  %v2203_v15 = vmul.f32 %v4129_v4, %v1006_v2  ;;  %v910_v44 = vpop.trf.xlu0 }
 0x2c1   : > { %v1316_v39 = vmul.f32 %v4051_v24, %v910_v44  ;;  %v1612_v58 = vmul.f32 %v4331_v17, %v910_v44  ;;  %v4497_v34 = vmul.f32 %v1926_v31, %v4266_v3  ;;  %v4500_v47 = vmul.f32 %v2222_v49, %v4277_v45  ;;  %v4879_v31 = vld [vmem:[#allocation38_spill] sm:$0xff] }
 0x2c2   : > { %v1923_v13 = vadd.f32 %v1907_v16, %v4877_v7  ;;  %v2219_v29 = vadd.f32 %v2203_v15, %v4878_v0  ;;  %v4880_v49 = vld [vmem:[#allocation26_spill] sm:$0xff] }
 0x2c3   : > { %v1332_v62 = vadd.f32 %v1316_v39, %v1284_v52  ;;  %v4504_v56 = vadd.f32 %v1612_v58, %v1580_v33  ;;  %v4881_v52 = vld [vmem:[#allocation36_spill] sm:$0xff] }
 0x2c4   : > { %2483 = vxpose.xlu0.b32.cont [3/16] %v4380_v30, 128  ;;  %v1040_v11 = vpop.trf.xlu2  ;;  %v1939_v41 = vmul.f32 %v1923_v13, %v4353_v42  ;;  %v4511_v51 = vmul.f32 %v2219_v29, %v4355_v61  ;;  %v1539_v30 = vmul.f32 %v4506_v63, %v4473_v22  ;;  %v1286_v33 = vmul.f32 %v4048_v25, %v4881_v52  ;;  %v4882_v13 = vld [vmem:[#allocation35_spill] sm:$0xff] }
 0x2c5   : > { %v1912_v46 = vmul.f32 %v4055_v27, %v1040_v11  ;;  %v2208_v26 = vmul.f32 %v4083_v9, %v1040_v11  ;;  %v1348_v32 = vmul.f32 %v1332_v62, %v4361_v8  ;;  %v1582_v27 = vmul.f32 %v4279_v20, %v4881_v52  ;;  %v4883_v29 = vld [vmem:[#allocation27_spill] sm:$0xff] }
 0x2c6   : > { %2454 = vxpose.xlu2.b32.cont [6/16] %v1939_v41, 128 }
 0x2c7   : > { %v1928_v6 = vadd.f32 %v1912_v46, %v4879_v31  ;;  %v2224_v2 = vadd.f32 %v2208_v26, %v4880_v49  ;;  %2358 = vxpose.xlu1.b32.cont [6/16] %v1348_v32, 128  ;;  %v1007_v48 = vpop.trf.xlu1  ;;  %v1540_v26 = vsub.f32 1.0, %v1539_v30 }
 0x2c8   : > { %v1909_v9 = vmul.f32 %v4107_v50, %v1007_v48  ;;  %v2205_v16 = vmul.f32 %v4129_v4, %v1007_v48  ;;  %v911_v15 = vpop.trf.xlu0  ;;  %v1584_v48 = vmul.f32 %v4279_v20, %v4274_v18 }
 0x2c9   : > { %v1318_v44 = vmul.f32 %v4051_v24, %v911_v15  ;;  %v1614_v39 = vmul.f32 %v4331_v17, %v911_v15  ;;  %v1944_v58 = vmul.f32 %v1928_v6, %v4266_v3  ;;  %v4530_v7 = vmul.f32 %v2224_v2, %v4277_v45 }
 0x2ca   : > { %v1925_v0 = vadd.f32 %v1909_v9, %v4882_v13  ;;  %v2221_v62 = vadd.f32 %v2205_v16, %v4883_v29  ;;  %v1541_v2 = vmul.f32 %v4506_v63, %v1540_v26 }
 0x2cb   : > { %v1334_v11 = vadd.f32 %v1318_v44, %v1286_v33  ;;  %v4534_v41 = vadd.f32 %v1614_v39, %v1582_v27 }
 0x2cc   : > { %2484 = vxpose.xlu0.b32.cont [4/16] %v4408_v10, 128  ;;  %v1941_v46 = vmul.f32 %v1925_v0, %v4353_v42  ;;  %v4539_v32 = vmul.f32 %v2221_v62, %v4355_v61  ;;  %v1288_v10 = vmul.f32 %v4048_v25, %v4274_v18 }
 0x2cd   : > { %v1350_v3 = vmul.f32 %v1334_v11, %v4361_v8 }
 0x2ce   : > { %2455 = vxpose.xlu2.b32.cont [7/16] %v1941_v46, 128 }
 0x2cf   : > { %2359 = vxpose.xlu1.b32.cont [7/16] %v1350_v3, 128  ;;  %v1008_v45 = vpop.trf.xlu1 }
 0x2d0   : > { %v1911_v31 = vmul.f32 %v4107_v50, %v1008_v45  ;;  %v2207_v6 = vmul.f32 %v4129_v4, %v1008_v45  ;;  %v912_v49 = vpop.trf.xlu0 }
 0x2d1   : > { %v1320_v30 = vmul.f32 %v4051_v24, %v912_v49  ;;  %v1616_v52 = vmul.f32 %v4331_v17, %v912_v49  ;;  %v1542_v24 = vadd.f32 %v4506_v63, %v1541_v2 }
 0x2d2   : > { %v1927_v33 = vadd.f32 %v1911_v31, %v4269_v37  ;;  %v2223_v27 = vadd.f32 %v2207_v6, %v4272_v60  ;;  %v1549_v37 = vand.u32 2147483648, %v4473_v22  ;;  %v1547_v60 = vand.u32 2147483647, %v4473_v22 }
 0x2d3   : > { %v1336_v50 = vadd.f32 %v1320_v30, %v1288_v10  ;;  %v4553_v4 = vadd.f32 %v1616_v52, %v1584_v48  ;;  %v1546_v17 = vsel %vm1545_vm14, %v4506_v63, %v1542_v24 }
 0x2d4   : > { %2485 = vxpose.xlu0.b32.cont [5/16] %v4436_v38, 128  ;;  %v1943_v9 = vmul.f32 %v1927_v33, %v4353_v42  ;;  %v2239_v25 = vmul.f32 %v2223_v27, %v4355_v61  ;;  %v1550_v42 = vor.u32 1.1754944e-38, %v1549_v37  ;;  %vm1548_vm15 = vcmp.eq.f32.partialorder %v1547_v60, 8.507059e+37 }
 0x2d5   : > { %v1352_v18 = vmul.f32 %v1336_v50, %v4361_v8 }
 0x2d6   : > { %2456 = vxpose.xlu2.b32.cont [8/16] %v1943_v9, 128  ;;  %v1551_v61 = vsel %vm1548_vm15, %v1550_v42, %v1546_v17 }
 0x2d7   : > { %2360 = vxpose.xlu1.b32.cont [8/16] %v1352_v18, 128  ;;  %v1634_v8 = vmul.f32 %v4351_v23, %v1551_v61  ;;  %v1636_v22 = vmul.f32 %v4387_v1, %v1551_v61 }
 0x2d8   : > { %v2337_v20 = vpop.trf.xlu0 }
 0x2d9   : > { %2385 = vst [vmem:[%s4565_s24] sm:$0xff] %v2337_v20 }
 0x2dc   : > { %2486 = vxpose.xlu0.b32.cont [6/16] %v4466_v55, 128  ;;  %v1638_v55 = vmul.f32 %v4415_v59, %v1551_v61 }
 0x2de   : > { %2457 = vxpose.xlu2.b32.cont [9/16] %v4364_v12, 128  ;;  %v1640_v12 = vmul.f32 %v4443_v5, %v1551_v61 }
 0x2df   : > { %2361 = vxpose.xlu1.b32.cont [9/16] %v1634_v8, 128 }
 0x2e0   : > { %v2338_v38 = vpop.trf.xlu0 }
 0x2e1   : > { %2386 = vst [vmem:[%s4565_s24 + $0x18] sm:$0xff] %v2338_v38  ;;  %v3152_v38 = vmov 0.0  }
 0x2e2   : > { %2641 = vst [vmem:[%s4565_s24 + $0x10] sm:$0xff] %v3152_v38 }
 0x2e3   : > { %2642 = vst [vmem:[%s4565_s24 + $0x28] sm:$0xff] %v3152_v38 }
 0x2e4   : > { %2487 = vxpose.xlu0.b32.cont [7/16] %v4497_v34, 128  ;;  %2643 = vst [vmem:[%s4565_s24 + $0x40] sm:$0xff] %v3152_v38 }
 0x2e5   : > { %2644 = vst [vmem:[%s4565_s24 + $0x58] sm:$0xff] %v3152_v38 }
 0x2e6   : > { %2458 = vxpose.xlu2.b32.cont [10/16] %v4392_v19, 128  ;;  %v1642_v19 = vmul.f32 %v4475_v54, %v1551_v61  ;;  %2645 = vst [vmem:[%s4565_s24 + $0x70] sm:$0xff] %v3152_v38 }
 0x2e7   : > { %2362 = vxpose.xlu1.b32.cont [10/16] %v1636_v22, 128  ;;  %2646 = vst [vmem:[%s4565_s24 + $0x88] sm:$0xff] %v3152_v38 }
 0x2e8   : > { %v2339_v63 = vpop.trf.xlu0  ;;  %2647 = vst [vmem:[%s4565_s24 + $0xa0] sm:$0xff] %v3152_v38 }
 0x2e9   : > { %2387 = vst [vmem:[%s4565_s24 + $0x30] sm:$0xff] %v2339_v63 }
 0x2ea   : > { %2648 = vst [vmem:[%s4565_s24 + $0xb8] sm:$0xff] %v3152_v38 }
 0x2eb   : > { %2649 = vst [vmem:[%s4565_s24 + $0xd0] sm:$0xff] %v3152_v38 }
 0x2ec   : > { %2488 = vxpose.xlu0.b32.cont [8/16] %v1944_v58, 128  ;;  %2650 = vst [vmem:[%s4565_s24 + $0xe8] sm:$0xff] %v3152_v38 }
 0x2ed   : > { %2651 = vst [vmem:[%s4565_s24 + $0x100] sm:$0xff] %v3152_v38 }
 0x2ee   : > { %2459 = vxpose.xlu2.b32.cont [11/16] %v4420_v53, 128  ;;  %2652 = vst [vmem:[%s4565_s24 + $0x118] sm:$0xff] %v3152_v38 }
 0x2ef   : > { %2363 = vxpose.xlu1.b32.cont [11/16] %v1638_v55, 128  ;;  %2653 = vst [vmem:[%s4565_s24 + $0x130] sm:$0xff] %v3152_v38 }
 0x2f0   : > { %v2340_v23 = vpop.trf.xlu0  ;;  %2654 = vst [vmem:[%s4565_s24 + $0x148] sm:$0xff] %v3152_v38 }
 0x2f1   : > { %2388 = vst [vmem:[%s4565_s24 + $0x48] sm:$0xff] %v2340_v23 }
 0x2f2   : > { %2655 = vst [vmem:[%s4565_s24 + $0x160] sm:$0xff] %v3152_v38 }
 0x2f3   : > { %2656 = vst [vmem:[%s4565_s24 + $0x178] sm:$0xff] %v3152_v38 }
 0x2f4   : > { %2489 = vxpose.xlu0.b32.cont [9/16] %v4285_v36, 128  ;;  %v1644_v36 = vmul.f32 %v4504_v56, %v1551_v61  ;;  %2657 = vst [vmem:[%s4565_s24 + $0x190] sm:$0xff] %v3152_v38 }
 0x2f5   : > { %2658 = vst [vmem:[%s4565_s24 + $0x1a8] sm:$0xff] %v3152_v38 }
 0x2f6   : > { %2460 = vxpose.xlu2.b32.cont [12/16] %v4448_v43, 128  ;;  %2659 = vst [vmem:[%s4565_s24 + $0x1c0] sm:$0xff] %v3152_v38 }
 0x2f7   : > { %2364 = vxpose.xlu1.b32.cont [12/16] %v1640_v12, 128  ;;  %2660 = vst [vmem:[%s4565_s24 + $0x1d8] sm:$0xff] %v3152_v38 }
 0x2f8   : > { %v2341_v1 = vpop.trf.xlu0  ;;  %2661 = vst [vmem:[%s4565_s24 + $0x1f0] sm:$0xff] %v3152_v38 }
 0x2f9   : > { %2389 = vst [vmem:[%s4565_s24 + $0x60] sm:$0xff] %v2341_v1 }
 0x2fa   : > { %2662 = vst [vmem:[%s4565_s24 + $0x208] sm:$0xff] %v3152_v38 }
 0x2fb   : > { %2663 = vst [vmem:[%s4565_s24 + $0x220] sm:$0xff] %v3152_v38 }
 0x2fc   : > { %2490 = vxpose.xlu0.b32.cont [10/16] %v4347_v28, 128  ;;  %v1646_v28 = vmul.f32 %v4534_v41, %v1551_v61  ;;  %2664 = vst [vmem:[%s4565_s24 + $0x238] sm:$0xff] %v3152_v38 }
 0x2fd   : > { %2665 = vst [vmem:[%s4565_s24 + $0x250] sm:$0xff] %v3152_v38 }
 0x2fe   : > { %2461 = vxpose.xlu2.b32.cont [13/16] %v4480_v35, 128  ;;  %2666 = vst [vmem:[%s4565_s24 + $0x268] sm:$0xff] %v3152_v38 }
 0x2ff   : > { %2365 = vxpose.xlu1.b32.cont [13/16] %v1642_v19, 128  ;;  %2667 = vst [vmem:[%s4565_s24 + $0x280] sm:$0xff] %v3152_v38 }
 0x300   : > { %v2342_v59 = vpop.trf.xlu0  ;;  %2668 = vst [vmem:[%s4565_s24 + $0x298] sm:$0xff] %v3152_v38 }
 0x301   : > { %2390 = vst [vmem:[%s4565_s24 + $0x78] sm:$0xff] %v2342_v59 }
 0x302   : > { %2669 = vst [vmem:[%s4565_s24 + $0x2b0] sm:$0xff] %v3152_v38 }
 0x303   : > { %2670 = vst [vmem:[%s4565_s24 + $0x2c8] sm:$0xff] %v3152_v38 }
 0x304   : > { %2491 = vxpose.xlu0.b32.cont [11/16] %v4383_v14, 128  ;;  %v1648_v14 = vmul.f32 %v4553_v4, %v1551_v61  ;;  %2671 = vst [vmem:[%s4565_s24 + $0x2e0] sm:$0xff] %v3152_v38 }
 0x305   : > { %2672 = vst [vmem:[%s4565_s24 + $0x2f8] sm:$0xff] %v3152_v38 }
 0x306   : > { %2462 = vxpose.xlu2.b32.cont [14/16] %v4511_v51, 128 }
 0x307   : > { %2366 = vxpose.xlu1.b32.cont [14/16] %v1644_v36, 128 }
 0x308   : > { %v2343_v53 = vpop.trf.xlu0 }
 0x309   : > { %2391 = vst [vmem:[%s4565_s24 + $0x90] sm:$0xff] %v2343_v53 }
 0x30c   : > { %2492 = vxpose.xlu0.b32.cont [12/16] %v4411_v40, 128 }
 0x30e   : > { %2463 = vxpose.xlu2.b32.cont [15/16] %v4539_v32, 128 }
 0x30f   : > { %2367 = vxpose.xlu1.b32.cont [15/16] %v1646_v28, 128 }
 0x310   : > { %v2344_v5 = vpop.trf.xlu0 }
 0x311   : > { %2392 = vst [vmem:[%s4565_s24 + $0xa8] sm:$0xff] %v2344_v5 }
 0x314   : > { %2493 = vxpose.xlu0.b32.cont [13/16] %v4439_v21, 128 }
 0x316   : > { %2464 = vxpose.xlu2.b32.end [16/16] %v2239_v25, 128 }
 0x317   : > { %2368 = vxpose.xlu1.b32.end [16/16] %v1648_v14, 128 }
 0x318   : > { %v2345_v43 = vpop.trf.xlu0 }
 0x319   : > { %2393 = vst [vmem:[%s4565_s24 + $0xc0] sm:$0xff] %v2345_v43 }
 0x31c   : > { %2494 = vxpose.xlu0.b32.cont [14/16] %v4469_v57, 128 }
 0x320   : > { %v2346_v40 = vpop.trf.xlu0 }
 0x321   : > { %2394 = vst [vmem:[%s4565_s24 + $0xd8] sm:$0xff] %v2346_v40 }
 0x324   : > { %2495 = vxpose.xlu0.b32.cont [15/16] %v4500_v47, 128 }
 0x328   : > { %v2347_v54 = vpop.trf.xlu0 }
 0x329   : > { %2395 = vst [vmem:[%s4565_s24 + $0xf0] sm:$0xff] %v2347_v54 }
 0x32c   : > { %2496 = vxpose.xlu0.b32.end [16/16] %v4530_v7, 128 }
 0x330   : > { %v2348_v21 = vpop.trf.xlu0 }
 0x331   : > { %2396 = vst [vmem:[%s4565_s24 + $0x108] sm:$0xff] %v2348_v21 }
 0x337   : > { %v2465_v35 = vpop.trf.xlu2 }
 0x338   : > { %v2349_v34 = vpop.trf.xlu0  ;;  %2513 = vst [vmem:[%s4565_s24 + $0x8] sm:$0xff] %v2465_v35 }
 0x339   : > { %2397 = vst [vmem:[%s4565_s24 + $0x120] sm:$0xff] %v2349_v34 }
 0x33f   : > { %v2466_v57 = vpop.trf.xlu2 }
 0x340   : > { %v2350_v56 = vpop.trf.xlu0  ;;  %2514 = vst [vmem:[%s4565_s24 + $0x20] sm:$0xff] %v2466_v57 }
 0x341   : > { %2398 = vst [vmem:[%s4565_s24 + $0x138] sm:$0xff] %v2350_v56 }
 0x343   : > { %v2369_v47 = vpop.trf.xlu1 }
 0x344   : > { %2401 = vst [vmem:[%s4565_s24 + $0x180] sm:$0xff] %v2369_v47 }
 0x347   : > { %v2467_v51 = vpop.trf.xlu2 }
 0x348   : > { %v2351_v16 = vpop.trf.xlu0  ;;  %2515 = vst [vmem:[%s4565_s24 + $0x38] sm:$0xff] %v2467_v51 }
 0x349   : > { %2399 = vst [vmem:[%s4565_s24 + $0x150] sm:$0xff] %v2351_v16 }
 0x34b   : > { %v2370_v15 = vpop.trf.xlu1 }
 0x34c   : > { %2402 = vst [vmem:[%s4565_s24 + $0x198] sm:$0xff] %v2370_v15 }
 0x34f   : > { %v2468_v44 = vpop.trf.xlu2 }
 0x350   : > { %v2352_v39 = vpop.trf.xlu0  ;;  %2516 = vst [vmem:[%s4565_s24 + $0x50] sm:$0xff] %v2468_v44 }
 0x351   : > { %2400 = vst [vmem:[%s4565_s24 + $0x168] sm:$0xff] %v2352_v39 }
 0x353   : > { %v2371_v58 = vpop.trf.xlu1 }
 0x354   : > { %2403 = vst [vmem:[%s4565_s24 + $0x1b0] sm:$0xff] %v2371_v58 }
 0x357   : > { %v2469_v7 = vpop.trf.xlu2 }
 0x358   : > { %v2497_v13 = vpop.trf.xlu0  ;;  %2517 = vst [vmem:[%s4565_s24 + $0x68] sm:$0xff] %v2469_v7 }
 0x359   : > { %2529 = vst [vmem:[%s4565_s24 + $0x188] sm:$0xff] %v2497_v13 }
 0x35b   : > { %v2372_v0 = vpop.trf.xlu1 }
 0x35c   : > { %2404 = vst [vmem:[%s4565_s24 + $0x1c8] sm:$0xff] %v2372_v0 }
 0x35f   : > { %v2470_v29 = vpop.trf.xlu2 }
 0x360   : > { %v2498_v62 = vpop.trf.xlu0  ;;  %2518 = vst [vmem:[%s4565_s24 + $0x80] sm:$0xff] %v2470_v29 }
 0x361   : > { %2530 = vst [vmem:[%s4565_s24 + $0x1a0] sm:$0xff] %v2498_v62 }
 0x363   : > { %v2373_v11 = vpop.trf.xlu1 }
 0x364   : > { %2405 = vst [vmem:[%s4565_s24 + $0x1e0] sm:$0xff] %v2373_v11 }
 0x367   : > { %v2471_v41 = vpop.trf.xlu2 }
 0x368   : > { %v2499_v46 = vpop.trf.xlu0  ;;  %2519 = vst [vmem:[%s4565_s24 + $0x98] sm:$0xff] %v2471_v41 }
 0x369   : > { %2531 = vst [vmem:[%s4565_s24 + $0x1b8] sm:$0xff] %v2499_v46 }
 0x36b   : > { %v2374_v26 = vpop.trf.xlu1 }
 0x36c   : > { %2406 = vst [vmem:[%s4565_s24 + $0x1f8] sm:$0xff] %v2374_v26 }
 0x36f   : > { %v2472_v32 = vpop.trf.xlu2 }
 0x370   : > { %v2500_v3 = vpop.trf.xlu0  ;;  %2520 = vst [vmem:[%s4565_s24 + $0xb0] sm:$0xff] %v2472_v32 }
 0x371   : > { %2532 = vst [vmem:[%s4565_s24 + $0x1d0] sm:$0xff] %v2500_v3 }
 0x373   : > { %v2375_v45 = vpop.trf.xlu1 }
 0x374   : > { %2407 = vst [vmem:[%s4565_s24 + $0x210] sm:$0xff] %v2375_v45 }
 0x377   : > { %v2473_v31 = vpop.trf.xlu2 }
 0x378   : > { %v2501_v6 = vpop.trf.xlu0  ;;  %2521 = vst [vmem:[%s4565_s24 + $0xc8] sm:$0xff] %v2473_v31 }
 0x379   : > { %2533 = vst [vmem:[%s4565_s24 + $0x1e8] sm:$0xff] %v2501_v6 }
 0x37b   : > { %v2376_v49 = vpop.trf.xlu1 }
 0x37c   : > { %2408 = vst [vmem:[%s4565_s24 + $0x228] sm:$0xff] %v2376_v49 }
 0x37f   : > { %v2474_v2 = vpop.trf.xlu2 }
 0x380   : > { %v2502_v10 = vpop.trf.xlu0  ;;  %2522 = vst [vmem:[%s4565_s24 + $0xe0] sm:$0xff] %v2474_v2 }
 0x381   : > { %2534 = vst [vmem:[%s4565_s24 + $0x200] sm:$0xff] %v2502_v10 }
 0x383   : > { %v2377_v48 = vpop.trf.xlu1 }
 0x384   : > { %2409 = vst [vmem:[%s4565_s24 + $0x240] sm:$0xff] %v2377_v48 }
 0x387   : > { %v2475_v30 = vpop.trf.xlu2 }
 0x388   : > { %v2503_v52 = vpop.trf.xlu0  ;;  %2523 = vst [vmem:[%s4565_s24 + $0xf8] sm:$0xff] %v2475_v30 }
 0x389   : > { %2535 = vst [vmem:[%s4565_s24 + $0x218] sm:$0xff] %v2503_v52 }
 0x38b   : > { %v2378_v33 = vpop.trf.xlu1 }
 0x38c   : > { %2410 = vst [vmem:[%s4565_s24 + $0x258] sm:$0xff] %v2378_v33 }
 0x38f   : > { %v2476_v27 = vpop.trf.xlu2 }
 0x390   : > { %v2504_v50 = vpop.trf.xlu0  ;;  %2524 = vst [vmem:[%s4565_s24 + $0x110] sm:$0xff] %v2476_v27 }
 0x391   : > { %2536 = vst [vmem:[%s4565_s24 + $0x230] sm:$0xff] %v2504_v50 }
 0x393   : > { %v2379_v4 = vpop.trf.xlu1 }
 0x394   : > { %2411 = vst [vmem:[%s4565_s24 + $0x270] sm:$0xff] %v2379_v4 }
 0x397   : > { %v2477_v9 = vpop.trf.xlu2 }
 0x398   : > { %v2505_v25 = vpop.trf.xlu0  ;;  %2525 = vst [vmem:[%s4565_s24 + $0x128] sm:$0xff] %v2477_v9 }
 0x399   : > { %2537 = vst [vmem:[%s4565_s24 + $0x248] sm:$0xff] %v2505_v25 }
 0x39b   : > { %v2380_v18 = vpop.trf.xlu1 }
 0x39c   : > { %2412 = vst [vmem:[%s4565_s24 + $0x288] sm:$0xff] %v2380_v18 }
 0x39f   : > { %v2478_v24 = vpop.trf.xlu2 }
 0x3a0   : > { %v2506_v37 = vpop.trf.xlu0  ;;  %2526 = vst [vmem:[%s4565_s24 + $0x140] sm:$0xff] %v2478_v24 }
 0x3a1   : > { %2538 = vst [vmem:[%s4565_s24 + $0x260] sm:$0xff] %v2506_v37 }
 0x3a3   : > { %v2381_v60 = vpop.trf.xlu1 }
 0x3a4   : > { %2413 = vst [vmem:[%s4565_s24 + $0x2a0] sm:$0xff] %v2381_v60 }
 0x3a7   : > { %v2479_v20 = vpop.trf.xlu2 }
 0x3a8   : > { %v2507_v17 = vpop.trf.xlu0  ;;  %2527 = vst [vmem:[%s4565_s24 + $0x158] sm:$0xff] %v2479_v20 }
 0x3a9   : > { %2539 = vst [vmem:[%s4565_s24 + $0x278] sm:$0xff] %v2507_v17 }
 0x3ab   : > { %v2382_v42 = vpop.trf.xlu1 }
 0x3ac   : > { %2414 = vst [vmem:[%s4565_s24 + $0x2b8] sm:$0xff] %v2382_v42 }
 0x3af   : > { %v2480_v61 = vpop.trf.xlu2 }
 0x3b0   : > { %v2508_v8 = vpop.trf.xlu0  ;;  %2528 = vst [vmem:[%s4565_s24 + $0x170] sm:$0xff] %v2480_v61 }
 0x3b1   : > { %2540 = vst [vmem:[%s4565_s24 + $0x290] sm:$0xff] %v2508_v8 }
 0x3b3   : > { %v2383_v22 = vpop.trf.xlu1 }
 0x3b4   : > { %2415 = vst [vmem:[%s4565_s24 + $0x2d0] sm:$0xff] %v2383_v22 }
 0x3b8   : > { %v2509_v63 = vpop.trf.xlu0 }
 0x3b9   : > { %2541 = vst [vmem:[%s4565_s24 + $0x2a8] sm:$0xff] %v2509_v63 }
 0x3bb   : > { %v2384_v55 = vpop.trf.xlu1 }
 0x3bc   : > { %2416 = vst [vmem:[%s4565_s24 + $0x2e8] sm:$0xff] %v2384_v55 }
 0x3c0   : > { %v2510_v23 = vpop.trf.xlu0 }
 0x3c1   : > { %2542 = vst [vmem:[%s4565_s24 + $0x2c0] sm:$0xff] %v2510_v23 }
 0x3c8   : > { %v2511_v12 = vpop.trf.xlu0 }
 0x3c9   : > { %2543 = vst [vmem:[%s4565_s24 + $0x2d8] sm:$0xff] %v2511_v12 }
 0x3d0   : > { %v2512_v1 = vpop.trf.xlu0 }
 0x3d1   : > { %2544 = vst [vmem:[%s4565_s24 + $0x2f0] sm:$0xff] %v2512_v1 }
 0x3d2   : > { %3089 = shalt.err (!%p3086_p13)
}
 0x3d3   : > { %s3153_s11 = smov 384   ;;  %s3154_s1 = smov 24  }
 0x3d4   : > { %2853 = dma.vmem_to_hbm [thread:$0]  (%p3230_p9), %s2690_s21, 12288, %s2692_s22, %s2674_s15, %s3153_s11, %s3153_s11, %s3154_s1  }
 0x3d5 PF: > { %s4884_s20 = sld [smem:[#allocation19_spill]]  ;;  %s2706_s28 = sand.u32 1, %s3128_s12  }
 0x3d6   : > { %p2866_p0 = pnand %p2831_p12, %p3237_p11  ;;  %s2707_s16 = scalar_lea.sflag [#allocation9], %s2706_s28 }
 0x3d8   : > { %p2867_p1 = pneg %p2866_p0 }
 0x3da   : > { %3123 = dma.done.wait (%p2867_p1), %s2707_s16, 12288  }
 0x3db   : > { %3125 = vsyncadd (%p2867_p1), %s2707_s16, 4294955008  ;;  %s22_s17 = sadd.s32 1, %s4884_s20   ;;  %s4885_s14 = sld [smem:[#allocation17_spill]] }
 0x3dc   : > { %p19_p2 = scmp.ge.s32.totalorder %s22_s17, 4   ;;  %s4886_s26 = sld [smem:[#allocation21_spill]] }
 0x3dd   : > { %s4887_s15 = sld [smem:[#allocation18_spill]]  ;;  %s4889_s12 = smov %s3132_s13 }
 0x3de   : > { %s4888_s16 = sld [smem:[#allocation20_spill]]  ;;  %21 = sbr.rel (!%p19_p2) target bundleno = 10 (0xa), region = 101 }
 0x3e1   : > { %s4890_s13 = smov %s4885_s14 }
 0x3e2   : > { %s4891_s14 = smov %s4886_s26 }
 0x3e3   :  { %2713 = vsyncpa [#allocation8], 1 }
 0x3e4   :  { %2715 = vsyncpa [#allocation8 + $0x1], 1 }
 0x3e5   :  { %2716 = vsyncpa [#allocation11], 1 }
 0x3e6   :  { %2718 = vsyncpa [#allocation11 + $0x1], 1 }
 0x3e7   :  { %2719 = vsyncpa [#allocation9], 1 }
 0x3e8   :  { %2721 = vsyncpa [#allocation9 + $0x1], 1 }

</bundles_post_ra>
